<compile_context>
chip_gen: v6e
topology: v6e:2x2x1
jax: 0.10.0
libtpu: 0.0.40
codegen_flags: <defaults>
</compile_context>

<pallas_src>
import jax
import jax.numpy as jnp
import numpy as np
from jax.experimental import pallas as pl
from jax.experimental.pallas import tpu as pltpu

# ------------------------- model hyper-parameters -------------------------
DIM = 3         # input point dimension
C_DIM = 8       # latent feature dim
HIDDEN = 32     # hidden size
N_BLOCKS = 3    # number of ResnetBlockFC blocks
PADDING = 0.1

IN_FEATS = 16                 # 3 (p) + 8 (c) + 1 (bias row) + 4 zero padding rows
BIAS_ROW = DIM + C_DIM        # row index of the constant 1.0 row
NSUB = 8                      # lane-subtiles per grid step (= rows of the dense output)
TILE = 8192                   # max points per grid step (multiple of NSUB*128)


def _round_up(a, m):
    return ((a + m - 1) // m) * m


# ------------------------- Pallas kernel (decoder MLP hot path) -------------------------
def _decoder_kernel(x_ref, wf_ref, wres_ref, bres_ref, wout_ref, bout_ref, out_ref):
    f32, bf16 = jnp.float32, jnp.bfloat16
    sub = out_ref.shape[1]                 # lane width of one output row (= TILE // NSUB)

    wf = wf_ref[...]                       # (3H, 16) bf16 : fused fc_p/fc_c/bias weights
    wout = wout_ref[...]                   # (H, 1)  f32
    bout = bout_ref[...]                   # (1, 1)  f32

    for j in range(NSUB):                  # static unroll over lane-subtiles
        x = x_ref[:, j * sub:(j + 1) * sub]                               # (16, sub) bf16

        # Fused fc_p(p) + fc_c[i](c) + biases for all blocks (bias via the ones row).
        front = jnp.dot(wf, x, preferred_element_type=f32)                # (3H, sub) f32

        net = front[0:HIDDEN, :]                                          # block 0 input
        for i in range(N_BLOCKS):                                         # static unroll
            if i > 0:
                net = net + front[i * HIDDEN:(i + 1) * HIDDEN, :]         # + fc_c[i](c)+bc
            # ResnetBlockFC: h = fc_0(relu(net)); dx = fc_1(relu(h)); net = net + dx
            # (relu/add stay f32 -- v5e VPU has no bf16 -- cast only at the dot boundary)
            h = jnp.dot(wres_ref[2 * i], jnp.maximum(net, 0.0).astype(bf16),
                        preferred_element_type=f32) + bres_ref[2 * i]
            dx = jnp.dot(wres_ref[2 * i + 1], jnp.maximum(h, 0.0).astype(bf16),
                         preferred_element_type=f32) + bres_ref[2 * i + 1]
            net = net + dx

        # fc_out(relu(net)) as VPU multiply + sublane reduce (keeps the 1-row job off MXU).
        out_row = jnp.sum(wout * jnp.maximum(net, 0.0), axis=0, keepdims=True) + bout
        out_ref[j:j + 1, :] = out_row                                     # dense row store


# ------------------------- weight packing (feature-major, bf16 MXU operands) -------------------------
def pack_decoder_params(params):
    f32, bf16 = jnp.float32, jnp.bfloat16
    H = HIDDEN

    # Front matmul: rows = N_BLOCKS blocks of H, cols = 16 input features.
    wf = jnp.zeros((N_BLOCKS * H, IN_FEATS), f32)
    wf = wf.at[0:H, 0:DIM].set(params['wp'].T)                       # fc_p (block 0 only)
    for i in range(N_BLOCKS):
        wf = wf.at[i * H:(i + 1) * H, DIM:DIM + C_DIM].set(params['wc'][i].T)
    wf = wf.at[0:H, BIAS_ROW].set(params['bp'].reshape(-1) + params['bc'][0])
    for i in range(1, N_BLOCKS):
        wf = wf.at[i * H:(i + 1) * H, BIAS_ROW].set(params['bc'][i])
    wf = wf.astype(bf16)

    # Residual blocks: interleave fc_0 / fc_1 weights (bf16) and biases (f32).
    wres = jnp.stack([w for i in range(N_BLOCKS)
                      for w in (params['w0'][i].T, params['w1'][i].T)]).astype(bf16)
    bres = jnp.stack([b for i in range(N_BLOCKS)
                      for b in (params['b0'][i][:, None], params['b1'][i][:, None])]
                     ).astype(f32)

    wout = params['wout'].astype(f32)                                # (H, 1)
    bout = params['bout'].astype(f32)                                # (1, 1)
    return wf, wres, bres, wout, bout


# ------------------------- Pallas wrapper -------------------------
def decoder_mlp_pallas(x_in, packed, *, max_tile=TILE):
    """x_in: (IN_FEATS, N) feature-major bf16 input -> (N,) f32 decoder output."""
    wf, wres, bres, wout, bout = packed
    n = x_in.shape[1]

    # Tile choice: multiple of NSUB*128; shrink for small N (no forced 2-tile padding on
    # 1-TC chips), target >=4 grid steps for large N (v7x megacore + pipelining).
    lane_quantum = NSUB * 128
    tile = min(max_tile, _round_up(max(pl.cdiv(n, 4), 1), lane_quantum))
    num_tiles = pl.cdiv(n, tile)
    n_pad = num_tiles * tile
    sub = tile // NSUB

    x_in = jnp.pad(x_in, ((0, 0), (0, n_pad - n)))

    weight_bytes = sum(int(a.size) * a.dtype.itemsize for a in (wf, wres, bres, wout, bout))
    cost = pl.CostEstimate(
        flops=2 * n_pad * (N_BLOCKS * HIDDEN * IN_FEATS
                           + 2 * N_BLOCKS * HIDDEN * HIDDEN + HIDDEN),
        transcendentals=0,
        bytes_accessed=int(x_in.size) * x_in.dtype.itemsize + n_pad * 4 + weight_bytes)

    out = pl.pallas_call(
        _decoder_kernel,
        out_shape=jax.ShapeDtypeStruct((NSUB, num_tiles * sub), jnp.float32),
        grid_spec=pltpu.PrefetchScalarGridSpec(
            num_scalar_prefetch=0,
            grid=(num_tiles,),
            in_specs=[
                pl.BlockSpec((IN_FEATS, tile), lambda i: (0, i)),
                pl.BlockSpec(wf.shape, lambda i: (0, 0)),
                pl.BlockSpec(wres.shape, lambda i: (0, 0, 0)),
                pl.BlockSpec(bres.shape, lambda i: (0, 0, 0)),
                pl.BlockSpec(wout.shape, lambda i: (0, 0)),
                pl.BlockSpec(bout.shape, lambda i: (0, 0)),
            ],
            out_specs=pl.BlockSpec((NSUB, sub), lambda i: (0, i)),
        ),
        compiler_params=pltpu.CompilerParams(dimension_semantics=("parallel",)),
        cost_estimate=cost,
    )(x_in, wf, wres, bres, wout, bout)

    # Row j of grid step i holds points [i*tile + j*sub, i*tile + (j+1)*sub).
    out = out.reshape(NSUB, num_tiles, sub).transpose(1, 0, 2).reshape(n_pad)
    return out[:n]


# ------------------------- JAX glue: coordinate normalization + grid_sample -------------------------
def normalize_coordinate(p, padding=0.1, plane='xz'):
    if plane == 'xz':
        xy = p[:, :, jnp.array([0, 2])]
    elif plane == 'xy':
        xy = p[:, :, jnp.array([0, 1])]
    else:
        xy = p[:, :, jnp.array([1, 2])]
    xy_new = xy / (1 + padding + 1e-5) + 0.5
    xy_new = jnp.where(xy_new >= 1, 1 - 1e-5, xy_new)
    xy_new = jnp.where(xy_new < 0, 0.0, xy_new)
    return xy_new


def grid_sample_bilinear_2d(feat, coords):
    """F.grid_sample(feat, coords[:, :, None], mode='bilinear', padding_mode='border',
    align_corners=True).squeeze(-1) equivalent.

    feat:   (B, C, H, W)  NCHW
    coords: (B, T, 2)     (x, y) in [-1, 1]  (x indexes W, y indexes H)
    returns (B, C, T)
    """
    B, C, H, W = feat.shape
    x = (coords[..., 0] + 1.0) * 0.5 * (W - 1)
    y = (coords[..., 1] + 1.0) * 0.5 * (H - 1)
    x0 = jnp.floor(x)
    y0 = jnp.floor(y)
    wx1 = x - x0
    wy1 = y - y0
    wx0 = 1.0 - wx1
    wy0 = 1.0 - wy1
    x0c = jnp.clip(x0, 0, W - 1).astype(jnp.int32)
    x1c = jnp.clip(x0 + 1, 0, W - 1).astype(jnp.int32)
    y0c = jnp.clip(y0, 0, H - 1).astype(jnp.int32)
    y1c = jnp.clip(y0 + 1, 0, H - 1).astype(jnp.int32)

    feat_flat = feat.reshape(B, C, H * W)

    def gather(yi, xi):
        idx = yi * W + xi                                            # (B, T)
        return jnp.take_along_axis(feat_flat, idx[:, None, :], axis=2)  # (B, C, T)

    out = (gather(y0c, x0c) * (wy0 * wx0)[:, None, :]
           + gather(y0c, x1c) * (wy0 * wx1)[:, None, :]
           + gather(y1c, x0c) * (wy1 * wx0)[:, None, :]
           + gather(y1c, x1c) * (wy1 * wx1)[:, None, :])
    return out


def sample_plane_feature(p, c, plane):
    xy = normalize_coordinate(p, padding=PADDING, plane=plane)       # (B, T, 2) in [0, 1)
    vgrid = 2.0 * xy - 1.0
    return grid_sample_bilinear_2d(c, vgrid)                         # (B, C, T)


# ------------------------- full LocalDecoder forward -------------------------
def local_decoder_forward(p, c_plane, params):
    B, T, _ = p.shape
    c = jnp.zeros((B, C_DIM, T), jnp.float32)
    for plane in ('xz', 'xy', 'yz'):
        if plane in c_plane:
            c = c + sample_plane_feature(p, c_plane[plane], plane)

    n = B * T
    # Feature-major inputs: points/features on the lane axis; bf16 slab halves input DMA.
    p_fm = p.astype(jnp.float32).reshape(n, DIM).T                   # (3, N)
    c_fm = jnp.transpose(c, (1, 0, 2)).reshape(C_DIM, n)             # (8, N)
    x_in = jnp.concatenate(
        [p_fm, c_fm,
         jnp.ones((1, n), jnp.float32),                              # bias row
         jnp.zeros((IN_FEATS - DIM - C_DIM - 1, n), jnp.float32)],   # layout padding rows
        axis=0).astype(jnp.bfloat16)                                 # (16, N) bf16

    packed = pack_decoder_params(params)
    out = decoder_mlp_pallas(x_in, packed)                           # (N,)
    return out.reshape(B, T)                                         # squeeze(-1)


# ------------------------- pure-JAX reference for verification -------------------------
def local_decoder_forward_ref(p, c_plane, params):
    hp = jax.lax.Precision.HIGHEST
    c = jnp.zeros((p.shape[0], C_DIM, p.shape[1]), jnp.float32)
    for plane in ('xz', 'xy', 'yz'):
        if plane in c_plane:
            c = c + sample_plane_feature(p, c_plane[plane], plane)
    c = jnp.transpose(c, (0, 2, 1))
    net = jnp.dot(p, params['wp'], precision=hp) + params['bp']
    for i in range(N_BLOCKS):
        net = net + jnp.dot(c, params['wc'][i], precision=hp) + params['bc'][i]
        h = jnp.dot(jnp.maximum(net, 0.0), params['w0'][i], precision=hp) + params['b0'][i]
        dx = jnp.dot(jnp.maximum(h, 0.0), params['w1'][i], precision=hp) + params['b1'][i]
        net = net + dx
    out = jnp.dot(jnp.maximum(net, 0.0), params['wout'], precision=hp) + params['bout']
    return out[..., 0]


# ------------------------- deterministic parameter init -------------------------
def init_params(key):
    ks = jax.random.split(key, 10)
    s = 0.1
    return {
        'wp':   s * jax.random.normal(ks[0], (DIM, HIDDEN), jnp.float32),
        'bp':   s * jax.random.normal(ks[1], (1, HIDDEN), jnp.float32),
        'wc':   s * jax.random.normal(ks[2], (N_BLOCKS, C_DIM, HIDDEN), jnp.float32),
        'bc':   s * jax.random.normal(ks[3], (N_BLOCKS, HIDDEN), jnp.float32),
        'w0':   s * jax.random.normal(ks[4], (N_BLOCKS, HIDDEN, HIDDEN), jnp.float32),
        'b0':   s * jax.random.normal(ks[5], (N_BLOCKS, HIDDEN), jnp.float32),
        'w1':   s * jax.random.normal(ks[6], (N_BLOCKS, HIDDEN, HIDDEN), jnp.float32),
        'b1':   s * jax.random.normal(ks[7], (N_BLOCKS, HIDDEN), jnp.float32),
        'wout': s * jax.random.normal(ks[8], (HIDDEN, 1), jnp.float32),
        'bout': s * jax.random.normal(ks[9], (1, 1), jnp.float32),
    }


if __name__ == "__main__":
    key = jax.random.PRNGKey(0)
    kp, kxz, kxy, kyz, kw = jax.random.split(key, 5)

    B, T, R = 2, 64, 16
    # query points roughly in the [-0.55, 0.55] unit cube (ONet convention)
    p = jax.random.uniform(kp, (B, T, DIM), jnp.float32, minval=-0.55, maxval=0.55)
    c_plane = {
        'xz': jax.random.normal(kxz, (B, C_DIM, R, R), jnp.float32),
        'xy': jax.random.normal(kxy, (B, C_DIM, R, R), jnp.float32),
        'yz': jax.random.normal(kyz, (B, C_DIM, R, R), jnp.float32),
    }
    params = init_params(kw)

    fwd = jax.jit(local_decoder_forward)
    out = jax.block_until_ready(fwd(p, c_plane, params))
    ref = jax.block_until_ready(local_decoder_forward_ref(p, c_plane, params))

    assert out.shape == (B, T)
    # bf16 MXU operands vs HIGHEST-precision f32 reference -> loosened tolerance.
    np.testing.assert_allclose(np.asarray(out), np.asarray(ref), rtol=2e-2, atol=1e-2)
    print("KERNEL_OK")
</pallas_src>

<mosaic_0001>
module attributes {stable_mosaic.version = 11 : i64} {
  func.func @_decoder_kernel(%arg0: i32, %arg1: memref<16x1024xbf16, #tpu.memory_space<vmem>>, %arg2: memref<96x16xbf16, #tpu.memory_space<vmem>>, %arg3: memref<6x32x32xbf16, #tpu.memory_space<vmem>>, %arg4: memref<6x32x1xf32, #tpu.memory_space<vmem>>, %arg5: memref<32x1xf32, #tpu.memory_space<vmem>>, %arg6: memref<1x1xf32, #tpu.memory_space<vmem>>, %arg7: memref<8x128xf32, #tpu.memory_space<vmem>>) attributes {dimension_semantics = [#tpu.dimension_semantics<parallel>], iteration_bounds = array<i64: 1>, scalar_prefetch = 0 : i64, scratch_operands = 0 : i64, tpu.core_type = #tpu.core_type<tc>, window_params = [{transform_indices = @transform_0, window_bounds = array<i64: 16, 1024>}, {pipeline_mode = #tpu.pipeline_mode<synchronous>, transform_indices = @transform_1, window_bounds = array<i64: 96, 16>}, {pipeline_mode = #tpu.pipeline_mode<synchronous>, transform_indices = @transform_2, window_bounds = array<i64: 6, 32, 32>}, {pipeline_mode = #tpu.pipeline_mode<synchronous>, transform_indices = @transform_3, window_bounds = array<i64: 6, 32, 1>}, {pipeline_mode = #tpu.pipeline_mode<synchronous>, transform_indices = @transform_4, window_bounds = array<i64: 32, 1>}, {pipeline_mode = #tpu.pipeline_mode<synchronous>, transform_indices = @transform_5, window_bounds = array<i64: 1, 1>}, {transform_indices = @transform_6, window_bounds = array<i64: 8, 128>}]} {
    %c0 = arith.constant 0 : index
    %c0_0 = arith.constant 0 : index
    %0 = vector.load %arg2[%c0, %c0_0] : memref<96x16xbf16, #tpu.memory_space<vmem>>, vector<96x16xbf16>
    %c0_1 = arith.constant 0 : index
    %c0_2 = arith.constant 0 : index
    %1 = vector.load %arg5[%c0_1, %c0_2] : memref<32x1xf32, #tpu.memory_space<vmem>>, vector<32x1xf32>
    %c0_3 = arith.constant 0 : index
    %c0_4 = arith.constant 0 : index
    %2 = vector.load %arg6[%c0_3, %c0_4] : memref<1x1xf32, #tpu.memory_space<vmem>>, vector<1x1xf32>
    %c0_5 = arith.constant 0 : index
    %c0_6 = arith.constant 0 : index
    %3 = vector.load %arg1[%c0_5, %c0_6] : memref<16x1024xbf16, #tpu.memory_space<vmem>>, vector<16x128xbf16>
    %cst = arith.constant dense<0.000000e+00> : vector<96x128xf32>
    %4 = tpu.matmul %0, %3, %cst {dimension_numbers = #tpu.dot_dimension_numbers<[1], [0], [0], [1], [0, 0, 1, 1], [], []>} : vector<96x16xbf16>, vector<16x128xbf16>, vector<96x128xf32> -> vector<96x128xf32>
    %5 = vector.extract_strided_slice %4 {offsets = [0, 0], sizes = [32, 128], strides = [1, 1]} : vector<96x128xf32> to vector<32x128xf32>
    %c0_7 = arith.constant 0 : index
    %c0_8 = arith.constant 0 : index
    %c0_9 = arith.constant 0 : index
    %6 = vector.load %arg3[%c0_7, %c0_8, %c0_9] : memref<6x32x32xbf16, #tpu.memory_space<vmem>>, vector<1x32x32xbf16>
    %7 = vector.shape_cast %6 : vector<1x32x32xbf16> to vector<32x32xbf16>
    %cst_10 = arith.constant 0.000000e+00 : f32
    %8 = vector.broadcast %cst_10 : f32 to vector<32x128xf32>
    %9 = arith.maximumf %5, %8 : vector<32x128xf32>
    %10 = arith.truncf %9 : vector<32x128xf32> to vector<32x128xbf16>
    %cst_11 = arith.constant dense<0.000000e+00> : vector<32x128xf32>
    %11 = tpu.matmul %7, %10, %cst_11 {dimension_numbers = #tpu.dot_dimension_numbers<[1], [0], [0], [1], [0, 0, 1, 1], [], []>} : vector<32x32xbf16>, vector<32x128xbf16>, vector<32x128xf32> -> vector<32x128xf32>
    %c0_12 = arith.constant 0 : index
    %c0_13 = arith.constant 0 : index
    %c0_14 = arith.constant 0 : index
    %12 = vector.load %arg4[%c0_12, %c0_13, %c0_14] : memref<6x32x1xf32, #tpu.memory_space<vmem>>, vector<1x32x1xf32>
    %13 = vector.shape_cast %12 : vector<1x32x1xf32> to vector<32x1xf32>
    %14 = vector.broadcast %13 : vector<32x1xf32> to vector<32x128xf32>
    %15 = arith.addf %11, %14 : vector<32x128xf32>
    %c1 = arith.constant 1 : index
    %c0_15 = arith.constant 0 : index
    %c0_16 = arith.constant 0 : index
    %16 = vector.load %arg3[%c1, %c0_15, %c0_16] : memref<6x32x32xbf16, #tpu.memory_space<vmem>>, vector<1x32x32xbf16>
    %17 = vector.shape_cast %16 : vector<1x32x32xbf16> to vector<32x32xbf16>
    %cst_17 = arith.constant 0.000000e+00 : f32
    %18 = vector.broadcast %cst_17 : f32 to vector<32x128xf32>
    %19 = arith.maximumf %15, %18 : vector<32x128xf32>
    %20 = arith.truncf %19 : vector<32x128xf32> to vector<32x128xbf16>
    %cst_18 = arith.constant dense<0.000000e+00> : vector<32x128xf32>
    %21 = tpu.matmul %17, %20, %cst_18 {dimension_numbers = #tpu.dot_dimension_numbers<[1], [0], [0], [1], [0, 0, 1, 1], [], []>} : vector<32x32xbf16>, vector<32x128xbf16>, vector<32x128xf32> -> vector<32x128xf32>
    %c1_19 = arith.constant 1 : index
    %c0_20 = arith.constant 0 : index
    %c0_21 = arith.constant 0 : index
    %22 = vector.load %arg4[%c1_19, %c0_20, %c0_21] : memref<6x32x1xf32, #tpu.memory_space<vmem>>, vector<1x32x1xf32>
    %23 = vector.shape_cast %22 : vector<1x32x1xf32> to vector<32x1xf32>
    %24 = vector.broadcast %23 : vector<32x1xf32> to vector<32x128xf32>
    %25 = arith.addf %21, %24 : vector<32x128xf32>
    %26 = arith.addf %5, %25 : vector<32x128xf32>
    %27 = vector.extract_strided_slice %4 {offsets = [32, 0], sizes = [32, 128], strides = [1, 1]} : vector<96x128xf32> to vector<32x128xf32>
    %28 = arith.addf %26, %27 : vector<32x128xf32>
    %c2 = arith.constant 2 : index
    %c0_22 = arith.constant 0 : index
    %c0_23 = arith.constant 0 : index
    %29 = vector.load %arg3[%c2, %c0_22, %c0_23] : memref<6x32x32xbf16, #tpu.memory_space<vmem>>, vector<1x32x32xbf16>
    %30 = vector.shape_cast %29 : vector<1x32x32xbf16> to vector<32x32xbf16>
    %cst_24 = arith.constant 0.000000e+00 : f32
    %31 = vector.broadcast %cst_24 : f32 to vector<32x128xf32>
    %32 = arith.maximumf %28, %31 : vector<32x128xf32>
    %33 = arith.truncf %32 : vector<32x128xf32> to vector<32x128xbf16>
    %cst_25 = arith.constant dense<0.000000e+00> : vector<32x128xf32>
    %34 = tpu.matmul %30, %33, %cst_25 {dimension_numbers = #tpu.dot_dimension_numbers<[1], [0], [0], [1], [0, 0, 1, 1], [], []>} : vector<32x32xbf16>, vector<32x128xbf16>, vector<32x128xf32> -> vector<32x128xf32>
    %c2_26 = arith.constant 2 : index
    %c0_27 = arith.constant 0 : index
    %c0_28 = arith.constant 0 : index
    %35 = vector.load %arg4[%c2_26, %c0_27, %c0_28] : memref<6x32x1xf32, #tpu.memory_space<vmem>>, vector<1x32x1xf32>
    %36 = vector.shape_cast %35 : vector<1x32x1xf32> to vector<32x1xf32>
    %37 = vector.broadcast %36 : vector<32x1xf32> to vector<32x128xf32>
    %38 = arith.addf %34, %37 : vector<32x128xf32>
    %c3 = arith.constant 3 : index
    %c0_29 = arith.constant 0 : index
    %c0_30 = arith.constant 0 : index
    %39 = vector.load %arg3[%c3, %c0_29, %c0_30] : memref<6x32x32xbf16, #tpu.memory_space<vmem>>, vector<1x32x32xbf16>
    %40 = vector.shape_cast %39 : vector<1x32x32xbf16> to vector<32x32xbf16>
    %cst_31 = arith.constant 0.000000e+00 : f32
    %41 = vector.broadcast %cst_31 : f32 to vector<32x128xf32>
    %42 = arith.maximumf %38, %41 : vector<32x128xf32>
    %43 = arith.truncf %42 : vector<32x128xf32> to vector<32x128xbf16>
    %cst_32 = arith.constant dense<0.000000e+00> : vector<32x128xf32>
    %44 = tpu.matmul %40, %43, %cst_32 {dimension_numbers = #tpu.dot_dimension_numbers<[1], [0], [0], [1], [0, 0, 1, 1], [], []>} : vector<32x32xbf16>, vector<32x128xbf16>, vector<32x128xf32> -> vector<32x128xf32>
    %c3_33 = arith.constant 3 : index
    %c0_34 = arith.constant 0 : index
    %c0_35 = arith.constant 0 : index
    %45 = vector.load %arg4[%c3_33, %c0_34, %c0_35] : memref<6x32x1xf32, #tpu.memory_space<vmem>>, vector<1x32x1xf32>
    %46 = vector.shape_cast %45 : vector<1x32x1xf32> to vector<32x1xf32>
    %47 = vector.broadcast %46 : vector<32x1xf32> to vector<32x128xf32>
    %48 = arith.addf %44, %47 : vector<32x128xf32>
    %49 = arith.addf %28, %48 : vector<32x128xf32>
    %50 = vector.extract_strided_slice %4 {offsets = [64, 0], sizes = [32, 128], strides = [1, 1]} : vector<96x128xf32> to vector<32x128xf32>
    %51 = arith.addf %49, %50 : vector<32x128xf32>
    %c4 = arith.constant 4 : index
    %c0_36 = arith.constant 0 : index
    %c0_37 = arith.constant 0 : index
    %52 = vector.load %arg3[%c4, %c0_36, %c0_37] : memref<6x32x32xbf16, #tpu.memory_space<vmem>>, vector<1x32x32xbf16>
    %53 = vector.shape_cast %52 : vector<1x32x32xbf16> to vector<32x32xbf16>
    %cst_38 = arith.constant 0.000000e+00 : f32
    %54 = vector.broadcast %cst_38 : f32 to vector<32x128xf32>
    %55 = arith.maximumf %51, %54 : vector<32x128xf32>
    %56 = arith.truncf %55 : vector<32x128xf32> to vector<32x128xbf16>
    %cst_39 = arith.constant dense<0.000000e+00> : vector<32x128xf32>
    %57 = tpu.matmul %53, %56, %cst_39 {dimension_numbers = #tpu.dot_dimension_numbers<[1], [0], [0], [1], [0, 0, 1, 1], [], []>} : vector<32x32xbf16>, vector<32x128xbf16>, vector<32x128xf32> -> vector<32x128xf32>
    %c4_40 = arith.constant 4 : index
    %c0_41 = arith.constant 0 : index
    %c0_42 = arith.constant 0 : index
    %58 = vector.load %arg4[%c4_40, %c0_41, %c0_42] : memref<6x32x1xf32, #tpu.memory_space<vmem>>, vector<1x32x1xf32>
    %59 = vector.shape_cast %58 : vector<1x32x1xf32> to vector<32x1xf32>
    %60 = vector.broadcast %59 : vector<32x1xf32> to vector<32x128xf32>
    %61 = arith.addf %57, %60 : vector<32x128xf32>
    %c5 = arith.constant 5 : index
    %c0_43 = arith.constant 0 : index
    %c0_44 = arith.constant 0 : index
    %62 = vector.load %arg3[%c5, %c0_43, %c0_44] : memref<6x32x32xbf16, #tpu.memory_space<vmem>>, vector<1x32x32xbf16>
    %63 = vector.shape_cast %62 : vector<1x32x32xbf16> to vector<32x32xbf16>
    %cst_45 = arith.constant 0.000000e+00 : f32
    %64 = vector.broadcast %cst_45 : f32 to vector<32x128xf32>
    %65 = arith.maximumf %61, %64 : vector<32x128xf32>
    %66 = arith.truncf %65 : vector<32x128xf32> to vector<32x128xbf16>
    %cst_46 = arith.constant dense<0.000000e+00> : vector<32x128xf32>
    %67 = tpu.matmul %63, %66, %cst_46 {dimension_numbers = #tpu.dot_dimension_numbers<[1], [0], [0], [1], [0, 0, 1, 1], [], []>} : vector<32x32xbf16>, vector<32x128xbf16>, vector<32x128xf32> -> vector<32x128xf32>
    %c5_47 = arith.constant 5 : index
    %c0_48 = arith.constant 0 : index
    %c0_49 = arith.constant 0 : index
    %68 = vector.load %arg4[%c5_47, %c0_48, %c0_49] : memref<6x32x1xf32, #tpu.memory_space<vmem>>, vector<1x32x1xf32>
    %69 = vector.shape_cast %68 : vector<1x32x1xf32> to vector<32x1xf32>
    %70 = vector.broadcast %69 : vector<32x1xf32> to vector<32x128xf32>
    %71 = arith.addf %67, %70 : vector<32x128xf32>
    %72 = arith.addf %51, %71 : vector<32x128xf32>
    %cst_50 = arith.constant 0.000000e+00 : f32
    %73 = vector.broadcast %cst_50 : f32 to vector<32x128xf32>
    %74 = arith.maximumf %72, %73 : vector<32x128xf32>
    %75 = vector.broadcast %1 : vector<32x1xf32> to vector<32x128xf32>
    %76 = arith.mulf %75, %74 : vector<32x128xf32>
    %cst_51 = arith.constant dense<0.000000e+00> : vector<128xf32>
    %77 = vector.multi_reduction <add>, %76, %cst_51 [0] : vector<32x128xf32> to vector<128xf32>
    %78 = vector.shape_cast %77 : vector<128xf32> to vector<1x128xf32>
    %79 = vector.broadcast %2 : vector<1x1xf32> to vector<1x128xf32>
    %80 = arith.addf %78, %79 : vector<1x128xf32>
    %c0_52 = arith.constant 0 : index
    %c0_53 = arith.constant 0 : index
    %81 = vector.load %arg7[%c0_52, %c0_53] : memref<8x128xf32, #tpu.memory_space<vmem>>, vector<1x128xf32>
    tpu.vector_store %arg7[%c0_52, %c0_53], %80 {strides = array<i32>} : memref<8x128xf32, #tpu.memory_space<vmem>>, vector<1x128xf32>,
    %c0_54 = arith.constant 0 : index
    %c128 = arith.constant 128 : index
    %82 = vector.load %arg1[%c0_54, %c128] : memref<16x1024xbf16, #tpu.memory_space<vmem>>, vector<16x128xbf16>
    %cst_55 = arith.constant dense<0.000000e+00> : vector<96x128xf32>
    %83 = tpu.matmul %0, %82, %cst_55 {dimension_numbers = #tpu.dot_dimension_numbers<[1], [0], [0], [1], [0, 0, 1, 1], [], []>} : vector<96x16xbf16>, vector<16x128xbf16>, vector<96x128xf32> -> vector<96x128xf32>
    %84 = vector.extract_strided_slice %83 {offsets = [0, 0], sizes = [32, 128], strides = [1, 1]} : vector<96x128xf32> to vector<32x128xf32>
    %c0_56 = arith.constant 0 : index
    %c0_57 = arith.constant 0 : index
    %c0_58 = arith.constant 0 : index
    %85 = vector.load %arg3[%c0_56, %c0_57, %c0_58] : memref<6x32x32xbf16, #tpu.memory_space<vmem>>, vector<1x32x32xbf16>
    %86 = vector.shape_cast %85 : vector<1x32x32xbf16> to vector<32x32xbf16>
    %cst_59 = arith.constant 0.000000e+00 : f32
    %87 = vector.broadcast %cst_59 : f32 to vector<32x128xf32>
    %88 = arith.maximumf %84, %87 : vector<32x128xf32>
    %89 = arith.truncf %88 : vector<32x128xf32> to vector<32x128xbf16>
    %cst_60 = arith.constant dense<0.000000e+00> : vector<32x128xf32>
    %90 = tpu.matmul %86, %89, %cst_60 {dimension_numbers = #tpu.dot_dimension_numbers<[1], [0], [0], [1], [0, 0, 1, 1], [], []>} : vector<32x32xbf16>, vector<32x128xbf16>, vector<32x128xf32> -> vector<32x128xf32>
    %c0_61 = arith.constant 0 : index
    %c0_62 = arith.constant 0 : index
    %c0_63 = arith.constant 0 : index
    %91 = vector.load %arg4[%c0_61, %c0_62, %c0_63] : memref<6x32x1xf32, #tpu.memory_space<vmem>>, vector<1x32x1xf32>
    %92 = vector.shape_cast %91 : vector<1x32x1xf32> to vector<32x1xf32>
    %93 = vector.broadcast %92 : vector<32x1xf32> to vector<32x128xf32>
    %94 = arith.addf %90, %93 : vector<32x128xf32>
    %c1_64 = arith.constant 1 : index
    %c0_65 = arith.constant 0 : index
    %c0_66 = arith.constant 0 : index
    %95 = vector.load %arg3[%c1_64, %c0_65, %c0_66] : memref<6x32x32xbf16, #tpu.memory_space<vmem>>, vector<1x32x32xbf16>
    %96 = vector.shape_cast %95 : vector<1x32x32xbf16> to vector<32x32xbf16>
    %cst_67 = arith.constant 0.000000e+00 : f32
    %97 = vector.broadcast %cst_67 : f32 to vector<32x128xf32>
    %98 = arith.maximumf %94, %97 : vector<32x128xf32>
    %99 = arith.truncf %98 : vector<32x128xf32> to vector<32x128xbf16>
    %cst_68 = arith.constant dense<0.000000e+00> : vector<32x128xf32>
    %100 = tpu.matmul %96, %99, %cst_68 {dimension_numbers = #tpu.dot_dimension_numbers<[1], [0], [0], [1], [0, 0, 1, 1], [], []>} : vector<32x32xbf16>, vector<32x128xbf16>, vector<32x128xf32> -> vector<32x128xf32>
    %c1_69 = arith.constant 1 : index
    %c0_70 = arith.constant 0 : index
    %c0_71 = arith.constant 0 : index
    %101 = vector.load %arg4[%c1_69, %c0_70, %c0_71] : memref<6x32x1xf32, #tpu.memory_space<vmem>>, vector<1x32x1xf32>
    %102 = vector.shape_cast %101 : vector<1x32x1xf32> to vector<32x1xf32>
    %103 = vector.broadcast %102 : vector<32x1xf32> to vector<32x128xf32>
    %104 = arith.addf %100, %103 : vector<32x128xf32>
    %105 = arith.addf %84, %104 : vector<32x128xf32>
    %106 = vector.extract_strided_slice %83 {offsets = [32, 0], sizes = [32, 128], strides = [1, 1]} : vector<96x128xf32> to vector<32x128xf32>
    %107 = arith.addf %105, %106 : vector<32x128xf32>
    %c2_72 = arith.constant 2 : index
    %c0_73 = arith.constant 0 : index
    %c0_74 = arith.constant 0 : index
    %108 = vector.load %arg3[%c2_72, %c0_73, %c0_74] : memref<6x32x32xbf16, #tpu.memory_space<vmem>>, vector<1x32x32xbf16>
    %109 = vector.shape_cast %108 : vector<1x32x32xbf16> to vector<32x32xbf16>
    %cst_75 = arith.constant 0.000000e+00 : f32
    %110 = vector.broadcast %cst_75 : f32 to vector<32x128xf32>
    %111 = arith.maximumf %107, %110 : vector<32x128xf32>
    %112 = arith.truncf %111 : vector<32x128xf32> to vector<32x128xbf16>
    %cst_76 = arith.constant dense<0.000000e+00> : vector<32x128xf32>
    %113 = tpu.matmul %109, %112, %cst_76 {dimension_numbers = #tpu.dot_dimension_numbers<[1], [0], [0], [1], [0, 0, 1, 1], [], []>} : vector<32x32xbf16>, vector<32x128xbf16>, vector<32x128xf32> -> vector<32x128xf32>
    %c2_77 = arith.constant 2 : index
    %c0_78 = arith.constant 0 : index
    %c0_79 = arith.constant 0 : index
    %114 = vector.load %arg4[%c2_77, %c0_78, %c0_79] : memref<6x32x1xf32, #tpu.memory_space<vmem>>, vector<1x32x1xf32>
    %115 = vector.shape_cast %114 : vector<1x32x1xf32> to vector<32x1xf32>
    %116 = vector.broadcast %115 : vector<32x1xf32> to vector<32x128xf32>
    %117 = arith.addf %113, %116 : vector<32x128xf32>
    %c3_80 = arith.constant 3 : index
    %c0_81 = arith.constant 0 : index
    %c0_82 = arith.constant 0 : index
    %118 = vector.load %arg3[%c3_80, %c0_81, %c0_82] : memref<6x32x32xbf16, #tpu.memory_space<vmem>>, vector<1x32x32xbf16>
    %119 = vector.shape_cast %118 : vector<1x32x32xbf16> to vector<32x32xbf16>
    %cst_83 = arith.constant 0.000000e+00 : f32
    %120 = vector.broadcast %cst_83 : f32 to vector<32x128xf32>
    %121 = arith.maximumf %117, %120 : vector<32x128xf32>
    %122 = arith.truncf %121 : vector<32x128xf32> to vector<32x128xbf16>
    %cst_84 = arith.constant dense<0.000000e+00> : vector<32x128xf32>
    %123 = tpu.matmul %119, %122, %cst_84 {dimension_numbers = #tpu.dot_dimension_numbers<[1], [0], [0], [1], [0, 0, 1, 1], [], []>} : vector<32x32xbf16>, vector<32x128xbf16>, vector<32x128xf32> -> vector<32x128xf32>
    %c3_85 = arith.constant 3 : index
    %c0_86 = arith.constant 0 : index
    %c0_87 = arith.constant 0 : index
    %124 = vector.load %arg4[%c3_85, %c0_86, %c0_87] : memref<6x32x1xf32, #tpu.memory_space<vmem>>, vector<1x32x1xf32>
    %125 = vector.shape_cast %124 : vector<1x32x1xf32> to vector<32x1xf32>
    %126 = vector.broadcast %125 : vector<32x1xf32> to vector<32x128xf32>
    %127 = arith.addf %123, %126 : vector<32x128xf32>
    %128 = arith.addf %107, %127 : vector<32x128xf32>
    %129 = vector.extract_strided_slice %83 {offsets = [64, 0], sizes = [32, 128], strides = [1, 1]} : vector<96x128xf32> to vector<32x128xf32>
    %130 = arith.addf %128, %129 : vector<32x128xf32>
    %c4_88 = arith.constant 4 : index
    %c0_89 = arith.constant 0 : index
    %c0_90 = arith.constant 0 : index
    %131 = vector.load %arg3[%c4_88, %c0_89, %c0_90] : memref<6x32x32xbf16, #tpu.memory_space<vmem>>, vector<1x32x32xbf16>
    %132 = vector.shape_cast %131 : vector<1x32x32xbf16> to vector<32x32xbf16>
    %cst_91 = arith.constant 0.000000e+00 : f32
    %133 = vector.broadcast %cst_91 : f32 to vector<32x128xf32>
    %134 = arith.maximumf %130, %133 : vector<32x128xf32>
    %135 = arith.truncf %134 : vector<32x128xf32> to vector<32x128xbf16>
    %cst_92 = arith.constant dense<0.000000e+00> : vector<32x128xf32>
    %136 = tpu.matmul %132, %135, %cst_92 {dimension_numbers = #tpu.dot_dimension_numbers<[1], [0], [0], [1], [0, 0, 1, 1], [], []>} : vector<32x32xbf16>, vector<32x128xbf16>, vector<32x128xf32> -> vector<32x128xf32>
    %c4_93 = arith.constant 4 : index
    %c0_94 = arith.constant 0 : index
    %c0_95 = arith.constant 0 : index
    %137 = vector.load %arg4[%c4_93, %c0_94, %c0_95] : memref<6x32x1xf32, #tpu.memory_space<vmem>>, vector<1x32x1xf32>
    %138 = vector.shape_cast %137 : vector<1x32x1xf32> to vector<32x1xf32>
    %139 = vector.broadcast %138 : vector<32x1xf32> to vector<32x128xf32>
    %140 = arith.addf %136, %139 : vector<32x128xf32>
    %c5_96 = arith.constant 5 : index
    %c0_97 = arith.constant 0 : index
    %c0_98 = arith.constant 0 : index
    %141 = vector.load %arg3[%c5_96, %c0_97, %c0_98] : memref<6x32x32xbf16, #tpu.memory_space<vmem>>, vector<1x32x32xbf16>
    %142 = vector.shape_cast %141 : vector<1x32x32xbf16> to vector<32x32xbf16>
    %cst_99 = arith.constant 0.000000e+00 : f32
    %143 = vector.broadcast %cst_99 : f32 to vector<32x128xf32>
    %144 = arith.maximumf %140, %143 : vector<32x128xf32>
    %145 = arith.truncf %144 : vector<32x128xf32> to vector<32x128xbf16>
    %cst_100 = arith.constant dense<0.000000e+00> : vector<32x128xf32>
    %146 = tpu.matmul %142, %145, %cst_100 {dimension_numbers = #tpu.dot_dimension_numbers<[1], [0], [0], [1], [0, 0, 1, 1], [], []>} : vector<32x32xbf16>, vector<32x128xbf16>, vector<32x128xf32> -> vector<32x128xf32>
    %c5_101 = arith.constant 5 : index
    %c0_102 = arith.constant 0 : index
    %c0_103 = arith.constant 0 : index
    %147 = vector.load %arg4[%c5_101, %c0_102, %c0_103] : memref<6x32x1xf32, #tpu.memory_space<vmem>>, vector<1x32x1xf32>
    %148 = vector.shape_cast %147 : vector<1x32x1xf32> to vector<32x1xf32>
    %149 = vector.broadcast %148 : vector<32x1xf32> to vector<32x128xf32>
    %150 = arith.addf %146, %149 : vector<32x128xf32>
    %151 = arith.addf %130, %150 : vector<32x128xf32>
    %cst_104 = arith.constant 0.000000e+00 : f32
    %152 = vector.broadcast %cst_104 : f32 to vector<32x128xf32>
    %153 = arith.maximumf %151, %152 : vector<32x128xf32>
    %154 = vector.broadcast %1 : vector<32x1xf32> to vector<32x128xf32>
    %155 = arith.mulf %154, %153 : vector<32x128xf32>
    %cst_105 = arith.constant dense<0.000000e+00> : vector<128xf32>
    %156 = vector.multi_reduction <add>, %155, %cst_105 [0] : vector<32x128xf32> to vector<128xf32>
    %157 = vector.shape_cast %156 : vector<128xf32> to vector<1x128xf32>
    %158 = vector.broadcast %2 : vector<1x1xf32> to vector<1x128xf32>
    %159 = arith.addf %157, %158 : vector<1x128xf32>
    %c1_106 = arith.constant 1 : index
    %c0_107 = arith.constant 0 : index
    %160 = vector.load %arg7[%c1_106, %c0_107] : memref<8x128xf32, #tpu.memory_space<vmem>>, vector<1x128xf32>
    tpu.vector_store %arg7[%c1_106, %c0_107], %159 {strides = array<i32>} : memref<8x128xf32, #tpu.memory_space<vmem>>, vector<1x128xf32>,
    %c0_108 = arith.constant 0 : index
    %c256 = arith.constant 256 : index
    %161 = vector.load %arg1[%c0_108, %c256] : memref<16x1024xbf16, #tpu.memory_space<vmem>>, vector<16x128xbf16>
    %cst_109 = arith.constant dense<0.000000e+00> : vector<96x128xf32>
    %162 = tpu.matmul %0, %161, %cst_109 {dimension_numbers = #tpu.dot_dimension_numbers<[1], [0], [0], [1], [0, 0, 1, 1], [], []>} : vector<96x16xbf16>, vector<16x128xbf16>, vector<96x128xf32> -> vector<96x128xf32>
    %163 = vector.extract_strided_slice %162 {offsets = [0, 0], sizes = [32, 128], strides = [1, 1]} : vector<96x128xf32> to vector<32x128xf32>
    %c0_110 = arith.constant 0 : index
    %c0_111 = arith.constant 0 : index
    %c0_112 = arith.constant 0 : index
    %164 = vector.load %arg3[%c0_110, %c0_111, %c0_112] : memref<6x32x32xbf16, #tpu.memory_space<vmem>>, vector<1x32x32xbf16>
    %165 = vector.shape_cast %164 : vector<1x32x32xbf16> to vector<32x32xbf16>
    %cst_113 = arith.constant 0.000000e+00 : f32
    %166 = vector.broadcast %cst_113 : f32 to vector<32x128xf32>
    %167 = arith.maximumf %163, %166 : vector<32x128xf32>
    %168 = arith.truncf %167 : vector<32x128xf32> to vector<32x128xbf16>
    %cst_114 = arith.constant dense<0.000000e+00> : vector<32x128xf32>
    %169 = tpu.matmul %165, %168, %cst_114 {dimension_numbers = #tpu.dot_dimension_numbers<[1], [0], [0], [1], [0, 0, 1, 1], [], []>} : vector<32x32xbf16>, vector<32x128xbf16>, vector<32x128xf32> -> vector<32x128xf32>
    %c0_115 = arith.constant 0 : index
    %c0_116 = arith.constant 0 : index
    %c0_117 = arith.constant 0 : index
    %170 = vector.load %arg4[%c0_115, %c0_116, %c0_117] : memref<6x32x1xf32, #tpu.memory_space<vmem>>, vector<1x32x1xf32>
    %171 = vector.shape_cast %170 : vector<1x32x1xf32> to vector<32x1xf32>
    %172 = vector.broadcast %171 : vector<32x1xf32> to vector<32x128xf32>
    %173 = arith.addf %169, %172 : vector<32x128xf32>
    %c1_118 = arith.constant 1 : index
    %c0_119 = arith.constant 0 : index
    %c0_120 = arith.constant 0 : index
    %174 = vector.load %arg3[%c1_118, %c0_119, %c0_120] : memref<6x32x32xbf16, #tpu.memory_space<vmem>>, vector<1x32x32xbf16>
    %175 = vector.shape_cast %174 : vector<1x32x32xbf16> to vector<32x32xbf16>
    %cst_121 = arith.constant 0.000000e+00 : f32
    %176 = vector.broadcast %cst_121 : f32 to vector<32x128xf32>
    %177 = arith.maximumf %173, %176 : vector<32x128xf32>
    %178 = arith.truncf %177 : vector<32x128xf32> to vector<32x128xbf16>
    %cst_122 = arith.constant dense<0.000000e+00> : vector<32x128xf32>
    %179 = tpu.matmul %175, %178, %cst_122 {dimension_numbers = #tpu.dot_dimension_numbers<[1], [0], [0], [1], [0, 0, 1, 1], [], []>} : vector<32x32xbf16>, vector<32x128xbf16>, vector<32x128xf32> -> vector<32x128xf32>
    %c1_123 = arith.constant 1 : index
    %c0_124 = arith.constant 0 : index
    %c0_125 = arith.constant 0 : index
    %180 = vector.load %arg4[%c1_123, %c0_124, %c0_125] : memref<6x32x1xf32, #tpu.memory_space<vmem>>, vector<1x32x1xf32>
    %181 = vector.shape_cast %180 : vector<1x32x1xf32> to vector<32x1xf32>
    %182 = vector.broadcast %181 : vector<32x1xf32> to vector<32x128xf32>
    %183 = arith.addf %179, %182 : vector<32x128xf32>
    %184 = arith.addf %163, %183 : vector<32x128xf32>
    %185 = vector.extract_strided_slice %162 {offsets = [32, 0], sizes = [32, 128], strides = [1, 1]} : vector<96x128xf32> to vector<32x128xf32>
    %186 = arith.addf %184, %185 : vector<32x128xf32>
    %c2_126 = arith.constant 2 : index
    %c0_127 = arith.constant 0 : index
    %c0_128 = arith.constant 0 : index
    %187 = vector.load %arg3[%c2_126, %c0_127, %c0_128] : memref<6x32x32xbf16, #tpu.memory_space<vmem>>, vector<1x32x32xbf16>
    %188 = vector.shape_cast %187 : vector<1x32x32xbf16> to vector<32x32xbf16>
    %cst_129 = arith.constant 0.000000e+00 : f32
    %189 = vector.broadcast %cst_129 : f32 to vector<32x128xf32>
    %190 = arith.maximumf %186, %189 : vector<32x128xf32>
    %191 = arith.truncf %190 : vector<32x128xf32> to vector<32x128xbf16>
    %cst_130 = arith.constant dense<0.000000e+00> : vector<32x128xf32>
    %192 = tpu.matmul %188, %191, %cst_130 {dimension_numbers = #tpu.dot_dimension_numbers<[1], [0], [0], [1], [0, 0, 1, 1], [], []>} : vector<32x32xbf16>, vector<32x128xbf16>, vector<32x128xf32> -> vector<32x128xf32>
    %c2_131 = arith.constant 2 : index
    %c0_132 = arith.constant 0 : index
    %c0_133 = arith.constant 0 : index
    %193 = vector.load %arg4[%c2_131, %c0_132, %c0_133] : memref<6x32x1xf32, #tpu.memory_space<vmem>>, vector<1x32x1xf32>
    %194 = vector.shape_cast %193 : vector<1x32x1xf32> to vector<32x1xf32>
    %195 = vector.broadcast %194 : vector<32x1xf32> to vector<32x128xf32>
    %196 = arith.addf %192, %195 : vector<32x128xf32>
    %c3_134 = arith.constant 3 : index
    %c0_135 = arith.constant 0 : index
    %c0_136 = arith.constant 0 : index
    %197 = vector.load %arg3[%c3_134, %c0_135, %c0_136] : memref<6x32x32xbf16, #tpu.memory_space<vmem>>, vector<1x32x32xbf16>
    %198 = vector.shape_cast %197 : vector<1x32x32xbf16> to vector<32x32xbf16>
    %cst_137 = arith.constant 0.000000e+00 : f32
    %199 = vector.broadcast %cst_137 : f32 to vector<32x128xf32>
    %200 = arith.maximumf %196, %199 : vector<32x128xf32>
    %201 = arith.truncf %200 : vector<32x128xf32> to vector<32x128xbf16>
    %cst_138 = arith.constant dense<0.000000e+00> : vector<32x128xf32>
    %202 = tpu.matmul %198, %201, %cst_138 {dimension_numbers = #tpu.dot_dimension_numbers<[1], [0], [0], [1], [0, 0, 1, 1], [], []>} : vector<32x32xbf16>, vector<32x128xbf16>, vector<32x128xf32> -> vector<32x128xf32>
    %c3_139 = arith.constant 3 : index
    %c0_140 = arith.constant 0 : index
    %c0_141 = arith.constant 0 : index
    %203 = vector.load %arg4[%c3_139, %c0_140, %c0_141] : memref<6x32x1xf32, #tpu.memory_space<vmem>>, vector<1x32x1xf32>
    %204 = vector.shape_cast %203 : vector<1x32x1xf32> to vector<32x1xf32>
    %205 = vector.broadcast %204 : vector<32x1xf32> to vector<32x128xf32>
    %206 = arith.addf %202, %205 : vector<32x128xf32>
    %207 = arith.addf %186, %206 : vector<32x128xf32>
    %208 = vector.extract_strided_slice %162 {offsets = [64, 0], sizes = [32, 128], strides = [1, 1]} : vector<96x128xf32> to vector<32x128xf32>
    %209 = arith.addf %207, %208 : vector<32x128xf32>
    %c4_142 = arith.constant 4 : index
    %c0_143 = arith.constant 0 : index
    %c0_144 = arith.constant 0 : index
    %210 = vector.load %arg3[%c4_142, %c0_143, %c0_144] : memref<6x32x32xbf16, #tpu.memory_space<vmem>>, vector<1x32x32xbf16>
    %211 = vector.shape_cast %210 : vector<1x32x32xbf16> to vector<32x32xbf16>
    %cst_145 = arith.constant 0.000000e+00 : f32
    %212 = vector.broadcast %cst_145 : f32 to vector<32x128xf32>
    %213 = arith.maximumf %209, %212 : vector<32x128xf32>
    %214 = arith.truncf %213 : vector<32x128xf32> to vector<32x128xbf16>
    %cst_146 = arith.constant dense<0.000000e+00> : vector<32x128xf32>
    %215 = tpu.matmul %211, %214, %cst_146 {dimension_numbers = #tpu.dot_dimension_numbers<[1], [0], [0], [1], [0, 0, 1, 1], [], []>} : vector<32x32xbf16>, vector<32x128xbf16>, vector<32x128xf32> -> vector<32x128xf32>
    %c4_147 = arith.constant 4 : index
    %c0_148 = arith.constant 0 : index
    %c0_149 = arith.constant 0 : index
    %216 = vector.load %arg4[%c4_147, %c0_148, %c0_149] : memref<6x32x1xf32, #tpu.memory_space<vmem>>, vector<1x32x1xf32>
    %217 = vector.shape_cast %216 : vector<1x32x1xf32> to vector<32x1xf32>
    %218 = vector.broadcast %217 : vector<32x1xf32> to vector<32x128xf32>
    %219 = arith.addf %215, %218 : vector<32x128xf32>
    %c5_150 = arith.constant 5 : index
    %c0_151 = arith.constant 0 : index
    %c0_152 = arith.constant 0 : index
    %220 = vector.load %arg3[%c5_150, %c0_151, %c0_152] : memref<6x32x32xbf16, #tpu.memory_space<vmem>>, vector<1x32x32xbf16>
    %221 = vector.shape_cast %220 : vector<1x32x32xbf16> to vector<32x32xbf16>
    %cst_153 = arith.constant 0.000000e+00 : f32
    %222 = vector.broadcast %cst_153 : f32 to vector<32x128xf32>
    %223 = arith.maximumf %219, %222 : vector<32x128xf32>
    %224 = arith.truncf %223 : vector<32x128xf32> to vector<32x128xbf16>
    %cst_154 = arith.constant dense<0.000000e+00> : vector<32x128xf32>
    %225 = tpu.matmul %221, %224, %cst_154 {dimension_numbers = #tpu.dot_dimension_numbers<[1], [0], [0], [1], [0, 0, 1, 1], [], []>} : vector<32x32xbf16>, vector<32x128xbf16>, vector<32x128xf32> -> vector<32x128xf32>
    %c5_155 = arith.constant 5 : index
    %c0_156 = arith.constant 0 : index
    %c0_157 = arith.constant 0 : index
    %226 = vector.load %arg4[%c5_155, %c0_156, %c0_157] : memref<6x32x1xf32, #tpu.memory_space<vmem>>, vector<1x32x1xf32>
    %227 = vector.shape_cast %226 : vector<1x32x1xf32> to vector<32x1xf32>
    %228 = vector.broadcast %227 : vector<32x1xf32> to vector<32x128xf32>
    %229 = arith.addf %225, %228 : vector<32x128xf32>
    %230 = arith.addf %209, %229 : vector<32x128xf32>
    %cst_158 = arith.constant 0.000000e+00 : f32
    %231 = vector.broadcast %cst_158 : f32 to vector<32x128xf32>
    %232 = arith.maximumf %230, %231 : vector<32x128xf32>
    %233 = vector.broadcast %1 : vector<32x1xf32> to vector<32x128xf32>
    %234 = arith.mulf %233, %232 : vector<32x128xf32>
    %cst_159 = arith.constant dense<0.000000e+00> : vector<128xf32>
    %235 = vector.multi_reduction <add>, %234, %cst_159 [0] : vector<32x128xf32> to vector<128xf32>
    %236 = vector.shape_cast %235 : vector<128xf32> to vector<1x128xf32>
    %237 = vector.broadcast %2 : vector<1x1xf32> to vector<1x128xf32>
    %238 = arith.addf %236, %237 : vector<1x128xf32>
    %c2_160 = arith.constant 2 : index
    %c0_161 = arith.constant 0 : index
    %239 = vector.load %arg7[%c2_160, %c0_161] : memref<8x128xf32, #tpu.memory_space<vmem>>, vector<1x128xf32>
    tpu.vector_store %arg7[%c2_160, %c0_161], %238 {strides = array<i32>} : memref<8x128xf32, #tpu.memory_space<vmem>>, vector<1x128xf32>,
    %c0_162 = arith.constant 0 : index
    %c384 = arith.constant 384 : index
    %240 = vector.load %arg1[%c0_162, %c384] : memref<16x1024xbf16, #tpu.memory_space<vmem>>, vector<16x128xbf16>
    %cst_163 = arith.constant dense<0.000000e+00> : vector<96x128xf32>
    %241 = tpu.matmul %0, %240, %cst_163 {dimension_numbers = #tpu.dot_dimension_numbers<[1], [0], [0], [1], [0, 0, 1, 1], [], []>} : vector<96x16xbf16>, vector<16x128xbf16>, vector<96x128xf32> -> vector<96x128xf32>
    %242 = vector.extract_strided_slice %241 {offsets = [0, 0], sizes = [32, 128], strides = [1, 1]} : vector<96x128xf32> to vector<32x128xf32>
    %c0_164 = arith.constant 0 : index
    %c0_165 = arith.constant 0 : index
    %c0_166 = arith.constant 0 : index
    %243 = vector.load %arg3[%c0_164, %c0_165, %c0_166] : memref<6x32x32xbf16, #tpu.memory_space<vmem>>, vector<1x32x32xbf16>
    %244 = vector.shape_cast %243 : vector<1x32x32xbf16> to vector<32x32xbf16>
    %cst_167 = arith.constant 0.000000e+00 : f32
    %245 = vector.broadcast %cst_167 : f32 to vector<32x128xf32>
    %246 = arith.maximumf %242, %245 : vector<32x128xf32>
    %247 = arith.truncf %246 : vector<32x128xf32> to vector<32x128xbf16>
    %cst_168 = arith.constant dense<0.000000e+00> : vector<32x128xf32>
    %248 = tpu.matmul %244, %247, %cst_168 {dimension_numbers = #tpu.dot_dimension_numbers<[1], [0], [0], [1], [0, 0, 1, 1], [], []>} : vector<32x32xbf16>, vector<32x128xbf16>, vector<32x128xf32> -> vector<32x128xf32>
    %c0_169 = arith.constant 0 : index
    %c0_170 = arith.constant 0 : index
    %c0_171 = arith.constant 0 : index
    %249 = vector.load %arg4[%c0_169, %c0_170, %c0_171] : memref<6x32x1xf32, #tpu.memory_space<vmem>>, vector<1x32x1xf32>
    %250 = vector.shape_cast %249 : vector<1x32x1xf32> to vector<32x1xf32>
    %251 = vector.broadcast %250 : vector<32x1xf32> to vector<32x128xf32>
    %252 = arith.addf %248, %251 : vector<32x128xf32>
    %c1_172 = arith.constant 1 : index
    %c0_173 = arith.constant 0 : index
    %c0_174 = arith.constant 0 : index
    %253 = vector.load %arg3[%c1_172, %c0_173, %c0_174] : memref<6x32x32xbf16, #tpu.memory_space<vmem>>, vector<1x32x32xbf16>
    %254 = vector.shape_cast %253 : vector<1x32x32xbf16> to vector<32x32xbf16>
    %cst_175 = arith.constant 0.000000e+00 : f32
    %255 = vector.broadcast %cst_175 : f32 to vector<32x128xf32>
    %256 = arith.maximumf %252, %255 : vector<32x128xf32>
    %257 = arith.truncf %256 : vector<32x128xf32> to vector<32x128xbf16>
    %cst_176 = arith.constant dense<0.000000e+00> : vector<32x128xf32>
    %258 = tpu.matmul %254, %257, %cst_176 {dimension_numbers = #tpu.dot_dimension_numbers<[1], [0], [0], [1], [0, 0, 1, 1], [], []>} : vector<32x32xbf16>, vector<32x128xbf16>, vector<32x128xf32> -> vector<32x128xf32>
    %c1_177 = arith.constant 1 : index
    %c0_178 = arith.constant 0 : index
    %c0_179 = arith.constant 0 : index
    %259 = vector.load %arg4[%c1_177, %c0_178, %c0_179] : memref<6x32x1xf32, #tpu.memory_space<vmem>>, vector<1x32x1xf32>
    %260 = vector.shape_cast %259 : vector<1x32x1xf32> to vector<32x1xf32>
    %261 = vector.broadcast %260 : vector<32x1xf32> to vector<32x128xf32>
    %262 = arith.addf %258, %261 : vector<32x128xf32>
    %263 = arith.addf %242, %262 : vector<32x128xf32>
    %264 = vector.extract_strided_slice %241 {offsets = [32, 0], sizes = [32, 128], strides = [1, 1]} : vector<96x128xf32> to vector<32x128xf32>
    %265 = arith.addf %263, %264 : vector<32x128xf32>
    %c2_180 = arith.constant 2 : index
    %c0_181 = arith.constant 0 : index
    %c0_182 = arith.constant 0 : index
    %266 = vector.load %arg3[%c2_180, %c0_181, %c0_182] : memref<6x32x32xbf16, #tpu.memory_space<vmem>>, vector<1x32x32xbf16>
    %267 = vector.shape_cast %266 : vector<1x32x32xbf16> to vector<32x32xbf16>
    %cst_183 = arith.constant 0.000000e+00 : f32
    %268 = vector.broadcast %cst_183 : f32 to vector<32x128xf32>
    %269 = arith.maximumf %265, %268 : vector<32x128xf32>
    %270 = arith.truncf %269 : vector<32x128xf32> to vector<32x128xbf16>
    %cst_184 = arith.constant dense<0.000000e+00> : vector<32x128xf32>
    %271 = tpu.matmul %267, %270, %cst_184 {dimension_numbers = #tpu.dot_dimension_numbers<[1], [0], [0], [1], [0, 0, 1, 1], [], []>} : vector<32x32xbf16>, vector<32x128xbf16>, vector<32x128xf32> -> vector<32x128xf32>
    %c2_185 = arith.constant 2 : index
    %c0_186 = arith.constant 0 : index
    %c0_187 = arith.constant 0 : index
    %272 = vector.load %arg4[%c2_185, %c0_186, %c0_187] : memref<6x32x1xf32, #tpu.memory_space<vmem>>, vector<1x32x1xf32>
    %273 = vector.shape_cast %272 : vector<1x32x1xf32> to vector<32x1xf32>
    %274 = vector.broadcast %273 : vector<32x1xf32> to vector<32x128xf32>
    %275 = arith.addf %271, %274 : vector<32x128xf32>
    %c3_188 = arith.constant 3 : index
    %c0_189 = arith.constant 0 : index
    %c0_190 = arith.constant 0 : index
    %276 = vector.load %arg3[%c3_188, %c0_189, %c0_190] : memref<6x32x32xbf16, #tpu.memory_space<vmem>>, vector<1x32x32xbf16>
    %277 = vector.shape_cast %276 : vector<1x32x32xbf16> to vector<32x32xbf16>
    %cst_191 = arith.constant 0.000000e+00 : f32
    %278 = vector.broadcast %cst_191 : f32 to vector<32x128xf32>
    %279 = arith.maximumf %275, %278 : vector<32x128xf32>
    %280 = arith.truncf %279 : vector<32x128xf32> to vector<32x128xbf16>
    %cst_192 = arith.constant dense<0.000000e+00> : vector<32x128xf32>
    %281 = tpu.matmul %277, %280, %cst_192 {dimension_numbers = #tpu.dot_dimension_numbers<[1], [0], [0], [1], [0, 0, 1, 1], [], []>} : vector<32x32xbf16>, vector<32x128xbf16>, vector<32x128xf32> -> vector<32x128xf32>
    %c3_193 = arith.constant 3 : index
    %c0_194 = arith.constant 0 : index
    %c0_195 = arith.constant 0 : index
    %282 = vector.load %arg4[%c3_193, %c0_194, %c0_195] : memref<6x32x1xf32, #tpu.memory_space<vmem>>, vector<1x32x1xf32>
    %283 = vector.shape_cast %282 : vector<1x32x1xf32> to vector<32x1xf32>
    %284 = vector.broadcast %283 : vector<32x1xf32> to vector<32x128xf32>
    %285 = arith.addf %281, %284 : vector<32x128xf32>
    %286 = arith.addf %265, %285 : vector<32x128xf32>
    %287 = vector.extract_strided_slice %241 {offsets = [64, 0], sizes = [32, 128], strides = [1, 1]} : vector<96x128xf32> to vector<32x128xf32>
    %288 = arith.addf %286, %287 : vector<32x128xf32>
    %c4_196 = arith.constant 4 : index
    %c0_197 = arith.constant 0 : index
    %c0_198 = arith.constant 0 : index
    %289 = vector.load %arg3[%c4_196, %c0_197, %c0_198] : memref<6x32x32xbf16, #tpu.memory_space<vmem>>, vector<1x32x32xbf16>
    %290 = vector.shape_cast %289 : vector<1x32x32xbf16> to vector<32x32xbf16>
    %cst_199 = arith.constant 0.000000e+00 : f32
    %291 = vector.broadcast %cst_199 : f32 to vector<32x128xf32>
    %292 = arith.maximumf %288, %291 : vector<32x128xf32>
    %293 = arith.truncf %292 : vector<32x128xf32> to vector<32x128xbf16>
    %cst_200 = arith.constant dense<0.000000e+00> : vector<32x128xf32>
    %294 = tpu.matmul %290, %293, %cst_200 {dimension_numbers = #tpu.dot_dimension_numbers<[1], [0], [0], [1], [0, 0, 1, 1], [], []>} : vector<32x32xbf16>, vector<32x128xbf16>, vector<32x128xf32> -> vector<32x128xf32>
    %c4_201 = arith.constant 4 : index
    %c0_202 = arith.constant 0 : index
    %c0_203 = arith.constant 0 : index
    %295 = vector.load %arg4[%c4_201, %c0_202, %c0_203] : memref<6x32x1xf32, #tpu.memory_space<vmem>>, vector<1x32x1xf32>
    %296 = vector.shape_cast %295 : vector<1x32x1xf32> to vector<32x1xf32>
    %297 = vector.broadcast %296 : vector<32x1xf32> to vector<32x128xf32>
    %298 = arith.addf %294, %297 : vector<32x128xf32>
    %c5_204 = arith.constant 5 : index
    %c0_205 = arith.constant 0 : index
    %c0_206 = arith.constant 0 : index
    %299 = vector.load %arg3[%c5_204, %c0_205, %c0_206] : memref<6x32x32xbf16, #tpu.memory_space<vmem>>, vector<1x32x32xbf16>
    %300 = vector.shape_cast %299 : vector<1x32x32xbf16> to vector<32x32xbf16>
    %cst_207 = arith.constant 0.000000e+00 : f32
    %301 = vector.broadcast %cst_207 : f32 to vector<32x128xf32>
    %302 = arith.maximumf %298, %301 : vector<32x128xf32>
    %303 = arith.truncf %302 : vector<32x128xf32> to vector<32x128xbf16>
    %cst_208 = arith.constant dense<0.000000e+00> : vector<32x128xf32>
    %304 = tpu.matmul %300, %303, %cst_208 {dimension_numbers = #tpu.dot_dimension_numbers<[1], [0], [0], [1], [0, 0, 1, 1], [], []>} : vector<32x32xbf16>, vector<32x128xbf16>, vector<32x128xf32> -> vector<32x128xf32>
    %c5_209 = arith.constant 5 : index
    %c0_210 = arith.constant 0 : index
    %c0_211 = arith.constant 0 : index
    %305 = vector.load %arg4[%c5_209, %c0_210, %c0_211] : memref<6x32x1xf32, #tpu.memory_space<vmem>>, vector<1x32x1xf32>
    %306 = vector.shape_cast %305 : vector<1x32x1xf32> to vector<32x1xf32>
    %307 = vector.broadcast %306 : vector<32x1xf32> to vector<32x128xf32>
    %308 = arith.addf %304, %307 : vector<32x128xf32>
    %309 = arith.addf %288, %308 : vector<32x128xf32>
    %cst_212 = arith.constant 0.000000e+00 : f32
    %310 = vector.broadcast %cst_212 : f32 to vector<32x128xf32>
    %311 = arith.maximumf %309, %310 : vector<32x128xf32>
    %312 = vector.broadcast %1 : vector<32x1xf32> to vector<32x128xf32>
    %313 = arith.mulf %312, %311 : vector<32x128xf32>
    %cst_213 = arith.constant dense<0.000000e+00> : vector<128xf32>
    %314 = vector.multi_reduction <add>, %313, %cst_213 [0] : vector<32x128xf32> to vector<128xf32>
    %315 = vector.shape_cast %314 : vector<128xf32> to vector<1x128xf32>
    %316 = vector.broadcast %2 : vector<1x1xf32> to vector<1x128xf32>
    %317 = arith.addf %315, %316 : vector<1x128xf32>
    %c3_214 = arith.constant 3 : index
    %c0_215 = arith.constant 0 : index
    %318 = vector.load %arg7[%c3_214, %c0_215] : memref<8x128xf32, #tpu.memory_space<vmem>>, vector<1x128xf32>
    tpu.vector_store %arg7[%c3_214, %c0_215], %317 {strides = array<i32>} : memref<8x128xf32, #tpu.memory_space<vmem>>, vector<1x128xf32>,
    %c0_216 = arith.constant 0 : index
    %c512 = arith.constant 512 : index
    %319 = vector.load %arg1[%c0_216, %c512] : memref<16x1024xbf16, #tpu.memory_space<vmem>>, vector<16x128xbf16>
    %cst_217 = arith.constant dense<0.000000e+00> : vector<96x128xf32>
    %320 = tpu.matmul %0, %319, %cst_217 {dimension_numbers = #tpu.dot_dimension_numbers<[1], [0], [0], [1], [0, 0, 1, 1], [], []>} : vector<96x16xbf16>, vector<16x128xbf16>, vector<96x128xf32> -> vector<96x128xf32>
    %321 = vector.extract_strided_slice %320 {offsets = [0, 0], sizes = [32, 128], strides = [1, 1]} : vector<96x128xf32> to vector<32x128xf32>
    %c0_218 = arith.constant 0 : index
    %c0_219 = arith.constant 0 : index
    %c0_220 = arith.constant 0 : index
    %322 = vector.load %arg3[%c0_218, %c0_219, %c0_220] : memref<6x32x32xbf16, #tpu.memory_space<vmem>>, vector<1x32x32xbf16>
    %323 = vector.shape_cast %322 : vector<1x32x32xbf16> to vector<32x32xbf16>
    %cst_221 = arith.constant 0.000000e+00 : f32
    %324 = vector.broadcast %cst_221 : f32 to vector<32x128xf32>
    %325 = arith.maximumf %321, %324 : vector<32x128xf32>
    %326 = arith.truncf %325 : vector<32x128xf32> to vector<32x128xbf16>
    %cst_222 = arith.constant dense<0.000000e+00> : vector<32x128xf32>
    %327 = tpu.matmul %323, %326, %cst_222 {dimension_numbers = #tpu.dot_dimension_numbers<[1], [0], [0], [1], [0, 0, 1, 1], [], []>} : vector<32x32xbf16>, vector<32x128xbf16>, vector<32x128xf32> -> vector<32x128xf32>
    %c0_223 = arith.constant 0 : index
    %c0_224 = arith.constant 0 : index
    %c0_225 = arith.constant 0 : index
    %328 = vector.load %arg4[%c0_223, %c0_224, %c0_225] : memref<6x32x1xf32, #tpu.memory_space<vmem>>, vector<1x32x1xf32>
    %329 = vector.shape_cast %328 : vector<1x32x1xf32> to vector<32x1xf32>
    %330 = vector.broadcast %329 : vector<32x1xf32> to vector<32x128xf32>
    %331 = arith.addf %327, %330 : vector<32x128xf32>
    %c1_226 = arith.constant 1 : index
    %c0_227 = arith.constant 0 : index
    %c0_228 = arith.constant 0 : index
    %332 = vector.load %arg3[%c1_226, %c0_227, %c0_228] : memref<6x32x32xbf16, #tpu.memory_space<vmem>>, vector<1x32x32xbf16>
    %333 = vector.shape_cast %332 : vector<1x32x32xbf16> to vector<32x32xbf16>
    %cst_229 = arith.constant 0.000000e+00 : f32
    %334 = vector.broadcast %cst_229 : f32 to vector<32x128xf32>
    %335 = arith.maximumf %331, %334 : vector<32x128xf32>
    %336 = arith.truncf %335 : vector<32x128xf32> to vector<32x128xbf16>
    %cst_230 = arith.constant dense<0.000000e+00> : vector<32x128xf32>
    %337 = tpu.matmul %333, %336, %cst_230 {dimension_numbers = #tpu.dot_dimension_numbers<[1], [0], [0], [1], [0, 0, 1, 1], [], []>} : vector<32x32xbf16>, vector<32x128xbf16>, vector<32x128xf32> -> vector<32x128xf32>
    %c1_231 = arith.constant 1 : index
    %c0_232 = arith.constant 0 : index
    %c0_233 = arith.constant 0 : index
    %338 = vector.load %arg4[%c1_231, %c0_232, %c0_233] : memref<6x32x1xf32, #tpu.memory_space<vmem>>, vector<1x32x1xf32>
    %339 = vector.shape_cast %338 : vector<1x32x1xf32> to vector<32x1xf32>
    %340 = vector.broadcast %339 : vector<32x1xf32> to vector<32x128xf32>
    %341 = arith.addf %337, %340 : vector<32x128xf32>
    %342 = arith.addf %321, %341 : vector<32x128xf32>
    %343 = vector.extract_strided_slice %320 {offsets = [32, 0], sizes = [32, 128], strides = [1, 1]} : vector<96x128xf32> to vector<32x128xf32>
    %344 = arith.addf %342, %343 : vector<32x128xf32>
    %c2_234 = arith.constant 2 : index
    %c0_235 = arith.constant 0 : index
    %c0_236 = arith.constant 0 : index
    %345 = vector.load %arg3[%c2_234, %c0_235, %c0_236] : memref<6x32x32xbf16, #tpu.memory_space<vmem>>, vector<1x32x32xbf16>
    %346 = vector.shape_cast %345 : vector<1x32x32xbf16> to vector<32x32xbf16>
    %cst_237 = arith.constant 0.000000e+00 : f32
    %347 = vector.broadcast %cst_237 : f32 to vector<32x128xf32>
    %348 = arith.maximumf %344, %347 : vector<32x128xf32>
    %349 = arith.truncf %348 : vector<32x128xf32> to vector<32x128xbf16>
    %cst_238 = arith.constant dense<0.000000e+00> : vector<32x128xf32>
    %350 = tpu.matmul %346, %349, %cst_238 {dimension_numbers = #tpu.dot_dimension_numbers<[1], [0], [0], [1], [0, 0, 1, 1], [], []>} : vector<32x32xbf16>, vector<32x128xbf16>, vector<32x128xf32> -> vector<32x128xf32>
    %c2_239 = arith.constant 2 : index
    %c0_240 = arith.constant 0 : index
    %c0_241 = arith.constant 0 : index
    %351 = vector.load %arg4[%c2_239, %c0_240, %c0_241] : memref<6x32x1xf32, #tpu.memory_space<vmem>>, vector<1x32x1xf32>
    %352 = vector.shape_cast %351 : vector<1x32x1xf32> to vector<32x1xf32>
    %353 = vector.broadcast %352 : vector<32x1xf32> to vector<32x128xf32>
    %354 = arith.addf %350, %353 : vector<32x128xf32>
    %c3_242 = arith.constant 3 : index
    %c0_243 = arith.constant 0 : index
    %c0_244 = arith.constant 0 : index
    %355 = vector.load %arg3[%c3_242, %c0_243, %c0_244] : memref<6x32x32xbf16, #tpu.memory_space<vmem>>, vector<1x32x32xbf16>
    %356 = vector.shape_cast %355 : vector<1x32x32xbf16> to vector<32x32xbf16>
    %cst_245 = arith.constant 0.000000e+00 : f32
    %357 = vector.broadcast %cst_245 : f32 to vector<32x128xf32>
    %358 = arith.maximumf %354, %357 : vector<32x128xf32>
    %359 = arith.truncf %358 : vector<32x128xf32> to vector<32x128xbf16>
    %cst_246 = arith.constant dense<0.000000e+00> : vector<32x128xf32>
    %360 = tpu.matmul %356, %359, %cst_246 {dimension_numbers = #tpu.dot_dimension_numbers<[1], [0], [0], [1], [0, 0, 1, 1], [], []>} : vector<32x32xbf16>, vector<32x128xbf16>, vector<32x128xf32> -> vector<32x128xf32>
    %c3_247 = arith.constant 3 : index
    %c0_248 = arith.constant 0 : index
    %c0_249 = arith.constant 0 : index
    %361 = vector.load %arg4[%c3_247, %c0_248, %c0_249] : memref<6x32x1xf32, #tpu.memory_space<vmem>>, vector<1x32x1xf32>
    %362 = vector.shape_cast %361 : vector<1x32x1xf32> to vector<32x1xf32>
    %363 = vector.broadcast %362 : vector<32x1xf32> to vector<32x128xf32>
    %364 = arith.addf %360, %363 : vector<32x128xf32>
    %365 = arith.addf %344, %364 : vector<32x128xf32>
    %366 = vector.extract_strided_slice %320 {offsets = [64, 0], sizes = [32, 128], strides = [1, 1]} : vector<96x128xf32> to vector<32x128xf32>
    %367 = arith.addf %365, %366 : vector<32x128xf32>
    %c4_250 = arith.constant 4 : index
    %c0_251 = arith.constant 0 : index
    %c0_252 = arith.constant 0 : index
    %368 = vector.load %arg3[%c4_250, %c0_251, %c0_252] : memref<6x32x32xbf16, #tpu.memory_space<vmem>>, vector<1x32x32xbf16>
    %369 = vector.shape_cast %368 : vector<1x32x32xbf16> to vector<32x32xbf16>
    %cst_253 = arith.constant 0.000000e+00 : f32
    %370 = vector.broadcast %cst_253 : f32 to vector<32x128xf32>
    %371 = arith.maximumf %367, %370 : vector<32x128xf32>
    %372 = arith.truncf %371 : vector<32x128xf32> to vector<32x128xbf16>
    %cst_254 = arith.constant dense<0.000000e+00> : vector<32x128xf32>
    %373 = tpu.matmul %369, %372, %cst_254 {dimension_numbers = #tpu.dot_dimension_numbers<[1], [0], [0], [1], [0, 0, 1, 1], [], []>} : vector<32x32xbf16>, vector<32x128xbf16>, vector<32x128xf32> -> vector<32x128xf32>
    %c4_255 = arith.constant 4 : index
    %c0_256 = arith.constant 0 : index
    %c0_257 = arith.constant 0 : index
    %374 = vector.load %arg4[%c4_255, %c0_256, %c0_257] : memref<6x32x1xf32, #tpu.memory_space<vmem>>, vector<1x32x1xf32>
    %375 = vector.shape_cast %374 : vector<1x32x1xf32> to vector<32x1xf32>
    %376 = vector.broadcast %375 : vector<32x1xf32> to vector<32x128xf32>
    %377 = arith.addf %373, %376 : vector<32x128xf32>
    %c5_258 = arith.constant 5 : index
    %c0_259 = arith.constant 0 : index
    %c0_260 = arith.constant 0 : index
    %378 = vector.load %arg3[%c5_258, %c0_259, %c0_260] : memref<6x32x32xbf16, #tpu.memory_space<vmem>>, vector<1x32x32xbf16>
    %379 = vector.shape_cast %378 : vector<1x32x32xbf16> to vector<32x32xbf16>
    %cst_261 = arith.constant 0.000000e+00 : f32
    %380 = vector.broadcast %cst_261 : f32 to vector<32x128xf32>
    %381 = arith.maximumf %377, %380 : vector<32x128xf32>
    %382 = arith.truncf %381 : vector<32x128xf32> to vector<32x128xbf16>
    %cst_262 = arith.constant dense<0.000000e+00> : vector<32x128xf32>
    %383 = tpu.matmul %379, %382, %cst_262 {dimension_numbers = #tpu.dot_dimension_numbers<[1], [0], [0], [1], [0, 0, 1, 1], [], []>} : vector<32x32xbf16>, vector<32x128xbf16>, vector<32x128xf32> -> vector<32x128xf32>
    %c5_263 = arith.constant 5 : index
    %c0_264 = arith.constant 0 : index
    %c0_265 = arith.constant 0 : index
    %384 = vector.load %arg4[%c5_263, %c0_264, %c0_265] : memref<6x32x1xf32, #tpu.memory_space<vmem>>, vector<1x32x1xf32>
    %385 = vector.shape_cast %384 : vector<1x32x1xf32> to vector<32x1xf32>
    %386 = vector.broadcast %385 : vector<32x1xf32> to vector<32x128xf32>
    %387 = arith.addf %383, %386 : vector<32x128xf32>
    %388 = arith.addf %367, %387 : vector<32x128xf32>
    %cst_266 = arith.constant 0.000000e+00 : f32
    %389 = vector.broadcast %cst_266 : f32 to vector<32x128xf32>
    %390 = arith.maximumf %388, %389 : vector<32x128xf32>
    %391 = vector.broadcast %1 : vector<32x1xf32> to vector<32x128xf32>
    %392 = arith.mulf %391, %390 : vector<32x128xf32>
    %cst_267 = arith.constant dense<0.000000e+00> : vector<128xf32>
    %393 = vector.multi_reduction <add>, %392, %cst_267 [0] : vector<32x128xf32> to vector<128xf32>
    %394 = vector.shape_cast %393 : vector<128xf32> to vector<1x128xf32>
    %395 = vector.broadcast %2 : vector<1x1xf32> to vector<1x128xf32>
    %396 = arith.addf %394, %395 : vector<1x128xf32>
    %c4_268 = arith.constant 4 : index
    %c0_269 = arith.constant 0 : index
    %397 = vector.load %arg7[%c4_268, %c0_269] : memref<8x128xf32, #tpu.memory_space<vmem>>, vector<1x128xf32>
    tpu.vector_store %arg7[%c4_268, %c0_269], %396 {strides = array<i32>} : memref<8x128xf32, #tpu.memory_space<vmem>>, vector<1x128xf32>,
    %c0_270 = arith.constant 0 : index
    %c640 = arith.constant 640 : index
    %398 = vector.load %arg1[%c0_270, %c640] : memref<16x1024xbf16, #tpu.memory_space<vmem>>, vector<16x128xbf16>
    %cst_271 = arith.constant dense<0.000000e+00> : vector<96x128xf32>
    %399 = tpu.matmul %0, %398, %cst_271 {dimension_numbers = #tpu.dot_dimension_numbers<[1], [0], [0], [1], [0, 0, 1, 1], [], []>} : vector<96x16xbf16>, vector<16x128xbf16>, vector<96x128xf32> -> vector<96x128xf32>
    %400 = vector.extract_strided_slice %399 {offsets = [0, 0], sizes = [32, 128], strides = [1, 1]} : vector<96x128xf32> to vector<32x128xf32>
    %c0_272 = arith.constant 0 : index
    %c0_273 = arith.constant 0 : index
    %c0_274 = arith.constant 0 : index
    %401 = vector.load %arg3[%c0_272, %c0_273, %c0_274] : memref<6x32x32xbf16, #tpu.memory_space<vmem>>, vector<1x32x32xbf16>
    %402 = vector.shape_cast %401 : vector<1x32x32xbf16> to vector<32x32xbf16>
    %cst_275 = arith.constant 0.000000e+00 : f32
    %403 = vector.broadcast %cst_275 : f32 to vector<32x128xf32>
    %404 = arith.maximumf %400, %403 : vector<32x128xf32>
    %405 = arith.truncf %404 : vector<32x128xf32> to vector<32x128xbf16>
    %cst_276 = arith.constant dense<0.000000e+00> : vector<32x128xf32>
    %406 = tpu.matmul %402, %405, %cst_276 {dimension_numbers = #tpu.dot_dimension_numbers<[1], [0], [0], [1], [0, 0, 1, 1], [], []>} : vector<32x32xbf16>, vector<32x128xbf16>, vector<32x128xf32> -> vector<32x128xf32>
    %c0_277 = arith.constant 0 : index
    %c0_278 = arith.constant 0 : index
    %c0_279 = arith.constant 0 : index
    %407 = vector.load %arg4[%c0_277, %c0_278, %c0_279] : memref<6x32x1xf32, #tpu.memory_space<vmem>>, vector<1x32x1xf32>
    %408 = vector.shape_cast %407 : vector<1x32x1xf32> to vector<32x1xf32>
    %409 = vector.broadcast %408 : vector<32x1xf32> to vector<32x128xf32>
    %410 = arith.addf %406, %409 : vector<32x128xf32>
    %c1_280 = arith.constant 1 : index
    %c0_281 = arith.constant 0 : index
    %c0_282 = arith.constant 0 : index
    %411 = vector.load %arg3[%c1_280, %c0_281, %c0_282] : memref<6x32x32xbf16, #tpu.memory_space<vmem>>, vector<1x32x32xbf16>
    %412 = vector.shape_cast %411 : vector<1x32x32xbf16> to vector<32x32xbf16>
    %cst_283 = arith.constant 0.000000e+00 : f32
    %413 = vector.broadcast %cst_283 : f32 to vector<32x128xf32>
    %414 = arith.maximumf %410, %413 : vector<32x128xf32>
    %415 = arith.truncf %414 : vector<32x128xf32> to vector<32x128xbf16>
    %cst_284 = arith.constant dense<0.000000e+00> : vector<32x128xf32>
    %416 = tpu.matmul %412, %415, %cst_284 {dimension_numbers = #tpu.dot_dimension_numbers<[1], [0], [0], [1], [0, 0, 1, 1], [], []>} : vector<32x32xbf16>, vector<32x128xbf16>, vector<32x128xf32> -> vector<32x128xf32>
    %c1_285 = arith.constant 1 : index
    %c0_286 = arith.constant 0 : index
    %c0_287 = arith.constant 0 : index
    %417 = vector.load %arg4[%c1_285, %c0_286, %c0_287] : memref<6x32x1xf32, #tpu.memory_space<vmem>>, vector<1x32x1xf32>
    %418 = vector.shape_cast %417 : vector<1x32x1xf32> to vector<32x1xf32>
    %419 = vector.broadcast %418 : vector<32x1xf32> to vector<32x128xf32>
    %420 = arith.addf %416, %419 : vector<32x128xf32>
    %421 = arith.addf %400, %420 : vector<32x128xf32>
    %422 = vector.extract_strided_slice %399 {offsets = [32, 0], sizes = [32, 128], strides = [1, 1]} : vector<96x128xf32> to vector<32x128xf32>
    %423 = arith.addf %421, %422 : vector<32x128xf32>
    %c2_288 = arith.constant 2 : index
    %c0_289 = arith.constant 0 : index
    %c0_290 = arith.constant 0 : index
    %424 = vector.load %arg3[%c2_288, %c0_289, %c0_290] : memref<6x32x32xbf16, #tpu.memory_space<vmem>>, vector<1x32x32xbf16>
    %425 = vector.shape_cast %424 : vector<1x32x32xbf16> to vector<32x32xbf16>
    %cst_291 = arith.constant 0.000000e+00 : f32
    %426 = vector.broadcast %cst_291 : f32 to vector<32x128xf32>
    %427 = arith.maximumf %423, %426 : vector<32x128xf32>
    %428 = arith.truncf %427 : vector<32x128xf32> to vector<32x128xbf16>
    %cst_292 = arith.constant dense<0.000000e+00> : vector<32x128xf32>
    %429 = tpu.matmul %425, %428, %cst_292 {dimension_numbers = #tpu.dot_dimension_numbers<[1], [0], [0], [1], [0, 0, 1, 1], [], []>} : vector<32x32xbf16>, vector<32x128xbf16>, vector<32x128xf32> -> vector<32x128xf32>
    %c2_293 = arith.constant 2 : index
    %c0_294 = arith.constant 0 : index
    %c0_295 = arith.constant 0 : index
    %430 = vector.load %arg4[%c2_293, %c0_294, %c0_295] : memref<6x32x1xf32, #tpu.memory_space<vmem>>, vector<1x32x1xf32>
    %431 = vector.shape_cast %430 : vector<1x32x1xf32> to vector<32x1xf32>
    %432 = vector.broadcast %431 : vector<32x1xf32> to vector<32x128xf32>
    %433 = arith.addf %429, %432 : vector<32x128xf32>
    %c3_296 = arith.constant 3 : index
    %c0_297 = arith.constant 0 : index
    %c0_298 = arith.constant 0 : index
    %434 = vector.load %arg3[%c3_296, %c0_297, %c0_298] : memref<6x32x32xbf16, #tpu.memory_space<vmem>>, vector<1x32x32xbf16>
    %435 = vector.shape_cast %434 : vector<1x32x32xbf16> to vector<32x32xbf16>
    %cst_299 = arith.constant 0.000000e+00 : f32
    %436 = vector.broadcast %cst_299 : f32 to vector<32x128xf32>
    %437 = arith.maximumf %433, %436 : vector<32x128xf32>
    %438 = arith.truncf %437 : vector<32x128xf32> to vector<32x128xbf16>
    %cst_300 = arith.constant dense<0.000000e+00> : vector<32x128xf32>
    %439 = tpu.matmul %435, %438, %cst_300 {dimension_numbers = #tpu.dot_dimension_numbers<[1], [0], [0], [1], [0, 0, 1, 1], [], []>} : vector<32x32xbf16>, vector<32x128xbf16>, vector<32x128xf32> -> vector<32x128xf32>
    %c3_301 = arith.constant 3 : index
    %c0_302 = arith.constant 0 : index
    %c0_303 = arith.constant 0 : index
    %440 = vector.load %arg4[%c3_301, %c0_302, %c0_303] : memref<6x32x1xf32, #tpu.memory_space<vmem>>, vector<1x32x1xf32>
    %441 = vector.shape_cast %440 : vector<1x32x1xf32> to vector<32x1xf32>
    %442 = vector.broadcast %441 : vector<32x1xf32> to vector<32x128xf32>
    %443 = arith.addf %439, %442 : vector<32x128xf32>
    %444 = arith.addf %423, %443 : vector<32x128xf32>
    %445 = vector.extract_strided_slice %399 {offsets = [64, 0], sizes = [32, 128], strides = [1, 1]} : vector<96x128xf32> to vector<32x128xf32>
    %446 = arith.addf %444, %445 : vector<32x128xf32>
    %c4_304 = arith.constant 4 : index
    %c0_305 = arith.constant 0 : index
    %c0_306 = arith.constant 0 : index
    %447 = vector.load %arg3[%c4_304, %c0_305, %c0_306] : memref<6x32x32xbf16, #tpu.memory_space<vmem>>, vector<1x32x32xbf16>
    %448 = vector.shape_cast %447 : vector<1x32x32xbf16> to vector<32x32xbf16>
    %cst_307 = arith.constant 0.000000e+00 : f32
    %449 = vector.broadcast %cst_307 : f32 to vector<32x128xf32>
    %450 = arith.maximumf %446, %449 : vector<32x128xf32>
    %451 = arith.truncf %450 : vector<32x128xf32> to vector<32x128xbf16>
    %cst_308 = arith.constant dense<0.000000e+00> : vector<32x128xf32>
    %452 = tpu.matmul %448, %451, %cst_308 {dimension_numbers = #tpu.dot_dimension_numbers<[1], [0], [0], [1], [0, 0, 1, 1], [], []>} : vector<32x32xbf16>, vector<32x128xbf16>, vector<32x128xf32> -> vector<32x128xf32>
    %c4_309 = arith.constant 4 : index
    %c0_310 = arith.constant 0 : index
    %c0_311 = arith.constant 0 : index
    %453 = vector.load %arg4[%c4_309, %c0_310, %c0_311] : memref<6x32x1xf32, #tpu.memory_space<vmem>>, vector<1x32x1xf32>
    %454 = vector.shape_cast %453 : vector<1x32x1xf32> to vector<32x1xf32>
    %455 = vector.broadcast %454 : vector<32x1xf32> to vector<32x128xf32>
    %456 = arith.addf %452, %455 : vector<32x128xf32>
    %c5_312 = arith.constant 5 : index
    %c0_313 = arith.constant 0 : index
    %c0_314 = arith.constant 0 : index
    %457 = vector.load %arg3[%c5_312, %c0_313, %c0_314] : memref<6x32x32xbf16, #tpu.memory_space<vmem>>, vector<1x32x32xbf16>
    %458 = vector.shape_cast %457 : vector<1x32x32xbf16> to vector<32x32xbf16>
    %cst_315 = arith.constant 0.000000e+00 : f32
    %459 = vector.broadcast %cst_315 : f32 to vector<32x128xf32>
    %460 = arith.maximumf %456, %459 : vector<32x128xf32>
    %461 = arith.truncf %460 : vector<32x128xf32> to vector<32x128xbf16>
    %cst_316 = arith.constant dense<0.000000e+00> : vector<32x128xf32>
    %462 = tpu.matmul %458, %461, %cst_316 {dimension_numbers = #tpu.dot_dimension_numbers<[1], [0], [0], [1], [0, 0, 1, 1], [], []>} : vector<32x32xbf16>, vector<32x128xbf16>, vector<32x128xf32> -> vector<32x128xf32>
    %c5_317 = arith.constant 5 : index
    %c0_318 = arith.constant 0 : index
    %c0_319 = arith.constant 0 : index
    %463 = vector.load %arg4[%c5_317, %c0_318, %c0_319] : memref<6x32x1xf32, #tpu.memory_space<vmem>>, vector<1x32x1xf32>
    %464 = vector.shape_cast %463 : vector<1x32x1xf32> to vector<32x1xf32>
    %465 = vector.broadcast %464 : vector<32x1xf32> to vector<32x128xf32>
    %466 = arith.addf %462, %465 : vector<32x128xf32>
    %467 = arith.addf %446, %466 : vector<32x128xf32>
    %cst_320 = arith.constant 0.000000e+00 : f32
    %468 = vector.broadcast %cst_320 : f32 to vector<32x128xf32>
    %469 = arith.maximumf %467, %468 : vector<32x128xf32>
    %470 = vector.broadcast %1 : vector<32x1xf32> to vector<32x128xf32>
    %471 = arith.mulf %470, %469 : vector<32x128xf32>
    %cst_321 = arith.constant dense<0.000000e+00> : vector<128xf32>
    %472 = vector.multi_reduction <add>, %471, %cst_321 [0] : vector<32x128xf32> to vector<128xf32>
    %473 = vector.shape_cast %472 : vector<128xf32> to vector<1x128xf32>
    %474 = vector.broadcast %2 : vector<1x1xf32> to vector<1x128xf32>
    %475 = arith.addf %473, %474 : vector<1x128xf32>
    %c5_322 = arith.constant 5 : index
    %c0_323 = arith.constant 0 : index
    %476 = vector.load %arg7[%c5_322, %c0_323] : memref<8x128xf32, #tpu.memory_space<vmem>>, vector<1x128xf32>
    tpu.vector_store %arg7[%c5_322, %c0_323], %475 {strides = array<i32>} : memref<8x128xf32, #tpu.memory_space<vmem>>, vector<1x128xf32>,
    %c0_324 = arith.constant 0 : index
    %c768 = arith.constant 768 : index
    %477 = vector.load %arg1[%c0_324, %c768] : memref<16x1024xbf16, #tpu.memory_space<vmem>>, vector<16x128xbf16>
    %cst_325 = arith.constant dense<0.000000e+00> : vector<96x128xf32>
    %478 = tpu.matmul %0, %477, %cst_325 {dimension_numbers = #tpu.dot_dimension_numbers<[1], [0], [0], [1], [0, 0, 1, 1], [], []>} : vector<96x16xbf16>, vector<16x128xbf16>, vector<96x128xf32> -> vector<96x128xf32>
    %479 = vector.extract_strided_slice %478 {offsets = [0, 0], sizes = [32, 128], strides = [1, 1]} : vector<96x128xf32> to vector<32x128xf32>
    %c0_326 = arith.constant 0 : index
    %c0_327 = arith.constant 0 : index
    %c0_328 = arith.constant 0 : index
    %480 = vector.load %arg3[%c0_326, %c0_327, %c0_328] : memref<6x32x32xbf16, #tpu.memory_space<vmem>>, vector<1x32x32xbf16>
    %481 = vector.shape_cast %480 : vector<1x32x32xbf16> to vector<32x32xbf16>
    %cst_329 = arith.constant 0.000000e+00 : f32
    %482 = vector.broadcast %cst_329 : f32 to vector<32x128xf32>
    %483 = arith.maximumf %479, %482 : vector<32x128xf32>
    %484 = arith.truncf %483 : vector<32x128xf32> to vector<32x128xbf16>
    %cst_330 = arith.constant dense<0.000000e+00> : vector<32x128xf32>
    %485 = tpu.matmul %481, %484, %cst_330 {dimension_numbers = #tpu.dot_dimension_numbers<[1], [0], [0], [1], [0, 0, 1, 1], [], []>} : vector<32x32xbf16>, vector<32x128xbf16>, vector<32x128xf32> -> vector<32x128xf32>
    %c0_331 = arith.constant 0 : index
    %c0_332 = arith.constant 0 : index
    %c0_333 = arith.constant 0 : index
    %486 = vector.load %arg4[%c0_331, %c0_332, %c0_333] : memref<6x32x1xf32, #tpu.memory_space<vmem>>, vector<1x32x1xf32>
    %487 = vector.shape_cast %486 : vector<1x32x1xf32> to vector<32x1xf32>
    %488 = vector.broadcast %487 : vector<32x1xf32> to vector<32x128xf32>
    %489 = arith.addf %485, %488 : vector<32x128xf32>
    %c1_334 = arith.constant 1 : index
    %c0_335 = arith.constant 0 : index
    %c0_336 = arith.constant 0 : index
    %490 = vector.load %arg3[%c1_334, %c0_335, %c0_336] : memref<6x32x32xbf16, #tpu.memory_space<vmem>>, vector<1x32x32xbf16>
    %491 = vector.shape_cast %490 : vector<1x32x32xbf16> to vector<32x32xbf16>
    %cst_337 = arith.constant 0.000000e+00 : f32
    %492 = vector.broadcast %cst_337 : f32 to vector<32x128xf32>
    %493 = arith.maximumf %489, %492 : vector<32x128xf32>
    %494 = arith.truncf %493 : vector<32x128xf32> to vector<32x128xbf16>
    %cst_338 = arith.constant dense<0.000000e+00> : vector<32x128xf32>
    %495 = tpu.matmul %491, %494, %cst_338 {dimension_numbers = #tpu.dot_dimension_numbers<[1], [0], [0], [1], [0, 0, 1, 1], [], []>} : vector<32x32xbf16>, vector<32x128xbf16>, vector<32x128xf32> -> vector<32x128xf32>
    %c1_339 = arith.constant 1 : index
    %c0_340 = arith.constant 0 : index
    %c0_341 = arith.constant 0 : index
    %496 = vector.load %arg4[%c1_339, %c0_340, %c0_341] : memref<6x32x1xf32, #tpu.memory_space<vmem>>, vector<1x32x1xf32>
    %497 = vector.shape_cast %496 : vector<1x32x1xf32> to vector<32x1xf32>
    %498 = vector.broadcast %497 : vector<32x1xf32> to vector<32x128xf32>
    %499 = arith.addf %495, %498 : vector<32x128xf32>
    %500 = arith.addf %479, %499 : vector<32x128xf32>
    %501 = vector.extract_strided_slice %478 {offsets = [32, 0], sizes = [32, 128], strides = [1, 1]} : vector<96x128xf32> to vector<32x128xf32>
    %502 = arith.addf %500, %501 : vector<32x128xf32>
    %c2_342 = arith.constant 2 : index
    %c0_343 = arith.constant 0 : index
    %c0_344 = arith.constant 0 : index
    %503 = vector.load %arg3[%c2_342, %c0_343, %c0_344] : memref<6x32x32xbf16, #tpu.memory_space<vmem>>, vector<1x32x32xbf16>
    %504 = vector.shape_cast %503 : vector<1x32x32xbf16> to vector<32x32xbf16>
    %cst_345 = arith.constant 0.000000e+00 : f32
    %505 = vector.broadcast %cst_345 : f32 to vector<32x128xf32>
    %506 = arith.maximumf %502, %505 : vector<32x128xf32>
    %507 = arith.truncf %506 : vector<32x128xf32> to vector<32x128xbf16>
    %cst_346 = arith.constant dense<0.000000e+00> : vector<32x128xf32>
    %508 = tpu.matmul %504, %507, %cst_346 {dimension_numbers = #tpu.dot_dimension_numbers<[1], [0], [0], [1], [0, 0, 1, 1], [], []>} : vector<32x32xbf16>, vector<32x128xbf16>, vector<32x128xf32> -> vector<32x128xf32>
    %c2_347 = arith.constant 2 : index
    %c0_348 = arith.constant 0 : index
    %c0_349 = arith.constant 0 : index
    %509 = vector.load %arg4[%c2_347, %c0_348, %c0_349] : memref<6x32x1xf32, #tpu.memory_space<vmem>>, vector<1x32x1xf32>
    %510 = vector.shape_cast %509 : vector<1x32x1xf32> to vector<32x1xf32>
    %511 = vector.broadcast %510 : vector<32x1xf32> to vector<32x128xf32>
    %512 = arith.addf %508, %511 : vector<32x128xf32>
    %c3_350 = arith.constant 3 : index
    %c0_351 = arith.constant 0 : index
    %c0_352 = arith.constant 0 : index
    %513 = vector.load %arg3[%c3_350, %c0_351, %c0_352] : memref<6x32x32xbf16, #tpu.memory_space<vmem>>, vector<1x32x32xbf16>
    %514 = vector.shape_cast %513 : vector<1x32x32xbf16> to vector<32x32xbf16>
    %cst_353 = arith.constant 0.000000e+00 : f32
    %515 = vector.broadcast %cst_353 : f32 to vector<32x128xf32>
    %516 = arith.maximumf %512, %515 : vector<32x128xf32>
    %517 = arith.truncf %516 : vector<32x128xf32> to vector<32x128xbf16>
    %cst_354 = arith.constant dense<0.000000e+00> : vector<32x128xf32>
    %518 = tpu.matmul %514, %517, %cst_354 {dimension_numbers = #tpu.dot_dimension_numbers<[1], [0], [0], [1], [0, 0, 1, 1], [], []>} : vector<32x32xbf16>, vector<32x128xbf16>, vector<32x128xf32> -> vector<32x128xf32>
    %c3_355 = arith.constant 3 : index
    %c0_356 = arith.constant 0 : index
    %c0_357 = arith.constant 0 : index
    %519 = vector.load %arg4[%c3_355, %c0_356, %c0_357] : memref<6x32x1xf32, #tpu.memory_space<vmem>>, vector<1x32x1xf32>
    %520 = vector.shape_cast %519 : vector<1x32x1xf32> to vector<32x1xf32>
    %521 = vector.broadcast %520 : vector<32x1xf32> to vector<32x128xf32>
    %522 = arith.addf %518, %521 : vector<32x128xf32>
    %523 = arith.addf %502, %522 : vector<32x128xf32>
    %524 = vector.extract_strided_slice %478 {offsets = [64, 0], sizes = [32, 128], strides = [1, 1]} : vector<96x128xf32> to vector<32x128xf32>
    %525 = arith.addf %523, %524 : vector<32x128xf32>
    %c4_358 = arith.constant 4 : index
    %c0_359 = arith.constant 0 : index
    %c0_360 = arith.constant 0 : index
    %526 = vector.load %arg3[%c4_358, %c0_359, %c0_360] : memref<6x32x32xbf16, #tpu.memory_space<vmem>>, vector<1x32x32xbf16>
    %527 = vector.shape_cast %526 : vector<1x32x32xbf16> to vector<32x32xbf16>
    %cst_361 = arith.constant 0.000000e+00 : f32
    %528 = vector.broadcast %cst_361 : f32 to vector<32x128xf32>
    %529 = arith.maximumf %525, %528 : vector<32x128xf32>
    %530 = arith.truncf %529 : vector<32x128xf32> to vector<32x128xbf16>
    %cst_362 = arith.constant dense<0.000000e+00> : vector<32x128xf32>
    %531 = tpu.matmul %527, %530, %cst_362 {dimension_numbers = #tpu.dot_dimension_numbers<[1], [0], [0], [1], [0, 0, 1, 1], [], []>} : vector<32x32xbf16>, vector<32x128xbf16>, vector<32x128xf32> -> vector<32x128xf32>
    %c4_363 = arith.constant 4 : index
    %c0_364 = arith.constant 0 : index
    %c0_365 = arith.constant 0 : index
    %532 = vector.load %arg4[%c4_363, %c0_364, %c0_365] : memref<6x32x1xf32, #tpu.memory_space<vmem>>, vector<1x32x1xf32>
    %533 = vector.shape_cast %532 : vector<1x32x1xf32> to vector<32x1xf32>
    %534 = vector.broadcast %533 : vector<32x1xf32> to vector<32x128xf32>
    %535 = arith.addf %531, %534 : vector<32x128xf32>
    %c5_366 = arith.constant 5 : index
    %c0_367 = arith.constant 0 : index
    %c0_368 = arith.constant 0 : index
    %536 = vector.load %arg3[%c5_366, %c0_367, %c0_368] : memref<6x32x32xbf16, #tpu.memory_space<vmem>>, vector<1x32x32xbf16>
    %537 = vector.shape_cast %536 : vector<1x32x32xbf16> to vector<32x32xbf16>
    %cst_369 = arith.constant 0.000000e+00 : f32
    %538 = vector.broadcast %cst_369 : f32 to vector<32x128xf32>
    %539 = arith.maximumf %535, %538 : vector<32x128xf32>
    %540 = arith.truncf %539 : vector<32x128xf32> to vector<32x128xbf16>
    %cst_370 = arith.constant dense<0.000000e+00> : vector<32x128xf32>
    %541 = tpu.matmul %537, %540, %cst_370 {dimension_numbers = #tpu.dot_dimension_numbers<[1], [0], [0], [1], [0, 0, 1, 1], [], []>} : vector<32x32xbf16>, vector<32x128xbf16>, vector<32x128xf32> -> vector<32x128xf32>
    %c5_371 = arith.constant 5 : index
    %c0_372 = arith.constant 0 : index
    %c0_373 = arith.constant 0 : index
    %542 = vector.load %arg4[%c5_371, %c0_372, %c0_373] : memref<6x32x1xf32, #tpu.memory_space<vmem>>, vector<1x32x1xf32>
    %543 = vector.shape_cast %542 : vector<1x32x1xf32> to vector<32x1xf32>
    %544 = vector.broadcast %543 : vector<32x1xf32> to vector<32x128xf32>
    %545 = arith.addf %541, %544 : vector<32x128xf32>
    %546 = arith.addf %525, %545 : vector<32x128xf32>
    %cst_374 = arith.constant 0.000000e+00 : f32
    %547 = vector.broadcast %cst_374 : f32 to vector<32x128xf32>
    %548 = arith.maximumf %546, %547 : vector<32x128xf32>
    %549 = vector.broadcast %1 : vector<32x1xf32> to vector<32x128xf32>
    %550 = arith.mulf %549, %548 : vector<32x128xf32>
    %cst_375 = arith.constant dense<0.000000e+00> : vector<128xf32>
    %551 = vector.multi_reduction <add>, %550, %cst_375 [0] : vector<32x128xf32> to vector<128xf32>
    %552 = vector.shape_cast %551 : vector<128xf32> to vector<1x128xf32>
    %553 = vector.broadcast %2 : vector<1x1xf32> to vector<1x128xf32>
    %554 = arith.addf %552, %553 : vector<1x128xf32>
    %c6 = arith.constant 6 : index
    %c0_376 = arith.constant 0 : index
    %555 = vector.load %arg7[%c6, %c0_376] : memref<8x128xf32, #tpu.memory_space<vmem>>, vector<1x128xf32>
    tpu.vector_store %arg7[%c6, %c0_376], %554 {strides = array<i32>} : memref<8x128xf32, #tpu.memory_space<vmem>>, vector<1x128xf32>,
    %c0_377 = arith.constant 0 : index
    %c896 = arith.constant 896 : index
    %556 = vector.load %arg1[%c0_377, %c896] : memref<16x1024xbf16, #tpu.memory_space<vmem>>, vector<16x128xbf16>
    %cst_378 = arith.constant dense<0.000000e+00> : vector<96x128xf32>
    %557 = tpu.matmul %0, %556, %cst_378 {dimension_numbers = #tpu.dot_dimension_numbers<[1], [0], [0], [1], [0, 0, 1, 1], [], []>} : vector<96x16xbf16>, vector<16x128xbf16>, vector<96x128xf32> -> vector<96x128xf32>
    %558 = vector.extract_strided_slice %557 {offsets = [0, 0], sizes = [32, 128], strides = [1, 1]} : vector<96x128xf32> to vector<32x128xf32>
    %c0_379 = arith.constant 0 : index
    %c0_380 = arith.constant 0 : index
    %c0_381 = arith.constant 0 : index
    %559 = vector.load %arg3[%c0_379, %c0_380, %c0_381] : memref<6x32x32xbf16, #tpu.memory_space<vmem>>, vector<1x32x32xbf16>
    %560 = vector.shape_cast %559 : vector<1x32x32xbf16> to vector<32x32xbf16>
    %cst_382 = arith.constant 0.000000e+00 : f32
    %561 = vector.broadcast %cst_382 : f32 to vector<32x128xf32>
    %562 = arith.maximumf %558, %561 : vector<32x128xf32>
    %563 = arith.truncf %562 : vector<32x128xf32> to vector<32x128xbf16>
    %cst_383 = arith.constant dense<0.000000e+00> : vector<32x128xf32>
    %564 = tpu.matmul %560, %563, %cst_383 {dimension_numbers = #tpu.dot_dimension_numbers<[1], [0], [0], [1], [0, 0, 1, 1], [], []>} : vector<32x32xbf16>, vector<32x128xbf16>, vector<32x128xf32> -> vector<32x128xf32>
    %c0_384 = arith.constant 0 : index
    %c0_385 = arith.constant 0 : index
    %c0_386 = arith.constant 0 : index
    %565 = vector.load %arg4[%c0_384, %c0_385, %c0_386] : memref<6x32x1xf32, #tpu.memory_space<vmem>>, vector<1x32x1xf32>
    %566 = vector.shape_cast %565 : vector<1x32x1xf32> to vector<32x1xf32>
    %567 = vector.broadcast %566 : vector<32x1xf32> to vector<32x128xf32>
    %568 = arith.addf %564, %567 : vector<32x128xf32>
    %c1_387 = arith.constant 1 : index
    %c0_388 = arith.constant 0 : index
    %c0_389 = arith.constant 0 : index
    %569 = vector.load %arg3[%c1_387, %c0_388, %c0_389] : memref<6x32x32xbf16, #tpu.memory_space<vmem>>, vector<1x32x32xbf16>
    %570 = vector.shape_cast %569 : vector<1x32x32xbf16> to vector<32x32xbf16>
    %cst_390 = arith.constant 0.000000e+00 : f32
    %571 = vector.broadcast %cst_390 : f32 to vector<32x128xf32>
    %572 = arith.maximumf %568, %571 : vector<32x128xf32>
    %573 = arith.truncf %572 : vector<32x128xf32> to vector<32x128xbf16>
    %cst_391 = arith.constant dense<0.000000e+00> : vector<32x128xf32>
    %574 = tpu.matmul %570, %573, %cst_391 {dimension_numbers = #tpu.dot_dimension_numbers<[1], [0], [0], [1], [0, 0, 1, 1], [], []>} : vector<32x32xbf16>, vector<32x128xbf16>, vector<32x128xf32> -> vector<32x128xf32>
    %c1_392 = arith.constant 1 : index
    %c0_393 = arith.constant 0 : index
    %c0_394 = arith.constant 0 : index
    %575 = vector.load %arg4[%c1_392, %c0_393, %c0_394] : memref<6x32x1xf32, #tpu.memory_space<vmem>>, vector<1x32x1xf32>
    %576 = vector.shape_cast %575 : vector<1x32x1xf32> to vector<32x1xf32>
    %577 = vector.broadcast %576 : vector<32x1xf32> to vector<32x128xf32>
    %578 = arith.addf %574, %577 : vector<32x128xf32>
    %579 = arith.addf %558, %578 : vector<32x128xf32>
    %580 = vector.extract_strided_slice %557 {offsets = [32, 0], sizes = [32, 128], strides = [1, 1]} : vector<96x128xf32> to vector<32x128xf32>
    %581 = arith.addf %579, %580 : vector<32x128xf32>
    %c2_395 = arith.constant 2 : index
    %c0_396 = arith.constant 0 : index
    %c0_397 = arith.constant 0 : index
    %582 = vector.load %arg3[%c2_395, %c0_396, %c0_397] : memref<6x32x32xbf16, #tpu.memory_space<vmem>>, vector<1x32x32xbf16>
    %583 = vector.shape_cast %582 : vector<1x32x32xbf16> to vector<32x32xbf16>
    %cst_398 = arith.constant 0.000000e+00 : f32
    %584 = vector.broadcast %cst_398 : f32 to vector<32x128xf32>
    %585 = arith.maximumf %581, %584 : vector<32x128xf32>
    %586 = arith.truncf %585 : vector<32x128xf32> to vector<32x128xbf16>
    %cst_399 = arith.constant dense<0.000000e+00> : vector<32x128xf32>
    %587 = tpu.matmul %583, %586, %cst_399 {dimension_numbers = #tpu.dot_dimension_numbers<[1], [0], [0], [1], [0, 0, 1, 1], [], []>} : vector<32x32xbf16>, vector<32x128xbf16>, vector<32x128xf32> -> vector<32x128xf32>
    %c2_400 = arith.constant 2 : index
    %c0_401 = arith.constant 0 : index
    %c0_402 = arith.constant 0 : index
    %588 = vector.load %arg4[%c2_400, %c0_401, %c0_402] : memref<6x32x1xf32, #tpu.memory_space<vmem>>, vector<1x32x1xf32>
    %589 = vector.shape_cast %588 : vector<1x32x1xf32> to vector<32x1xf32>
    %590 = vector.broadcast %589 : vector<32x1xf32> to vector<32x128xf32>
    %591 = arith.addf %587, %590 : vector<32x128xf32>
    %c3_403 = arith.constant 3 : index
    %c0_404 = arith.constant 0 : index
    %c0_405 = arith.constant 0 : index
    %592 = vector.load %arg3[%c3_403, %c0_404, %c0_405] : memref<6x32x32xbf16, #tpu.memory_space<vmem>>, vector<1x32x32xbf16>
    %593 = vector.shape_cast %592 : vector<1x32x32xbf16> to vector<32x32xbf16>
    %cst_406 = arith.constant 0.000000e+00 : f32
    %594 = vector.broadcast %cst_406 : f32 to vector<32x128xf32>
    %595 = arith.maximumf %591, %594 : vector<32x128xf32>
    %596 = arith.truncf %595 : vector<32x128xf32> to vector<32x128xbf16>
    %cst_407 = arith.constant dense<0.000000e+00> : vector<32x128xf32>
    %597 = tpu.matmul %593, %596, %cst_407 {dimension_numbers = #tpu.dot_dimension_numbers<[1], [0], [0], [1], [0, 0, 1, 1], [], []>} : vector<32x32xbf16>, vector<32x128xbf16>, vector<32x128xf32> -> vector<32x128xf32>
    %c3_408 = arith.constant 3 : index
    %c0_409 = arith.constant 0 : index
    %c0_410 = arith.constant 0 : index
    %598 = vector.load %arg4[%c3_408, %c0_409, %c0_410] : memref<6x32x1xf32, #tpu.memory_space<vmem>>, vector<1x32x1xf32>
    %599 = vector.shape_cast %598 : vector<1x32x1xf32> to vector<32x1xf32>
    %600 = vector.broadcast %599 : vector<32x1xf32> to vector<32x128xf32>
    %601 = arith.addf %597, %600 : vector<32x128xf32>
    %602 = arith.addf %581, %601 : vector<32x128xf32>
    %603 = vector.extract_strided_slice %557 {offsets = [64, 0], sizes = [32, 128], strides = [1, 1]} : vector<96x128xf32> to vector<32x128xf32>
    %604 = arith.addf %602, %603 : vector<32x128xf32>
    %c4_411 = arith.constant 4 : index
    %c0_412 = arith.constant 0 : index
    %c0_413 = arith.constant 0 : index
    %605 = vector.load %arg3[%c4_411, %c0_412, %c0_413] : memref<6x32x32xbf16, #tpu.memory_space<vmem>>, vector<1x32x32xbf16>
    %606 = vector.shape_cast %605 : vector<1x32x32xbf16> to vector<32x32xbf16>
    %cst_414 = arith.constant 0.000000e+00 : f32
    %607 = vector.broadcast %cst_414 : f32 to vector<32x128xf32>
    %608 = arith.maximumf %604, %607 : vector<32x128xf32>
    %609 = arith.truncf %608 : vector<32x128xf32> to vector<32x128xbf16>
    %cst_415 = arith.constant dense<0.000000e+00> : vector<32x128xf32>
    %610 = tpu.matmul %606, %609, %cst_415 {dimension_numbers = #tpu.dot_dimension_numbers<[1], [0], [0], [1], [0, 0, 1, 1], [], []>} : vector<32x32xbf16>, vector<32x128xbf16>, vector<32x128xf32> -> vector<32x128xf32>
    %c4_416 = arith.constant 4 : index
    %c0_417 = arith.constant 0 : index
    %c0_418 = arith.constant 0 : index
    %611 = vector.load %arg4[%c4_416, %c0_417, %c0_418] : memref<6x32x1xf32, #tpu.memory_space<vmem>>, vector<1x32x1xf32>
    %612 = vector.shape_cast %611 : vector<1x32x1xf32> to vector<32x1xf32>
    %613 = vector.broadcast %612 : vector<32x1xf32> to vector<32x128xf32>
    %614 = arith.addf %610, %613 : vector<32x128xf32>
    %c5_419 = arith.constant 5 : index
    %c0_420 = arith.constant 0 : index
    %c0_421 = arith.constant 0 : index
    %615 = vector.load %arg3[%c5_419, %c0_420, %c0_421] : memref<6x32x32xbf16, #tpu.memory_space<vmem>>, vector<1x32x32xbf16>
    %616 = vector.shape_cast %615 : vector<1x32x32xbf16> to vector<32x32xbf16>
    %cst_422 = arith.constant 0.000000e+00 : f32
    %617 = vector.broadcast %cst_422 : f32 to vector<32x128xf32>
    %618 = arith.maximumf %614, %617 : vector<32x128xf32>
    %619 = arith.truncf %618 : vector<32x128xf32> to vector<32x128xbf16>
    %cst_423 = arith.constant dense<0.000000e+00> : vector<32x128xf32>
    %620 = tpu.matmul %616, %619, %cst_423 {dimension_numbers = #tpu.dot_dimension_numbers<[1], [0], [0], [1], [0, 0, 1, 1], [], []>} : vector<32x32xbf16>, vector<32x128xbf16>, vector<32x128xf32> -> vector<32x128xf32>
    %c5_424 = arith.constant 5 : index
    %c0_425 = arith.constant 0 : index
    %c0_426 = arith.constant 0 : index
    %621 = vector.load %arg4[%c5_424, %c0_425, %c0_426] : memref<6x32x1xf32, #tpu.memory_space<vmem>>, vector<1x32x1xf32>
    %622 = vector.shape_cast %621 : vector<1x32x1xf32> to vector<32x1xf32>
    %623 = vector.broadcast %622 : vector<32x1xf32> to vector<32x128xf32>
    %624 = arith.addf %620, %623 : vector<32x128xf32>
    %625 = arith.addf %604, %624 : vector<32x128xf32>
    %cst_427 = arith.constant 0.000000e+00 : f32
    %626 = vector.broadcast %cst_427 : f32 to vector<32x128xf32>
    %627 = arith.maximumf %625, %626 : vector<32x128xf32>
    %628 = vector.broadcast %1 : vector<32x1xf32> to vector<32x128xf32>
    %629 = arith.mulf %628, %627 : vector<32x128xf32>
    %cst_428 = arith.constant dense<0.000000e+00> : vector<128xf32>
    %630 = vector.multi_reduction <add>, %629, %cst_428 [0] : vector<32x128xf32> to vector<128xf32>
    %631 = vector.shape_cast %630 : vector<128xf32> to vector<1x128xf32>
    %632 = vector.broadcast %2 : vector<1x1xf32> to vector<1x128xf32>
    %633 = arith.addf %631, %632 : vector<1x128xf32>
    %c7 = arith.constant 7 : index
    %c0_429 = arith.constant 0 : index
    %634 = vector.load %arg7[%c7, %c0_429] : memref<8x128xf32, #tpu.memory_space<vmem>>, vector<1x128xf32>
    tpu.vector_store %arg7[%c7, %c0_429], %633 {strides = array<i32>} : memref<8x128xf32, #tpu.memory_space<vmem>>, vector<1x128xf32>,
    return
  }
  func.func @transform_0(%arg0: i32) -> (i32, i32) {
    %c0_i32 = arith.constant 0 : i32
    %c0_i32_0 = arith.constant 0 : i32
    return %c0_i32, %arg0 : i32, i32
  }
  func.func @transform_1(%arg0: i32) -> (i32, i32) {
    %c0_i32 = arith.constant 0 : i32
    %c0_i32_0 = arith.constant 0 : i32
    %c0_i32_1 = arith.constant 0 : i32
    return %c0_i32, %c0_i32_0 : i32, i32
  }
  func.func @transform_2(%arg0: i32) -> (i32, i32, i32) {
    %c0_i32 = arith.constant 0 : i32
    %c0_i32_0 = arith.constant 0 : i32
    %c0_i32_1 = arith.constant 0 : i32
    %c0_i32_2 = arith.constant 0 : i32
    return %c0_i32, %c0_i32_0, %c0_i32_1 : i32, i32, i32
  }
  func.func @transform_3(%arg0: i32) -> (i32, i32, i32) {
    %c0_i32 = arith.constant 0 : i32
    %c0_i32_0 = arith.constant 0 : i32
    %c0_i32_1 = arith.constant 0 : i32
    %c0_i32_2 = arith.constant 0 : i32
    return %c0_i32, %c0_i32_0, %c0_i32_1 : i32, i32, i32
  }
  func.func @transform_4(%arg0: i32) -> (i32, i32) {
    %c0_i32 = arith.constant 0 : i32
    %c0_i32_0 = arith.constant 0 : i32
    %c0_i32_1 = arith.constant 0 : i32
    return %c0_i32, %c0_i32_0 : i32, i32
  }
  func.func @transform_5(%arg0: i32) -> (i32, i32) {
    %c0_i32 = arith.constant 0 : i32
    %c0_i32_0 = arith.constant 0 : i32
    %c0_i32_1 = arith.constant 0 : i32
    return %c0_i32, %c0_i32_0 : i32, i32
  }
  func.func @transform_6(%arg0: i32) -> (i32, i32) {
    %c0_i32 = arith.constant 0 : i32
    %c0_i32_0 = arith.constant 0 : i32
    return %c0_i32, %arg0 : i32, i32
  }
}

</mosaic_0001>

<bundles_post_ra>
// kernel: local_decoder_forward.1
= control target key start
LH: loop header
LB: loop body
LE: loop exit
PB: predicated region body
PF: predicated region fallthrough
CT: control target
= control target key end

     0   :  { %v7349_v0 = vmov 0   ;;  %vm81_vm0 = vcmask 130048   ;;  %vm225_vm1 = vcmask 261120   ;;  %s9131_s3 = inlined_call_operand.vmem [shape: f32[6,32,1], index: 3, kind: input, shape index: {}]   ;;  %s9132_s0 = inlined_call_operand.vmem [shape: bf16[16,1024], index: 0, kind: input, shape index: {}]   ;;  %s9133_s1 = inlined_call_operand.vmem [shape: bf16[96,16], index: 1, kind: input, shape index: {}]   ;;  %s9134_s2 = inlined_call_operand.vmem [shape: bf16[6,32,32], index: 2, kind: input, shape index: {}]   ;;  %s9135_s5 = inlined_call_operand.<no memory space> [shape: f32[1,1], index: 5, kind: input, shape index: {}]   ;;  %s9136_s4 = inlined_call_operand.vmem [shape: f32[32,1], index: 4, kind: input, shape index: {}]   ;;  %s9137_s6 = inlined_call_operand.vmem [shape: f32[8,128], index: 6, kind: output, shape index: {}]  }
   0x1   :  { %7232 = vset.pattern.permute.xlu1 %v7349_v0  ;;  %7231 = vset.pattern.permute.xlu0 %v7349_v0  ;;  %v7388_v1 = vld [vmem:[%s9131_s3 + $0x10] sm:$0xff]  ;;  %v7393_v2 = vld [vmem:[%s9131_s3] sm:$0xff]  ;;  %v7406_v5 = vld [vmem:[%s9131_s3 + $0x18] sm:$0xff]  ;;  %v11_v63 = vstv %s9135_s5 }
   0x2   :  { %v43_v3 = vld [vmem:[%s9132_s0] sm:$0xf]  ;;  %207 = vperm.xlu0 %7231, %v7388_v1   ;;  %197 = vperm.xlu1 %7232, %v7393_v2   ;;  %v7414_v8 = vld [vmem:[%s9131_s3 + $0x8] sm:$0xff]  ;;  %v7425_v10 = vld [vmem:[%s9131_s3 + $0x30] sm:$0xff]  ;;  %12 = vst [vmem:[#allocation2] sm:$0x1] %v11_v63 }
   0x3   :  { %v44_v4 = vld [vmem:[%s9132_s0 + $0x20] sm:$0xf]  ;;  %v7234_v9 = vld [vmem:[%s9133_s1 + $0x8] sm:$0xff]   ;;  %v7430_v11 = vld [vmem:[%s9131_s3 + $0x38] sm:$0xff] }
   0x4   :  { %v5918_v6 = vcombine.low %v43_v3, %v44_v4  ;;  %v7233_v7 = vld [vmem:[%s9133_s1] sm:$0xff]   ;;  %v7442_v13 = vld [vmem:[%s9131_s3 + $0x28] sm:$0xff]  ;;  %v7450_v14 = vld [vmem:[%s9131_s3 + $0x50] sm:$0xff] }
   0x5   :  { %6736 = vmatprep.mubr.msk.bf16.mxu0 %vm81_vm0, %v7233_v7  ;;  %v7436_v12 = vld [vmem:[%s9131_s3 + $0x20] sm:$0xff]  ;;  %v7455_v15 = vld [vmem:[%s9131_s3 + $0x58] sm:$0xff]  ;;  %v7467_v17 = vld [vmem:[%s9131_s3 + $0x48] sm:$0xff] }
   0x6   :  { %6734 = vmatprep.subr.bf16.mxu0 %v5918_v6  ;;  %212 = vperm.xlu0 %7231, %v7406_v5   ;;  %v7462_v16 = vld [vmem:[%s9131_s3 + $0x40] sm:$0xff]  ;;  %v7474_v18 = vld [vmem:[%s9131_s3 + $0x70] sm:$0xff]  ;;  %v7479_v19 = vld [vmem:[%s9131_s3 + $0x78] sm:$0xff] }
   0x7   :  { %6735 = vmatpush3.bf16.msra.mxu0 %v5918_v6  ;;  %202 = vperm.xlu1 %7232, %v7414_v8   ;;  %v7486_v20 = vld [vmem:[%s9131_s3 + $0x60] sm:$0xff]  ;;  %v7491_v21 = vld [vmem:[%s9131_s3 + $0x68] sm:$0xff]  ;;  %v7498_v22 = vld [vmem:[%s9131_s3 + $0x90] sm:$0xff] }
   0x8   :  { %v7503_v23 = vld [vmem:[%s9131_s3 + $0x98] sm:$0xff]  ;;  %v7510_v24 = vld [vmem:[%s9131_s3 + $0x80] sm:$0xff]  ;;  %v7515_v25 = vld [vmem:[%s9131_s3 + $0x88] sm:$0xff] }
   0x9   :  { %v7235_v26 = vld [vmem:[%s9134_s2] sm:$0xff]  }
   0xa   :  { %6737 = vmatmul.mubr.msk.bf16.vlgmr.msra.gmra.mxu0 %vm81_vm0, %v7234_v9  ;;  %309 = vperm.xlu0 %7231, %v7425_v10  }
   0xb   :  { %314 = vperm.xlu1 %7232, %v7430_v11   ;;  %6752 = vmatprep.mubr.msk.bf16.mxu1 %vm225_vm1, %v7235_v26 }
   0xe   :  { %299 = vperm.xlu0 %7231, %v7436_v12  }
   0xf   :  { %304 = vperm.xlu1 %7232, %v7442_v13  }
  0x12   :  { %418 = vperm.xlu0 %7231, %v7450_v14  }
  0x13   :  { %423 = vperm.xlu1 %7232, %v7455_v15  }
  0x16   :  { %408 = vperm.xlu0 %7231, %v7462_v16  }
  0x17   :  { %413 = vperm.xlu1 %7232, %v7467_v17  }
  0x1a   :  { %519 = vperm.xlu0 %7231, %v7474_v18  }
  0x1b   :  { %524 = vperm.xlu1 %7232, %v7479_v19  }
  0x1e   :  { %509 = vperm.xlu0 %7231, %v7486_v20  }
  0x1f   :  { %514 = vperm.xlu1 %7232, %v7491_v21  }
  0x22   :  { %628 = vperm.xlu0 %7231, %v7498_v22  }
  0x23   :  { %633 = vperm.xlu1 %7232, %v7503_v23  }
  0x26   :  { %618 = vperm.xlu0 %7231, %v7510_v24  }
  0x27   :  { %623 = vperm.xlu1 %7232, %v7515_v25  }
  0x2a   :  { %969 = vperm.xlu0 %7231, %v7388_v1  }
  0x2b   :  { %974 = vperm.xlu1 %7232, %v7406_v5  }
  0x2e   :  { %959 = vperm.xlu0 %7231, %v7393_v2  }
  0x2f   :  { %964 = vperm.xlu1 %7232, %v7414_v8  }
  0x32   :  { %1068 = vperm.xlu0 %7231, %v7425_v10  }
  0x33   :  { %1073 = vperm.xlu1 %7232, %v7430_v11  }
  0x36   :  { %1058 = vperm.xlu0 %7231, %v7436_v12  }
  0x37   :  { %1063 = vperm.xlu1 %7232, %v7442_v13  }
  0x3a   :  { %1175 = vperm.xlu0 %7231, %v7450_v14  }
  0x3b   :  { %1180 = vperm.xlu1 %7232, %v7455_v15  }
  0x3e   :  { %1165 = vperm.xlu0 %7231, %v7462_v16  }
  0x3f   :  { %1170 = vperm.xlu1 %7232, %v7467_v17  }
  0x42   :  { %1274 = vperm.xlu0 %7231, %v7474_v18  }
  0x43   :  { %1279 = vperm.xlu1 %7232, %v7479_v19  }
  0x46   :  { %1264 = vperm.xlu0 %7231, %v7486_v20  }
  0x47   :  { %1269 = vperm.xlu1 %7232, %v7491_v21  }
  0x4a   :  { %1381 = vperm.xlu0 %7231, %v7498_v22  }
  0x4b   :  { %1386 = vperm.xlu1 %7232, %v7503_v23  }
  0x4e   :  { %1371 = vperm.xlu0 %7231, %v7510_v24  }
  0x4f   :  { %1376 = vperm.xlu1 %7232, %v7515_v25  }
  0x52   :  { %1691 = vperm.xlu0 %7231, %v7388_v1  }
  0x53   :  { %1696 = vperm.xlu1 %7232, %v7406_v5  }
  0x56   :  { %1681 = vperm.xlu0 %7231, %v7393_v2  }
  0x57   :  { %1686 = vperm.xlu1 %7232, %v7414_v8  }
  0x5a   :  { %1790 = vperm.xlu0 %7231, %v7425_v10  }
  0x5b   :  { %1795 = vperm.xlu1 %7232, %v7430_v11  }
  0x5e   :  { %1780 = vperm.xlu0 %7231, %v7436_v12  }
  0x5f   :  { %1785 = vperm.xlu1 %7232, %v7442_v13  }
  0x62   :  { %1897 = vperm.xlu0 %7231, %v7450_v14  }
  0x63   :  { %1902 = vperm.xlu1 %7232, %v7455_v15  }
  0x66   :  { %1887 = vperm.xlu0 %7231, %v7462_v16  }
  0x67   :  { %1892 = vperm.xlu1 %7232, %v7467_v17  }
  0x6a   :  { %1996 = vperm.xlu0 %7231, %v7474_v18  }
  0x6b   :  { %2001 = vperm.xlu1 %7232, %v7479_v19  }
  0x6e   :  { %1986 = vperm.xlu0 %7231, %v7486_v20  }
  0x6f   :  { %1991 = vperm.xlu1 %7232, %v7491_v21  }
  0x72   :  { %2103 = vperm.xlu0 %7231, %v7498_v22  }
  0x73   :  { %2108 = vperm.xlu1 %7232, %v7503_v23  }
  0x76   :  { %2093 = vperm.xlu0 %7231, %v7510_v24  }
  0x77   :  { %2098 = vperm.xlu1 %7232, %v7515_v25  }
  0x7a   :  { %2413 = vperm.xlu0 %7231, %v7388_v1  }
  0x7b   :  { %2418 = vperm.xlu1 %7232, %v7406_v5  }
  0x7d   :  { %v7565_v27 = vpop.permute.xlu0 %207  ;;  %v7567_v28 = vpop.permute.xlu1 %197 }
  0x7e   :  { %2403 = vperm.xlu0 %7231, %v7393_v2  }
  0x7f   :  { %2408 = vperm.xlu1 %7232, %v7414_v8  }
  0x81   :  { %v7571_v29 = vpop.permute.xlu0 %212 }
  0x82   :  { %v7573_v30 = vpop.permute.xlu1 %202  ;;  %2512 = vperm.xlu0 %7231, %v7425_v10  }
  0x83   :  { %2517 = vperm.xlu1 %7232, %v7430_v11  }
  0x85   :  { %v7577_v31 = vpop.permute.xlu0 %309 }
  0x86   :  { %v7579_v32 = vpop.permute.xlu1 %314  ;;  %2502 = vperm.xlu0 %7231, %v7436_v12  }
  0x87   :  { %2507 = vperm.xlu1 %7232, %v7442_v13  }
  0x89   :  { %v7583_v33 = vpop.permute.xlu0 %299 }
  0x8a   :  { %v7585_v34 = vpop.permute.xlu1 %304  ;;  %2619 = vperm.xlu0 %7231, %v7450_v14  }
  0x8b   :  { %2624 = vperm.xlu1 %7232, %v7455_v15  }
  0x8d   :  { %v7589_v35 = vpop.permute.xlu0 %418 }
  0x8e   :  { %v7591_v36 = vpop.permute.xlu1 %423  ;;  %2609 = vperm.xlu0 %7231, %v7462_v16  }
  0x8f   :  { %2614 = vperm.xlu1 %7232, %v7467_v17  }
  0x91   :  { %v7595_v37 = vpop.permute.xlu0 %408 }
  0x92   :  { %v7597_v38 = vpop.permute.xlu1 %413  ;;  %2718 = vperm.xlu0 %7231, %v7474_v18  }
  0x93   :  { %2723 = vperm.xlu1 %7232, %v7479_v19  }
  0x95   :  { %v7601_v39 = vpop.permute.xlu0 %519 }
  0x96   :  { %v7603_v40 = vpop.permute.xlu1 %524  ;;  %2708 = vperm.xlu0 %7231, %v7486_v20  }
  0x97   :  { %2713 = vperm.xlu1 %7232, %v7491_v21  }
  0x99   :  { %v7607_v41 = vpop.permute.xlu0 %509 }
  0x9a   :  { %v7609_v42 = vpop.permute.xlu1 %514  ;;  %2825 = vperm.xlu0 %7231, %v7498_v22  }
  0x9b   :  { %2830 = vperm.xlu1 %7232, %v7503_v23  }
  0x9d   :  { %v7613_v43 = vpop.permute.xlu0 %628 }
  0x9e   :  { %v7615_v44 = vpop.permute.xlu1 %633  ;;  %2815 = vperm.xlu0 %7231, %v7510_v24  }
  0x9f   :  { %2820 = vperm.xlu1 %7232, %v7515_v25  }
  0xa1   :  { %v7619_v45 = vpop.permute.xlu0 %618 }
  0xa2   :  { %v7621_v46 = vpop.permute.xlu1 %623  ;;  %3135 = vperm.xlu0 %7231, %v7388_v1  }
  0xa3   :  { %3140 = vperm.xlu1 %7232, %v7406_v5  }
  0xa5   :  { %v7625_v47 = vpop.permute.xlu0 %969 }
  0xa6   :  { %v7627_v48 = vpop.permute.xlu1 %974  ;;  %3125 = vperm.xlu0 %7231, %v7393_v2  }
  0xa7   :  { %3130 = vperm.xlu1 %7232, %v7414_v8  }
  0xa9   :  { %v7631_v49 = vpop.permute.xlu0 %959 }
  0xaa   :  { %v7633_v50 = vpop.permute.xlu1 %964  ;;  %3234 = vperm.xlu0 %7231, %v7425_v10  }
  0xab   :  { %3239 = vperm.xlu1 %7232, %v7430_v11  }
  0xad   :  { %v7637_v51 = vpop.permute.xlu0 %1068 }
  0xae   :  { %3224 = vperm.xlu0 %7231, %v7436_v12   ;;  %v7640_v52 = vpop.permute.xlu1 %1073 }
  0xaf   :  { %3229 = vperm.xlu1 %7232, %v7442_v13  }
  0xb1   :  { %v7643_v53 = vpop.permute.xlu0 %1058 }
  0xb2   :  { %3341 = vperm.xlu0 %7231, %v7450_v14   ;;  %v7647_v54 = vpop.permute.xlu1 %1063 }
  0xb3   :  { %3346 = vperm.xlu1 %7232, %v7455_v15  }
  0xb5   :  { %v7651_v55 = vpop.permute.xlu0 %1175 }
  0xb6   :  { %3331 = vperm.xlu0 %7231, %v7462_v16   ;;  %v7654_v56 = vpop.permute.xlu1 %1180 }
  0xb7   :  { %3336 = vperm.xlu1 %7232, %v7467_v17  }
  0xb9   :  { %v7657_v57 = vpop.permute.xlu0 %1165 }
  0xba   :  { %3440 = vperm.xlu0 %7231, %v7474_v18   ;;  %v7661_v58 = vpop.permute.xlu1 %1170 }
  0xbb   :  { %3445 = vperm.xlu1 %7232, %v7479_v19   ;;  %9138 = vst [vmem:[#allocation3_spill] sm:$0xff] %v7661_v58 }
  0xbd   :  { %v7665_v59 = vpop.permute.xlu0 %1274 }
  0xbe   :  { %3430 = vperm.xlu0 %7231, %v7486_v20   ;;  %9139 = vst [vmem:[#allocation4_spill] sm:$0xff] %v7665_v59  ;;  %v7668_v60 = vpop.permute.xlu1 %1279 }
  0xbf   :  { %3435 = vperm.xlu1 %7232, %v7491_v21   ;;  %9140 = vst [vmem:[#allocation5_spill] sm:$0xff] %v7668_v60 }
  0xc1   :  { %v7673_v62 = vpop.permute.xlu0 %1264 }
  0xc2   :  { %3547 = vperm.xlu0 %7231, %v7498_v22   ;;  %9141 = vst [vmem:[#allocation6_spill] sm:$0xff] %v7673_v62  ;;  %v7682_v3 = vpop.permute.xlu1 %1269 }
  0xc3   :  { %3552 = vperm.xlu1 %7232, %v7503_v23   ;;  %9142 = vst [vmem:[#allocation7_spill] sm:$0xff] %v7682_v3 }
  0xc5   :  { %v7692_v26 = vpop.permute.xlu0 %1381 }
  0xc6   :  { %3537 = vperm.xlu0 %7231, %v7510_v24   ;;  %9143 = vst [vmem:[#allocation8_spill] sm:$0xff] %v7692_v26  ;;  %v7697_v59 = vpop.permute.xlu1 %1386  ;;  %v7236_v26 = vld [vmem:[%s9134_s2 + $0x8] sm:$0xff]  }
  0xc7   :  { %3542 = vperm.xlu1 %7232, %v7515_v25  }
  0xc9   :  { %v7700_v58 = vpop.permute.xlu0 %1371 }
  0xca   :  { %v7671_v61 = vpop.f32.mrf.mxu0  ;;  %3857 = vperm.xlu0 %7231, %v7388_v1  }
  0xcb   :  { %3862 = vperm.xlu1 %7232, %v7406_v5   ;;  %v187_v6 = vmax.f32 %v7671_v61, 0.0 }
  0xcc   :  { %v7680_v0 = vpop.f32.mrf.mxu0 }
  0xcd   :  { %v185_v60 = vmax.f32 %v7680_v0, 0.0 }
  0xce   :  { %v7684_v4 = vpop.f32.mrf.mxu0  ;;  %3847 = vperm.xlu0 %7231, %v7393_v2  }
  0xcf   :  { %v188_v7 = vmax.f32 %v7684_v4, 0.0  ;;  %3852 = vperm.xlu1 %7232, %v7414_v8  }
  0xd0   :  { %v7690_v9 = vpop.f32.mrf.mxu0 }
  0xd1   :  { %v186_v63 = vmax.f32 %v7690_v9, 0.0  ;;  %v190_v62 = vpack.c.bf16 %v188_v7, %v187_v6  ;;  %v7707_v6 = vpop.permute.xlu1 %1376 }
  0xd2   :  { %3956 = vperm.xlu0 %7231, %v7425_v10  }
  0xd3   :  { %6748 = vmatprep.subr.bf16.mxu1 %v190_v62  ;;  %v189_v3 = vpack.c.bf16 %v186_v63, %v185_v60  ;;  %3961 = vperm.xlu1 %7232, %v7430_v11   ;;  %v7712_v60 = vpop.permute.xlu0 %1691 }
  0xd4   :  { %6749 = vmatpush3.bf16.msra.mxu1 %v190_v62 }
  0xd5   :  { %6750 = vmatprep.subr.bf16.mxu1 %v189_v3  ;;  %v7715_v62 = vpop.permute.xlu1 %1696 }
  0xd6   :  { %3946 = vperm.xlu0 %7231, %v7436_v12   ;;  %9144 = vst [vmem:[#allocation9_spill] sm:$0xff] %v7715_v62 }
  0xd7   :  { %3951 = vperm.xlu1 %7232, %v7442_v13   ;;  %v7718_v7 = vpop.permute.xlu0 %1681 }
  0xd8   :  { %6751 = vmatpush3.bf16.msra.mxu1 %v189_v3  ;;  %9145 = vst [vmem:[#allocation10_spill] sm:$0xff] %v7718_v7 }
  0xd9   :  { %v7722_v3 = vpop.permute.xlu1 %1686 }
  0xda   :  { %4063 = vperm.xlu0 %7231, %v7450_v14   ;;  %9146 = vst [vmem:[#allocation11_spill] sm:$0xff] %v7722_v3 }
  0xdb   :  { %6753 = vmatmul.mubr.msk.bf16.vlgmr.msra.gmra.mxu1 %vm225_vm1, %v7236_v26  ;;  %4068 = vperm.xlu1 %7232, %v7455_v15   ;;  %v7726_v26 = vpop.permute.xlu0 %1790 }
  0xdc   :  { %9147 = vst [vmem:[#allocation12_spill] sm:$0xff] %v7726_v26 }
  0xdd   :  { %v7729_v63 = vpop.permute.xlu1 %1795 }
  0xde   :  { %4053 = vperm.xlu0 %7231, %v7462_v16   ;;  %9148 = vst [vmem:[#allocation13_spill] sm:$0xff] %v7729_v63 }
  0xdf   :  { %4058 = vperm.xlu1 %7232, %v7467_v17   ;;  %v7732_v62 = vpop.permute.xlu0 %1780 }
  0xe0   :  { %9149 = vst [vmem:[#allocation14_spill] sm:$0xff] %v7732_v62 }
  0xe1   :  { %v7736_v7 = vpop.permute.xlu1 %1785 }
  0xe2   :  { %4162 = vperm.xlu0 %7231, %v7474_v18   ;;  %9150 = vst [vmem:[#allocation15_spill] sm:$0xff] %v7736_v7 }
  0xe3   :  { %4167 = vperm.xlu1 %7232, %v7479_v19   ;;  %v7740_v3 = vpop.permute.xlu0 %1897 }
  0xe4   :  { %9151 = vst [vmem:[#allocation16_spill] sm:$0xff] %v7740_v3 }
  0xe5   :  { %v7743_v26 = vpop.permute.xlu1 %1902 }
  0xe6   :  { %4152 = vperm.xlu0 %7231, %v7486_v20   ;;  %9152 = vst [vmem:[#allocation17_spill] sm:$0xff] %v7743_v26 }
  0xe7   :  { %4157 = vperm.xlu1 %7232, %v7491_v21   ;;  %v7746_v63 = vpop.permute.xlu0 %1887 }
  0xe8   :  { %9153 = vst [vmem:[#allocation18_spill] sm:$0xff] %v7746_v63 }
  0xe9   :  { %v7750_v62 = vpop.permute.xlu1 %1892 }
  0xea   :  { %4269 = vperm.xlu0 %7231, %v7498_v22   ;;  %9154 = vst [vmem:[#allocation19_spill] sm:$0xff] %v7750_v62 }
  0xeb   :  { %4274 = vperm.xlu1 %7232, %v7503_v23   ;;  %v7754_v7 = vpop.permute.xlu0 %1996 }
  0xec   :  { %9155 = vst [vmem:[#allocation20_spill] sm:$0xff] %v7754_v7 }
  0xed   :  { %v7757_v3 = vpop.permute.xlu1 %2001 }
  0xee   :  { %4259 = vperm.xlu0 %7231, %v7510_v24   ;;  %9156 = vst [vmem:[#allocation21_spill] sm:$0xff] %v7757_v3 }
  0xef   :  { %4264 = vperm.xlu1 %7232, %v7515_v25   ;;  %v7760_v26 = vpop.permute.xlu0 %1986 }
  0xf0   :  { %9157 = vst [vmem:[#allocation22_spill] sm:$0xff] %v7760_v26 }
  0xf1   :  { %v7764_v63 = vpop.permute.xlu1 %1991 }
  0xf2   :  { %4579 = vperm.xlu0 %7231, %v7388_v1   ;;  %9158 = vst [vmem:[#allocation23_spill] sm:$0xff] %v7764_v63 }
  0xf3   :  { %4584 = vperm.xlu1 %7232, %v7406_v5   ;;  %v7768_v62 = vpop.permute.xlu0 %2103 }
  0xf4   :  { %9159 = vst [vmem:[#allocation24_spill] sm:$0xff] %v7768_v62 }
  0xf5   :  { %v7771_v7 = vpop.permute.xlu1 %2108 }
  0xf6   :  { %4569 = vperm.xlu0 %7231, %v7393_v2   ;;  %9160 = vst [vmem:[#allocation25_spill] sm:$0xff] %v7771_v7 }
  0xf7   :  { %4574 = vperm.xlu1 %7232, %v7414_v8   ;;  %v7774_v3 = vpop.permute.xlu0 %2093 }
  0xf8   :  { %9161 = vst [vmem:[#allocation26_spill] sm:$0xff] %v7774_v3 }
  0xf9   :  { %v7778_v26 = vpop.permute.xlu1 %2098 }
  0xfa   :  { %4678 = vperm.xlu0 %7231, %v7425_v10   ;;  %9162 = vst [vmem:[#allocation27_spill] sm:$0xff] %v7778_v26 }
  0xfb   :  { %4683 = vperm.xlu1 %7232, %v7430_v11   ;;  %v7782_v63 = vpop.permute.xlu0 %2413 }
  0xfd   :  { %v7785_v62 = vpop.permute.xlu1 %2418 }
  0xfe   :  { %4668 = vperm.xlu0 %7231, %v7436_v12  }
  0xff   :  { %4673 = vperm.xlu1 %7232, %v7442_v13   ;;  %v7788_v7 = vpop.permute.xlu0 %2403 }
 0x101   :  { %v7792_v3 = vpop.permute.xlu1 %2408 }
 0x102   :  { %4785 = vperm.xlu0 %7231, %v7450_v14  }
 0x103   :  { %4790 = vperm.xlu1 %7232, %v7455_v15   ;;  %v7796_v26 = vpop.permute.xlu0 %2512 }
 0x106   :  { %4775 = vperm.xlu0 %7231, %v7462_v16  }
 0x107   :  { %4780 = vperm.xlu1 %7232, %v7467_v17  }
 0x10a   :  { %4884 = vperm.xlu0 %7231, %v7474_v18  }
 0x10b   :  { %4889 = vperm.xlu1 %7232, %v7479_v19  }
 0x10e   :  { %4874 = vperm.xlu0 %7231, %v7486_v20  }
 0x10f   :  { %4879 = vperm.xlu1 %7232, %v7491_v21  }
 0x112   :  { %4991 = vperm.xlu0 %7231, %v7498_v22  }
 0x113   :  { %4996 = vperm.xlu1 %7232, %v7503_v23  }
 0x116   :  { %4981 = vperm.xlu0 %7231, %v7510_v24  }
 0x117   :  { %4986 = vperm.xlu1 %7232, %v7515_v25  }
 0x11a   :  { %5301 = vperm.xlu0 %7231, %v7388_v1   ;;  %v7799_v1 = vpop.permute.xlu1 %2517 }
 0x11b   :  { %5306 = vperm.xlu1 %7232, %v7406_v5   ;;  %v7810_v5 = vld [vmem:[%s9133_s1 + $0x18] sm:$0xff]  }
 0x11e   :  { %5291 = vperm.xlu0 %7231, %v7393_v2   ;;  %v7805_v2 = vld [vmem:[%s9133_s1 + $0x10] sm:$0xff]  }
 0x11f   :  { %5296 = vperm.xlu1 %7232, %v7414_v8   ;;  %v7812_v8 = vpop.permute.xlu0 %2502  ;;  %6740 = vmatprep.mubr.msk.bf16.mxu0 %vm81_vm0, %v7805_v2 }
 0x120   :  { %6741 = vmatmul.mubr.msk.bf16.gmra.mxu0 %vm81_vm0, %v7810_v5 }
 0x122   :  { %5400 = vperm.xlu0 %7231, %v7425_v10   ;;  %v7239_v10 = vld [vmem:[%s9134_s2 + $0x10] sm:$0xff]  }
 0x123   :  { %5405 = vperm.xlu1 %7232, %v7430_v11   ;;  %6760 = vmatprep.mubr.msk.bf16.mxu1 %vm225_vm1, %v7239_v10  ;;  %v7824_v11 = vpop.permute.xlu1 %2507  ;;  %v39_v10 = vld [vmem:[%s9136_s4 + $0x8] sm:$0xff] }
 0x126   :  { %5390 = vperm.xlu0 %7231, %v7436_v12   ;;  %v7828_v12 = vpop.permute.xlu0 %2619 }
 0x127   :  { %5395 = vperm.xlu1 %7232, %v7442_v13   ;;  %9163 = vst [vmem:[#allocation28_spill] sm:$0xff] %v7828_v12  ;;  %v7831_v13 = vpop.permute.xlu1 %2624 }
 0x128   :  { %9164 = vst [vmem:[#allocation29_spill] sm:$0xff] %v7831_v13 }
 0x12a   :  { %5507 = vperm.xlu0 %7231, %v7450_v14   ;;  %v7834_v14 = vpop.permute.xlu0 %2609 }
 0x12b   :  { %5512 = vperm.xlu1 %7232, %v7455_v15   ;;  %9165 = vst [vmem:[#allocation30_spill] sm:$0xff] %v7834_v14  ;;  %v7838_v15 = vpop.permute.xlu1 %2614 }
 0x12c   :  { %9166 = vst [vmem:[#allocation31_spill] sm:$0xff] %v7838_v15 }
 0x12e   :  { %5497 = vperm.xlu0 %7231, %v7462_v16   ;;  %v7842_v16 = vpop.permute.xlu0 %2718 }
 0x12f   :  { %5502 = vperm.xlu1 %7232, %v7467_v17   ;;  %9167 = vst [vmem:[#allocation32_spill] sm:$0xff] %v7842_v16  ;;  %v7845_v17 = vpop.permute.xlu1 %2723 }
 0x130   :  { %9168 = vst [vmem:[#allocation33_spill] sm:$0xff] %v7845_v17 }
 0x132   :  { %5606 = vperm.xlu0 %7231, %v7474_v18   ;;  %v5981_v18 = vld [vmem:[%s9131_s3 + $0xa0] sm:$0xff] }
 0x133   :  { %5611 = vperm.xlu1 %7232, %v7479_v19   ;;  %v5982_v19 = vld [vmem:[%s9131_s3 + $0xa8] sm:$0xff] }
 0x136   :  { %5596 = vperm.xlu0 %7231, %v7486_v20   ;;  %v7854_v20 = vpop.permute.xlu0 %2708 }
 0x137   :  { %5601 = vperm.xlu1 %7232, %v7491_v21   ;;  %9169 = vst [vmem:[#allocation34_spill] sm:$0xff] %v7854_v20  ;;  %v5983_v21 = vld [vmem:[%s9131_s3 + $0xb0] sm:$0xff]  ;;  %v41_v20 = vld [vmem:[%s9136_s4 + $0x18] sm:$0xff] }
 0x13a   :  { %5713 = vperm.xlu0 %7231, %v7498_v22   ;;  %v7862_v22 = vld [vmem:[%s9131_s3 + $0xb8] sm:$0xff] }
 0x13b   :  { %5718 = vperm.xlu1 %7232, %v7503_v23   ;;  %v7864_v23 = vpop.permute.xlu1 %2713 }
 0x13c   :  { %9170 = vst [vmem:[#allocation35_spill] sm:$0xff] %v7864_v23  ;;  %v40_v23 = vld [vmem:[%s9136_s4 + $0x10] sm:$0xff] }
 0x13e   :  { %5703 = vperm.xlu0 %7231, %v7510_v24   ;;  %v38_v24 = vld [vmem:[%s9136_s4] sm:$0xff] }
 0x13f   :  { %5708 = vperm.xlu1 %7232, %v7515_v25   ;;  %v7870_v25 = vpop.permute.xlu0 %2825  ;;  %v7875_v17 = vpop.permute.xlu1 %2830 }
 0x140   :  { %9171 = vst [vmem:[#allocation36_spill] sm:$0xff] %v7870_v25  ;;  %9172 = vst [vmem:[#allocation37_spill] sm:$0xff] %v7875_v17  ;;  %v42_v25 = vld [vmem:[#allocation2] sm:$0x1] }
 0x142   :  { %719 = vperm.xlu0 %7231, %v5981_v18  }
 0x143   :  { %724 = vperm.xlu1 %7232, %v5982_v19   ;;  %v7883_v16 = vpop.permute.xlu0 %2815  ;;  %v7885_v15 = vpop.permute.xlu1 %2820 }
 0x144   :  { %9173 = vst [vmem:[#allocation38_spill] sm:$0xff] %v7883_v16  ;;  %9174 = vst [vmem:[#allocation39_spill] sm:$0xff] %v7885_v15 }
 0x146   :  { %729 = vperm.xlu0 %7231, %v5983_v21  }
 0x147   :  { %734 = vperm.xlu1 %7232, %v7862_v22  }
 0x14a   :  { %812 = vperm.xlu0 %7231, %v38_v24   ;;  %v7887_v24 = vpop.permute.xlu0 %3135 }
 0x14b   :  { %817 = vperm.xlu1 %7232, %v39_v10   ;;  %9175 = vst [vmem:[#allocation40_spill] sm:$0xff] %v7887_v24  ;;  %v7889_v10 = vpop.permute.xlu1 %3140 }
 0x14c   :  { %9176 = vst [vmem:[#allocation41_spill] sm:$0xff] %v7889_v10 }
 0x14e   :  { %822 = vperm.xlu0 %7231, %v40_v23   ;;  %v7891_v17 = vpop.permute.xlu0 %3125 }
 0x14f   :  { %827 = vperm.xlu1 %7232, %v41_v20   ;;  %9177 = vst [vmem:[#allocation42_spill] sm:$0xff] %v7891_v17  ;;  %v7894_v13 = vpop.permute.xlu1 %3130 }
 0x150   :  { %9178 = vst [vmem:[#allocation43_spill] sm:$0xff] %v7894_v13 }
 0x152   :  { %845 = vperm.xlu0 %7231, %v42_v25   ;;  %v7896_v20 = vpop.permute.xlu0 %3234 }
 0x153   :  { %1470 = vperm.xlu1 %7232, %v5981_v18   ;;  %9179 = vst [vmem:[#allocation44_spill] sm:$0xff] %v7896_v20  ;;  %v7898_v23 = vpop.permute.xlu1 %3239 }
 0x154   :  { %9180 = vst [vmem:[#allocation45_spill] sm:$0xff] %v7898_v23 }
 0x156   :  { %1475 = vperm.xlu0 %7231, %v5982_v19   ;;  %v7900_v25 = vpop.permute.xlu0 %3224 }
 0x157   :  { %1480 = vperm.xlu1 %7232, %v5983_v21   ;;  %9181 = vst [vmem:[#allocation46_spill] sm:$0xff] %v7900_v25  ;;  %v7902_v10 = vpop.permute.xlu1 %3229 }
 0x158   :  { %9182 = vst [vmem:[#allocation47_spill] sm:$0xff] %v7902_v10 }
 0x15a   :  { %1485 = vperm.xlu0 %7231, %v7862_v22   ;;  %v7904_v17 = vpop.permute.xlu0 %3341 }
 0x15b   :  { %2192 = vperm.xlu1 %7232, %v5981_v18   ;;  %9183 = vst [vmem:[#allocation48_spill] sm:$0xff] %v7904_v17  ;;  %v7906_v13 = vpop.permute.xlu1 %3346 }
 0x15c   :  { %9184 = vst [vmem:[#allocation49_spill] sm:$0xff] %v7906_v13 }
 0x15e   :  { %2197 = vperm.xlu0 %7231, %v5982_v19   ;;  %v7908_v24 = vpop.permute.xlu0 %3331 }
 0x15f   :  { %2914 = vperm.xlu1 %7232, %v5981_v18   ;;  %9185 = vst [vmem:[#allocation50_spill] sm:$0xff] %v7908_v24  ;;  %v7910_v23 = vpop.permute.xlu1 %3336 }
 0x160   :  { %9186 = vst [vmem:[#allocation51_spill] sm:$0xff] %v7910_v23 }
 0x162   :  { %2919 = vperm.xlu0 %7231, %v5982_v19   ;;  %v7912_v25 = vpop.permute.xlu0 %3440 }
 0x163   :  { %3636 = vperm.xlu1 %7232, %v5981_v18   ;;  %9187 = vst [vmem:[#allocation52_spill] sm:$0xff] %v7912_v25  ;;  %v7914_v10 = vpop.permute.xlu1 %3445 }
 0x164   :  { %9188 = vst [vmem:[#allocation53_spill] sm:$0xff] %v7914_v10 }
 0x166   :  { %3641 = vperm.xlu0 %7231, %v5982_v19   ;;  %v7916_v20 = vpop.permute.xlu0 %3430 }
 0x167   :  { %4358 = vperm.xlu1 %7232, %v5981_v18   ;;  %9189 = vst [vmem:[#allocation54_spill] sm:$0xff] %v7916_v20 }
 0x16a   :  { %4363 = vperm.xlu0 %7231, %v5982_v19  }
 0x16b   :  { %5080 = vperm.xlu1 %7232, %v5981_v18  }
 0x16e   :  { %5085 = vperm.xlu0 %7231, %v5982_v19  }
 0x16f   :  { %5802 = vperm.xlu1 %7232, %v5981_v18   ;;  %v7919_v18 = vpop.permute.xlu1 %3435 }
 0x170   :  { %9190 = vst [vmem:[#allocation55_spill] sm:$0xff] %v7919_v18 }
 0x172   :  { %5807 = vperm.xlu0 %7231, %v5982_v19   ;;  %v7923_v19 = vpop.permute.xlu0 %3547 }
 0x173   :  { %2202 = vperm.xlu1 %7232, %v5983_v21   ;;  %9191 = vst [vmem:[#allocation56_spill] sm:$0xff] %v7923_v19  ;;  %v7926_v25 = vpop.permute.xlu1 %3552 }
 0x174   :  { %9192 = vst [vmem:[#allocation57_spill] sm:$0xff] %v7926_v25 }
 0x176   :  { %2924 = vperm.xlu0 %7231, %v5983_v21   ;;  %v7929_v10 = vpop.permute.xlu0 %3537 }
 0x177   :  { %3646 = vperm.xlu1 %7232, %v5983_v21   ;;  %9193 = vst [vmem:[#allocation58_spill] sm:$0xff] %v7929_v10 }
 0x17a   :  { %4368 = vperm.xlu0 %7231, %v5983_v21  }
 0x17b   :  { %5090 = vperm.xlu1 %7232, %v5983_v21  }
 0x17e   :  { %5812 = vperm.xlu0 %7231, %v5983_v21  }
 0x17f   :  { %2207 = vperm.xlu1 %7232, %v7862_v22  }
 0x182   :  { %2929 = vperm.xlu0 %7231, %v7862_v22  }
 0x183   :  { %3651 = vperm.xlu1 %7232, %v7862_v22  }
 0x186   :  { %4373 = vperm.xlu0 %7231, %v7862_v22  }
 0x187   :  { %5095 = vperm.xlu1 %7232, %v7862_v22  }
 0x18a   :  { %5817 = vperm.xlu0 %7231, %v7862_v22  }
 0x19b   :  { %v6754_v21 = vpop.f32.mrf.mxu1 }
 0x19c   :  { %v275_v18 = vadd.f32 %v6754_v21, %v7565_v27  ;;  %v7240_v27 = vld [vmem:[%s9134_s2 + $0x18] sm:$0xff]  }
 0x19d   :  { %v266_v20 = vpop.f32.mrf.mxu1 }
 0x19e   :  { %v267_v13 = vadd.f32 %v266_v20, %v7567_v28  ;;  %v288_v17 = vmax.f32 %v275_v18, 0.0  ;;  %v7241_v28 = vld [vmem:[%s9134_s2 + $0x20] sm:$0xff]  }
 0x19f   :  { %v6755_v23 = vpop.f32.mrf.mxu1 }
 0x1a0   :  { %v278_v24 = vadd.f32 %v6755_v23, %v7571_v29  ;;  %v286_v16 = vmax.f32 %v267_v13, 0.0 }
 0x1a1   :  { %v269_v19 = vpop.f32.mrf.mxu1 }
 0x1a2   :  { %v289_v15 = vmax.f32 %v278_v24, 0.0  ;;  %v270_v25 = vadd.f32 %v269_v19, %v7573_v30 }
 0x1a4   :  { %v291_v14 = vpack.c.bf16 %v289_v15, %v288_v17  ;;  %v287_v12 = vmax.f32 %v270_v25, 0.0 }
 0x1a6   :  { %6756 = vmatprep.subr.bf16.mxu1 %v291_v14  ;;  %v290_v10 = vpack.c.bf16 %v287_v12, %v286_v16 }
 0x1a7   :  { %6757 = vmatpush3.bf16.msra.mxu1 %v291_v14 }
 0x1a8   :  { %6758 = vmatprep.subr.bf16.mxu1 %v290_v10 }
 0x1ab   :  { %6759 = vmatpush3.bf16.msra.mxu1 %v290_v10 }
 0x1ae   :  { %6761 = vmatmul.mubr.msk.bf16.vlgmr.msra.gmra.mxu1 %vm225_vm1, %v7240_v27 }
 0x1af   :  { %6768 = vmatprep.mubr.msk.bf16.mxu1 %vm225_vm1, %v7241_v28 }
 0x1e0   :  { %v6742_v29 = vpop.f32.mrf.mxu0 }
 0x1e2   :  { %v150_v12 = vpop.f32.mrf.mxu0 }
 0x1e4   :  { %v6743_v10 = vpop.f32.mrf.mxu0 }
 0x1e6   :  { %v153_v27 = vpop.f32.mrf.mxu0 }
 0x26e   :  { %v6762_v30 = vpop.f32.mrf.mxu1 }
 0x26f   :  { %v376_v13 = vadd.f32 %v6762_v30, %v7577_v31 }
 0x270   :  { %v367_v14 = vpop.f32.mrf.mxu1 }
 0x271   :  { %v384_v15 = vadd.f32 %v7671_v61, %v376_v13  ;;  %v368_v16 = vadd.f32 %v367_v14, %v7583_v33 }
 0x272   :  { %v6763_v17 = vpop.f32.mrf.mxu1 }
 0x273   :  { %v382_v22 = vadd.f32 %v368_v16, %v7680_v0  ;;  %v379_v24 = vadd.f32 %v6763_v17, %v7579_v32  ;;  %v388_v23 = vadd.f32 %v6742_v29, %v384_v15  ;;  %v7245_v29 = vld [vmem:[%s9134_s2 + $0x30] sm:$0xff]  }
 0x274   :  { %v370_v20 = vpop.f32.mrf.mxu1 }
 0x275   :  { %v385_v25 = vadd.f32 %v7684_v4, %v379_v24  ;;  %v371_v18 = vadd.f32 %v370_v20, %v7585_v34  ;;  %v386_v19 = vadd.f32 %v382_v22, %v150_v12  ;;  %v397_v28 = vmax.f32 %v388_v23, 0.0  ;;  %v7242_v4 = vld [vmem:[%s9134_s2 + $0x28] sm:$0xff]   ;;  %v7959_v34 = vld [vmem:[%s9133_s1 + $0x20] sm:$0xff]  }
 0x276   :  { %6744 = vmatprep.mubr.msk.bf16.mxu0 %vm81_vm0, %v7959_v34 }
 0x277   :  { %v389_v31 = vadd.f32 %v6743_v10, %v385_v25  ;;  %v383_v21 = vadd.f32 %v371_v18, %v7690_v9  ;;  %v395_v13 = vmax.f32 %v386_v19, 0.0  ;;  %v7964_v9 = vld [vmem:[%s9133_s1 + $0x28] sm:$0xff]  }
 0x278   :  { %6745 = vmatmul.mubr.msk.bf16.gmra.mxu0 %vm81_vm0, %v7964_v9 }
 0x279   :  { %v387_v61 = vadd.f32 %v383_v21, %v153_v27  ;;  %v398_v33 = vmax.f32 %v389_v31, 0.0  ;;  %6776 = vmatprep.mubr.msk.bf16.mxu0 %vm225_vm1, %v7245_v29 }
 0x27b   :  { %v400_v30 = vpack.c.bf16 %v398_v33, %v397_v28  ;;  %v396_v0 = vmax.f32 %v387_v61, 0.0 }
 0x27d   :  { %6764 = vmatprep.subr.bf16.mxu1 %v400_v30  ;;  %v399_v32 = vpack.c.bf16 %v396_v0, %v395_v13 }
 0x27e   :  { %6765 = vmatpush3.bf16.msra.mxu1 %v400_v30 }
 0x27f   :  { %6766 = vmatprep.subr.bf16.mxu1 %v399_v32 }
 0x282   :  { %6767 = vmatpush3.bf16.msra.mxu1 %v399_v32 }
 0x285   :  { %6769 = vmatmul.mubr.msk.bf16.vlgmr.msra.gmra.mxu1 %vm225_vm1, %v7242_v4 }
 0x345   :  { %v6770_v12 = vpop.f32.mrf.mxu1 }
 0x346   :  { %v485_v15 = vadd.f32 %v6770_v12, %v7589_v35  ;;  %v7246_v35 = vld [vmem:[%s9134_s2 + $0x38] sm:$0xff]  }
 0x347   :  { %v476_v14 = vpop.f32.mrf.mxu1 }
 0x348   :  { %v477_v17 = vadd.f32 %v476_v14, %v7595_v37  ;;  %v498_v10 = vmax.f32 %v485_v15, 0.0  ;;  %v6746_v37 = vpop.f32.mrf.mxu0 }
 0x349   :  { %v6771_v16 = vpop.f32.mrf.mxu1 }
 0x34a   :  { %v488_v22 = vadd.f32 %v6771_v16, %v7591_v36  ;;  %v496_v18 = vmax.f32 %v477_v17, 0.0  ;;  %v7247_v36 = vld [vmem:[%s9134_s2 + $0x40] sm:$0xff]  }
 0x34b   :  { %v479_v24 = vpop.f32.mrf.mxu1  ;;  %6784 = vmatprep.mubr.msk.bf16.mxu1 %vm225_vm1, %v7247_v36  ;;  %v7249_v36 = vld [vmem:[%s9134_s2 + $0x50] sm:$0xff]  }
 0x34c   :  { %v499_v20 = vmax.f32 %v488_v22, 0.0  ;;  %v480_v25 = vadd.f32 %v479_v24, %v7597_v38  ;;  %v166_v38 = vpop.f32.mrf.mxu0 }
 0x34e   :  { %v501_v21 = vpack.c.bf16 %v499_v20, %v498_v10  ;;  %v497_v27 = vmax.f32 %v480_v25, 0.0  ;;  %v6747_v33 = vpop.f32.mrf.mxu0 }
 0x350   :  { %6772 = vmatprep.subr.bf16.mxu0 %v501_v21  ;;  %v500_v28 = vpack.c.bf16 %v497_v27, %v496_v18  ;;  %v169_v30 = vpop.f32.mrf.mxu0  ;;  %v7248_v27 = vld [vmem:[%s9134_s2 + $0x48] sm:$0xff]  }
 0x351   :  { %6773 = vmatpush3.bf16.msra.mxu0 %v501_v21 }
 0x352   :  { %6774 = vmatprep.subr.bf16.mxu0 %v500_v28 }
 0x355   :  { %6775 = vmatpush3.bf16.msra.mxu0 %v500_v28  ;;  %v8015_v28 = vld [vmem:[%s9133_s1] sm:$0xff]  }
 0x358   :  { %6777 = vmatmul.mubr.msk.bf16.vlgmr.msra.gmra.mxu0 %vm225_vm1, %v7246_v35  ;;  %v8022_v35 = vld [vmem:[%s9133_s1 + $0x8] sm:$0xff]  }
 0x359   :  { %6792 = vmatprep.mubr.msk.bf16.mxu0 %vm225_vm1, %v7249_v36 }
 0x418   :  { %v6778_v13 = vpop.f32.mrf.mxu0 }
 0x419   :  { %v586_v0 = vadd.f32 %v6778_v13, %v7601_v39 }
 0x41a   :  { %v577_v32 = vpop.f32.mrf.mxu0 }
 0x41b   :  { %v594_v4 = vadd.f32 %v586_v0, %v388_v23  ;;  %v578_v29 = vadd.f32 %v577_v32, %v7607_v41 }
 0x41c   :  { %v6779_v12 = vpop.f32.mrf.mxu0 }
 0x41d   :  { %v592_v14 = vadd.f32 %v578_v29, %v386_v19  ;;  %v589_v15 = vadd.f32 %v6779_v12, %v7603_v40  ;;  %v7989_v17 = vadd.f32 %v6746_v37, %v594_v4 }
 0x41e   :  { %v580_v16 = vpop.f32.mrf.mxu0 }
 0x41f   :  { %v595_v22 = vadd.f32 %v589_v15, %v389_v31  ;;  %v581_v24 = vadd.f32 %v580_v16, %v7609_v42  ;;  %v7992_v10 = vadd.f32 %v592_v14, %v166_v38  ;;  %v607_v23 = vmax.f32 %v7989_v17, 0.0  ;;  %v854_v42 = vld [vmem:[%s9132_s0 + $0x4] sm:$0xf] }
 0x420   :  { %v855_v31 = vld [vmem:[%s9132_s0 + $0x24] sm:$0xf] }
 0x421   :  { %v7994_v20 = vadd.f32 %v6747_v33, %v595_v22  ;;  %v593_v25 = vadd.f32 %v581_v24, %v387_v61  ;;  %v605_v40 = vmax.f32 %v7992_v10, 0.0  ;;  %v5989_v21 = vcombine.low %v854_v42, %v855_v31  ;;  %v8062_v31 = vpop.permute.xlu1 %3542 }
 0x423   :  { %v7996_v39 = vadd.f32 %v593_v25, %v169_v30  ;;  %v608_v41 = vmax.f32 %v7994_v20, 0.0 }
 0x425   :  { %v610_v19 = vpack.c.bf16 %v608_v41, %v607_v23  ;;  %v606_v18 = vmax.f32 %v7996_v39, 0.0 }
 0x427   :  { %6780 = vmatprep.subr.bf16.mxu1 %v610_v19  ;;  %v609_v61 = vpack.c.bf16 %v606_v18, %v605_v40  ;;  %v7251_v40 = vld [vmem:[%s9134_s2] sm:$0xff]  }
 0x428   :  { %6781 = vmatpush3.bf16.msra.mxu1 %v610_v19  ;;  %v7250_v19 = vld [vmem:[%s9134_s2 + $0x58] sm:$0xff]  }
 0x429   :  { %6782 = vmatprep.subr.bf16.mxu1 %v609_v61 }
 0x42c   :  { %6783 = vmatpush3.bf16.msra.mxu1 %v609_v61  ;;  %v7252_v61 = vld [vmem:[%s9134_s2 + $0x8] sm:$0xff]  }
 0x42d   :  { %6796 = vmatprep.subr.bf16.mxu1 %v5989_v21 }
 0x42f   :  { %6785 = vmatmul.mubr.msk.bf16.vlgmr.msra.gmra.mxu1 %vm225_vm1, %v7248_v27  ;;  %v8070_v27 = vpop.permute.xlu1 %3862 }
 0x430   :  { %6797 = vmatpush3.bf16.msra.mxu1 %v5989_v21  ;;  %6798 = vmatprep.mubr.msk.bf16.mxu1 %vm81_vm0, %v8015_v28  ;;  %v8067_v21 = vpop.permute.xlu0 %3857 }
 0x434   :  { %v8072_v36 = vpop.permute.xlu0 %3847 }
 0x437   :  { %6799 = vmatmul.mubr.msk.bf16.vlgmr.msra.gmra.mxu1 %vm81_vm0, %v8022_v35 }
 0x438   :  { %6802 = vmatprep.mubr.msk.bf16.mxu1 %vm81_vm0, %v7805_v2 }
 0x43f   :  { %6803 = vmatmul.mubr.msk.bf16.gmra.mxu1 %vm81_vm0, %v7810_v5 }
 0x440   :  { %6806 = vmatprep.mubr.msk.bf16.mxu1 %vm81_vm0, %v7959_v34 }
 0x447   :  { %6807 = vmatmul.mubr.msk.bf16.gmra.mxu1 %vm81_vm0, %v7964_v9 }
 0x4ef   :  { %v6786_v37 = vpop.f32.mrf.mxu1 }
 0x4f0   :  { %v695_v33 = vadd.f32 %v6786_v37, %v7613_v43  ;;  %v8074_v37 = vpop.permute.xlu1 %3852 }
 0x4f1   :  { %v686_v38 = vpop.f32.mrf.mxu1 }
 0x4f2   :  { %v687_v13 = vadd.f32 %v686_v38, %v7619_v45  ;;  %v708_v4 = vmax.f32 %v695_v33, 0.0  ;;  %v8076_v38 = vpop.permute.xlu0 %3956 }
 0x4f3   :  { %v6787_v30 = vpop.f32.mrf.mxu1 }
 0x4f4   :  { %v698_v0 = vadd.f32 %v6787_v30, %v7615_v44  ;;  %v706_v15 = vmax.f32 %v687_v13, 0.0  ;;  %v8078_v33 = vpop.permute.xlu1 %3961 }
 0x4f5   :  { %v689_v32 = vpop.f32.mrf.mxu1  ;;  %9194 = vst [vmem:[#allocation59_spill] sm:$0xff] %v8078_v33  ;;  %v848_v33 = vlaneseq }
 0x4f6   :  { %v709_v29 = vmax.f32 %v698_v0, 0.0  ;;  %v690_v12 = vadd.f32 %v689_v32, %v7621_v46  ;;  %v8080_v30 = vpop.permute.xlu0 %3946 }
 0x4f7   :  { %v8042_v14 = vpop.f32.mrf.mxu1 }
 0x4f8   :  { %v711_v16 = vpack.c.bf16 %v709_v29, %v708_v4  ;;  %v707_v22 = vmax.f32 %v690_v12, 0.0  ;;  %v949_v45 = vmax.f32 %v8042_v14, 0.0  ;;  %v8082_v13 = vpop.permute.xlu1 %3951 }
 0x4f9   :  { %v8044_v24 = vpop.f32.mrf.mxu1  ;;  %9195 = vst [vmem:[#allocation60_spill] sm:$0xff] %v8082_v13 }
 0x4fa   :  { %6788 = vmatprep.subr.bf16.mxu0 %v711_v16  ;;  %v710_v25 = vpack.c.bf16 %v707_v22, %v706_v15  ;;  %v947_v18 = vmax.f32 %v8044_v24, 0.0  ;;  %v8084_v0 = vpop.permute.xlu0 %4063 }
 0x4fb   :  { %6789 = vmatpush3.bf16.msra.mxu0 %v711_v16  ;;  %v8046_v43 = vpop.f32.mrf.mxu1  ;;  %9196 = vst [vmem:[#allocation61_spill] sm:$0xff] %v8084_v0 }
 0x4fc   :  { %v950_v44 = vmax.f32 %v8046_v43, 0.0  ;;  %6790 = vmatprep.subr.bf16.mxu0 %v710_v25  ;;  %v8086_v32 = vpop.permute.xlu1 %4068 }
 0x4fd   :  { %v8050_v23 = vpop.f32.mrf.mxu1  ;;  %9197 = vst [vmem:[#allocation62_spill] sm:$0xff] %v8086_v32 }
 0x4fe   :  { %v952_v46 = vpack.c.bf16 %v950_v44, %v949_v45  ;;  %v948_v41 = vmax.f32 %v8050_v23, 0.0  ;;  %v8088_v4 = vpop.permute.xlu0 %4053 }
 0x4ff   :  { %6791 = vmatpush3.bf16.msra.mxu0 %v710_v25  ;;  %9198 = vst [vmem:[#allocation63_spill] sm:$0xff] %v8088_v4 }
 0x500   :  { %6810 = vmatprep.subr.bf16.mxu0 %v952_v46  ;;  %v951_v42 = vpack.c.bf16 %v948_v41, %v947_v18  ;;  %v8090_v29 = vpop.permute.xlu1 %4058 }
 0x501   :  { %9199 = vst [vmem:[#allocation64_spill] sm:$0xff] %v8090_v29 }
 0x502   :  { %6793 = vmatmul.mubr.msk.bf16.vlgmr.msra.gmra.mxu0 %vm225_vm1, %v7250_v19  ;;  %v8092_v12 = vpop.permute.xlu0 %4162 }
 0x503   :  { %6811 = vmatpush3.bf16.msra.mxu0 %v952_v46  ;;  %6814 = vmatprep.mubr.msk.bf16.mxu0 %vm225_vm1, %v7251_v40  ;;  %9200 = vst [vmem:[#allocation65_spill] sm:$0xff] %v8092_v12 }
 0x504   :  { %6812 = vmatprep.subr.bf16.mxu0 %v951_v42  ;;  %v8094_v15 = vpop.permute.xlu1 %4167 }
 0x505   :  { %9201 = vst [vmem:[#allocation66_spill] sm:$0xff] %v8094_v15 }
 0x506   :  { %v8096_v16 = vpop.permute.xlu0 %4152 }
 0x507   :  { %6813 = vmatpush3.bf16.msra.mxu0 %v951_v42  ;;  %9202 = vst [vmem:[#allocation67_spill] sm:$0xff] %v8096_v16 }
 0x508   :  { %v8098_v22 = vpop.permute.xlu1 %4157 }
 0x509   :  { %9203 = vst [vmem:[#allocation68_spill] sm:$0xff] %v8098_v22 }
 0x50a   :  { %6815 = vmatmul.mubr.msk.bf16.vlgmr.msra.gmra.mxu0 %vm225_vm1, %v7252_v61  ;;  %v8100_v25 = vpop.permute.xlu0 %4269 }
 0x50b   :  { %9204 = vst [vmem:[#allocation69_spill] sm:$0xff] %v8100_v25 }
 0x50c   :  { %v8102_v45 = vpop.permute.xlu1 %4274 }
 0x50d   :  { %9205 = vst [vmem:[#allocation70_spill] sm:$0xff] %v8102_v45 }
 0x50e   :  { %v8104_v44 = vpop.permute.xlu0 %4259 }
 0x50f   :  { %9206 = vst [vmem:[#allocation71_spill] sm:$0xff] %v8104_v44 }
 0x510   :  { %v8106_v46 = vpop.permute.xlu1 %4264 }
 0x511   :  { %9207 = vst [vmem:[#allocation72_spill] sm:$0xff] %v8106_v46  ;;  %v7253_v46 = vld [vmem:[%s9134_s2 + $0x10] sm:$0xff]  }
 0x512   :  { %v8108_v41 = vpop.permute.xlu0 %4579  ;;  %6822 = vmatprep.mubr.msk.bf16.mxu0 %vm225_vm1, %v7253_v46 }
 0x513   :  { %9208 = vst [vmem:[#allocation73_spill] sm:$0xff] %v8108_v41 }
 0x514   :  { %v8110_v19 = vpop.permute.xlu1 %4584 }
 0x515   :  { %9209 = vst [vmem:[#allocation74_spill] sm:$0xff] %v8110_v19 }
 0x516   :  { %v8112_v40 = vpop.permute.xlu0 %4569 }
 0x517   :  { %9210 = vst [vmem:[#allocation75_spill] sm:$0xff] %v8112_v40 }
 0x518   :  { %v8114_v18 = vpop.permute.xlu1 %4574 }
 0x519   :  { %9211 = vst [vmem:[#allocation76_spill] sm:$0xff] %v8114_v18 }
 0x51a   :  { %v8116_v42 = vpop.permute.xlu0 %4678 }
 0x51b   :  { %9212 = vst [vmem:[#allocation77_spill] sm:$0xff] %v8116_v42 }
 0x51c   :  { %v8118_v61 = vpop.permute.xlu1 %4683 }
 0x51d   :  { %9213 = vst [vmem:[#allocation78_spill] sm:$0xff] %v8118_v61 }
 0x51e   :  { %v8120_v22 = vpop.permute.xlu0 %4668 }
 0x51f   :  { %9214 = vst [vmem:[#allocation79_spill] sm:$0xff] %v8120_v22 }
 0x520   :  { %v8122_v25 = vpop.permute.xlu1 %4673 }
 0x521   :  { %9215 = vst [vmem:[#allocation80_spill] sm:$0xff] %v8122_v25 }
 0x522   :  { %v8128_v41 = vpop.permute.xlu0 %4785 }
 0x523   :  { %9216 = vst [vmem:[#allocation81_spill] sm:$0xff] %v8128_v41 }
 0x524   :  { %v8130_v19 = vpop.permute.xlu1 %4790 }
 0x525   :  { %9217 = vst [vmem:[#allocation82_spill] sm:$0xff] %v8130_v19 }
 0x526   :  { %v8132_v40 = vpop.permute.xlu0 %4775 }
 0x527   :  { %9218 = vst [vmem:[#allocation83_spill] sm:$0xff] %v8132_v40 }
 0x528   :  { %v8134_v18 = vpop.permute.xlu1 %4780 }
 0x529   :  { %9219 = vst [vmem:[#allocation84_spill] sm:$0xff] %v8134_v18 }
 0x52a   :  { %v8136_v42 = vpop.permute.xlu0 %4884 }
 0x52b   :  { %9220 = vst [vmem:[#allocation85_spill] sm:$0xff] %v8136_v42 }
 0x52c   :  { %v8138_v61 = vpop.permute.xlu1 %4889 }
 0x52d   :  { %9221 = vst [vmem:[#allocation86_spill] sm:$0xff] %v8138_v61 }
 0x52e   :  { %v8140_v22 = vpop.permute.xlu0 %4874 }
 0x52f   :  { %9222 = vst [vmem:[#allocation87_spill] sm:$0xff] %v8140_v22 }
 0x530   :  { %v8142_v25 = vpop.permute.xlu1 %4879 }
 0x531   :  { %9223 = vst [vmem:[#allocation88_spill] sm:$0xff] %v8142_v25 }
 0x532   :  { %v8144_v45 = vpop.permute.xlu0 %4991 }
 0x533   :  { %9224 = vst [vmem:[#allocation89_spill] sm:$0xff] %v8144_v45 }
 0x534   :  { %v8146_v44 = vpop.permute.xlu1 %4996 }
 0x535   :  { %9225 = vst [vmem:[#allocation90_spill] sm:$0xff] %v8146_v44 }
 0x536   :  { %v8148_v46 = vpop.permute.xlu0 %4981 }
 0x537   :  { %9226 = vst [vmem:[#allocation91_spill] sm:$0xff] %v8148_v46 }
 0x538   :  { %v8150_v41 = vpop.permute.xlu1 %4986 }
 0x539   :  { %9227 = vst [vmem:[#allocation92_spill] sm:$0xff] %v8150_v41 }
 0x53a   :  { %v8152_v19 = vpop.permute.xlu0 %5301 }
 0x53b   :  { %9228 = vst [vmem:[#allocation93_spill] sm:$0xff] %v8152_v19 }
 0x53c   :  { %v8154_v40 = vpop.permute.xlu1 %5306 }
 0x53d   :  { %9229 = vst [vmem:[#allocation94_spill] sm:$0xff] %v8154_v40 }
 0x53e   :  { %v8156_v18 = vpop.permute.xlu0 %5291 }
 0x53f   :  { %9230 = vst [vmem:[#allocation95_spill] sm:$0xff] %v8156_v18 }
 0x540   :  { %v8158_v42 = vpop.permute.xlu1 %5296 }
 0x541   :  { %9231 = vst [vmem:[#allocation96_spill] sm:$0xff] %v8158_v42 }
 0x542   :  { %v8160_v61 = vpop.permute.xlu0 %5400 }
 0x543   :  { %9232 = vst [vmem:[#allocation97_spill] sm:$0xff] %v8160_v61 }
 0x544   :  { %v8162_v22 = vpop.permute.xlu1 %5405 }
 0x545   :  { %9233 = vst [vmem:[#allocation98_spill] sm:$0xff] %v8162_v22 }
 0x546   :  { %v8164_v25 = vpop.permute.xlu0 %5390 }
 0x547   :  { %9234 = vst [vmem:[#allocation99_spill] sm:$0xff] %v8164_v25 }
 0x548   :  { %v8166_v45 = vpop.permute.xlu1 %5395 }
 0x549   :  { %9235 = vst [vmem:[#allocation100_spill] sm:$0xff] %v8166_v45 }
 0x54a   :  { %v8168_v44 = vpop.permute.xlu0 %5507 }
 0x54b   :  { %9236 = vst [vmem:[#allocation101_spill] sm:$0xff] %v8168_v44 }
 0x54c   :  { %v8170_v46 = vpop.permute.xlu1 %5512 }
 0x54d   :  { %9237 = vst [vmem:[#allocation102_spill] sm:$0xff] %v8170_v46 }
 0x54e   :  { %v8172_v41 = vpop.permute.xlu0 %5497 }
 0x54f   :  { %9238 = vst [vmem:[#allocation103_spill] sm:$0xff] %v8172_v41 }
 0x550   :  { %v8174_v19 = vpop.permute.xlu1 %5502 }
 0x551   :  { %9239 = vst [vmem:[#allocation104_spill] sm:$0xff] %v8174_v19 }
 0x552   :  { %v8176_v40 = vpop.permute.xlu0 %5606 }
 0x553   :  { %9240 = vst [vmem:[#allocation105_spill] sm:$0xff] %v8176_v40 }
 0x554   :  { %v8178_v18 = vpop.permute.xlu1 %5611 }
 0x555   :  { %9241 = vst [vmem:[#allocation106_spill] sm:$0xff] %v8178_v18 }
 0x556   :  { %v8180_v42 = vpop.permute.xlu0 %5596 }
 0x557   :  { %9242 = vst [vmem:[#allocation107_spill] sm:$0xff] %v8180_v42 }
 0x558   :  { %v8182_v61 = vpop.permute.xlu1 %5601 }
 0x559   :  { %9243 = vst [vmem:[#allocation108_spill] sm:$0xff] %v8182_v61 }
 0x55a   :  { %v8184_v22 = vpop.permute.xlu0 %5713 }
 0x55b   :  { %9244 = vst [vmem:[#allocation109_spill] sm:$0xff] %v8184_v22 }
 0x55c   :  { %v8186_v25 = vpop.permute.xlu1 %5718 }
 0x55d   :  { %9245 = vst [vmem:[#allocation110_spill] sm:$0xff] %v8186_v25 }
 0x55e   :  { %v8188_v45 = vpop.permute.xlu0 %5703 }
 0x55f   :  { %9246 = vst [vmem:[#allocation111_spill] sm:$0xff] %v8188_v45 }
 0x560   :  { %v8190_v44 = vpop.permute.xlu1 %5708 }
 0x561   :  { %9247 = vst [vmem:[#allocation112_spill] sm:$0xff] %v8190_v44 }
 0x562   :  { %v720_v46 = vpop.permute.xlu0 %719 }
 0x564   :  { %v725_v41 = vpop.permute.xlu1 %724 }
 0x566   :  { %v730_v19 = vpop.permute.xlu0 %729 }
 0x568   :  { %v735_v12 = vpop.permute.xlu1 %734 }
 0x56a   :  { %v8194_v25 = vpop.permute.xlu0 %812 }
 0x56c   :  { %v8197_v0 = vpop.permute.xlu1 %817 }
 0x5c2   :  { %v6794_v15 = vpop.f32.mrf.mxu0 }
 0x5c3   :  { %v796_v16 = vadd.f32 %v6794_v15, %v730_v19 }
 0x5c4   :  { %v787_v40 = vpop.f32.mrf.mxu0 }
 0x5c5   :  { %v788_v18 = vadd.f32 %v787_v40, %v720_v46  ;;  %v804_v22 = vadd.f32 %v796_v16, %v7989_v17  ;;  %v8201_v17 = vpop.permute.xlu0 %822 }
 0x5c6   :  { %v6795_v29 = vpop.f32.mrf.mxu0 }
 0x5c7   :  { %v802_v42 = vadd.f32 %v788_v18, %v7992_v10  ;;  %v799_v61 = vadd.f32 %v6795_v29, %v735_v12  ;;  %v808_v19 = vmax.f32 %v804_v22, 0.0  ;;  %v8208_v22 = vpop.permute.xlu1 %827 }
 0x5c8   :  { %v790_v32 = vpop.f32.mrf.mxu0 }
 0x5c9   :  { %v791_v45 = vadd.f32 %v790_v32, %v725_v41  ;;  %v805_v44 = vadd.f32 %v799_v61, %v7994_v20  ;;  %v806_v13 = vmax.f32 %v802_v42, 0.0  ;;  %v832_v18 = vmul.f32 %v8201_v17, %v808_v19 }
 0x5ca   :  { %v6816_v4 = vpop.f32.mrf.mxu0 }
 0x5cb   :  { %v803_v15 = vadd.f32 %v791_v45, %v7996_v39  ;;  %v1036_v10 = vadd.f32 %v6816_v4, %v7625_v47  ;;  %v809_v29 = vmax.f32 %v805_v44, 0.0  ;;  %v830_v16 = vmul.f32 %v8194_v25, %v806_v13 }
 0x5cc   :  { %v1027_v40 = vpop.f32.mrf.mxu0 }
 0x5cd   :  { %v807_v46 = vmax.f32 %v803_v15, 0.0  ;;  %v1028_v20 = vadd.f32 %v1027_v40, %v7631_v49  ;;  %v1048_v42 = vmax.f32 %v1036_v10, 0.0  ;;  %v833_v44 = vmul.f32 %v8208_v22, %v809_v29  ;;  %v7254_v10 = vld [vmem:[%s9134_s2 + $0x18] sm:$0xff]  }
 0x5ce   :  { %v6817_v12 = vpop.f32.mrf.mxu0  ;;  %v849_v40 = vshrl.u32 %v848_v33, 7  ;;  %v7255_v33 = vld [vmem:[%s9134_s2 + $0x20] sm:$0xff]  }
 0x5cf   :  { %v831_v32 = vmul.f32 %v8197_v0, %v807_v46  ;;  %v1039_v41 = vadd.f32 %v6817_v12, %v7627_v48  ;;  %v1046_v13 = vmax.f32 %v1028_v20, 0.0 }
 0x5d0   :  { %v1030_v39 = vpop.f32.mrf.mxu0  ;;  %v850_v29 = vsub.s32 0, %v849_v40 }
 0x5d1   :  { %v834_v45 = vadd.f32 %v831_v32, %v830_v16  ;;  %v1049_v47 = vmax.f32 %v1039_v41, 0.0  ;;  %v1031_v4 = vadd.f32 %v1030_v39, %v7633_v50  ;;  %v846_v32 = vpop.permute.xlu0 %845 }
 0x5d2   :  { %v8216_v41 = vrot.slane %v846_v32, %v850_v29 }
 0x5d3   :  { %v835_v61 = vadd.f32 %v834_v45, %v832_v18  ;;  %v1051_v15 = vpack.c.bf16 %v1049_v47, %v1048_v42  ;;  %v1047_v46 = vmax.f32 %v1031_v4, 0.0  ;;  %v6804_v45 = vpop.f32.mrf.mxu1 }
 0x5d5   :  { %v836_v49 = vadd.f32 %v835_v61, %v833_v44  ;;  %6818 = vmatprep.subr.bf16.mxu0 %v1051_v15  ;;  %v1050_v48 = vpack.c.bf16 %v1047_v46, %v1046_v13  ;;  %v912_v4 = vpop.f32.mrf.mxu1 }
 0x5d6   :  { %6819 = vmatpush3.bf16.msra.mxu0 %v1051_v15 }
 0x5d7   :  { %v837_v19 = vrot.slane %v836_v49, 4  ;;  %6820 = vmatprep.subr.bf16.mxu0 %v1050_v48 }
 0x5d9   :  { %v838_v12 = vadd.f32 %v837_v19, %v836_v49 }
 0x5da   :  { %6821 = vmatpush3.bf16.msra.mxu0 %v1050_v48  ;;  %v6805_v48 = vpop.f32.mrf.mxu1 }
 0x5db   :  { %v839_v50 = vrot.slane %v838_v12, 2 }
 0x5dd   :  { %v840_v16 = vadd.f32 %v839_v50, %v838_v12  ;;  %6823 = vmatmul.mubr.msk.bf16.vlgmr.msra.gmra.mxu0 %vm225_vm1, %v7254_v10 }
 0x5de   :  { %6830 = vmatprep.mubr.msk.bf16.mxu0 %vm225_vm1, %v7255_v33 }
 0x5df   :  { %v841_v20 = vrot.slane %v840_v16, 1 }
 0x5e1   :  { %v842_v18 = vadd.f32 %v841_v20, %v840_v16  ;;  %v915_v16 = vpop.f32.mrf.mxu1 }
 0x5e3   :  { %v852_v39 = vadd.f32 %v8216_v41, %v842_v18 }
 0x5e5   :  { %853 = vst [vmem:[%s9137_s6] sm:$0x1] %v852_v39 }
 0x69d   :  { %v6824_v42 = vpop.f32.mrf.mxu0 }
 0x69e   :  { %v1135_v47 = vadd.f32 %v6824_v42, %v7637_v51 }
 0x69f   :  { %v1126_v44 = vpop.f32.mrf.mxu0 }
 0x6a0   :  { %v1143_v61 = vadd.f32 %v8042_v14, %v1135_v47  ;;  %v1127_v13 = vadd.f32 %v1126_v44, %v7643_v53 }
 0x6a1   :  { %v6825_v15 = vpop.f32.mrf.mxu0 }
 0x6a2   :  { %v1141_v46 = vadd.f32 %v1127_v13, %v8044_v24  ;;  %v1138_v49 = vadd.f32 %v6825_v15, %v7640_v52  ;;  %v1147_v40 = vadd.f32 %v6804_v45, %v1143_v61  ;;  %v9248_v13 = vld [vmem:[#allocation3_spill] sm:$0xff] }
 0x6a3   :  { %v1129_v19 = vpop.f32.mrf.mxu0 }
 0x6a4   :  { %v1144_v12 = vadd.f32 %v8046_v43, %v1138_v49  ;;  %v1130_v10 = vadd.f32 %v1129_v19, %v7647_v54  ;;  %v1145_v50 = vadd.f32 %v1141_v46, %v912_v4  ;;  %v1155_v32 = vmax.f32 %v1147_v40, 0.0  ;;  %v7256_v43 = vld [vmem:[%s9134_s2 + $0x28] sm:$0xff]   ;;  %v7257_v54 = vld [vmem:[%s9134_s2 + $0x30] sm:$0xff]  }
 0x6a5   :  { %6838 = vmatprep.mubr.msk.bf16.mxu1 %vm225_vm1, %v7257_v54 }
 0x6a6   :  { %v1148_v51 = vadd.f32 %v6805_v48, %v1144_v12  ;;  %v1142_v29 = vadd.f32 %v1130_v10, %v8050_v23  ;;  %v1153_v18 = vmax.f32 %v1145_v50, 0.0 }
 0x6a8   :  { %v1146_v14 = vadd.f32 %v1142_v29, %v915_v16  ;;  %v1156_v53 = vmax.f32 %v1148_v51, 0.0 }
 0x6aa   :  { %v1158_v20 = vpack.c.bf16 %v1156_v53, %v1155_v32  ;;  %v1154_v24 = vmax.f32 %v1146_v14, 0.0  ;;  %v9249_v32 = vld [vmem:[#allocation4_spill] sm:$0xff] }
 0x6ac   :  { %6826 = vmatprep.subr.bf16.mxu0 %v1158_v20  ;;  %v1157_v52 = vpack.c.bf16 %v1154_v24, %v1153_v18  ;;  %v9250_v24 = vld [vmem:[#allocation6_spill] sm:$0xff] }
 0x6ad   :  { %6827 = vmatpush3.bf16.msra.mxu0 %v1158_v20 }
 0x6ae   :  { %6828 = vmatprep.subr.bf16.mxu0 %v1157_v52 }
 0x6b1   :  { %6829 = vmatpush3.bf16.msra.mxu0 %v1157_v52 }
 0x6b4   :  { %6831 = vmatmul.mubr.msk.bf16.vlgmr.msra.gmra.mxu0 %vm225_vm1, %v7256_v43 }
 0x774   :  { %v6832_v23 = vpop.f32.mrf.mxu0 }
 0x775   :  { %v1242_v33 = vadd.f32 %v6832_v23, %v7651_v55  ;;  %v7258_v55 = vld [vmem:[%s9134_s2 + $0x38] sm:$0xff]  }
 0x776   :  { %v1233_v39 = vpop.f32.mrf.mxu0  ;;  %v9251_v23 = vld [vmem:[#allocation5_spill] sm:$0xff] }
 0x777   :  { %v1234_v42 = vadd.f32 %v1233_v39, %v7657_v57  ;;  %v1254_v44 = vmax.f32 %v1242_v33, 0.0  ;;  %v6808_v57 = vpop.f32.mrf.mxu1 }
 0x778   :  { %v6833_v45 = vpop.f32.mrf.mxu0 }
 0x779   :  { %v1245_v47 = vadd.f32 %v6833_v45, %v7654_v56  ;;  %v1252_v46 = vmax.f32 %v1234_v42, 0.0  ;;  %v7259_v56 = vld [vmem:[%s9134_s2 + $0x40] sm:$0xff]   ;;  %v928_v12 = vpop.f32.mrf.mxu1 }
 0x77a   :  { %v1236_v4 = vpop.f32.mrf.mxu0  ;;  %6846 = vmatprep.mubr.msk.bf16.mxu0 %vm225_vm1, %v7259_v56  ;;  %v7260_v56 = vld [vmem:[%s9134_s2 + $0x48] sm:$0xff]  }
 0x77b   :  { %v1255_v61 = vmax.f32 %v1245_v47, 0.0  ;;  %v1237_v15 = vadd.f32 %v1236_v4, %v9248_v13  ;;  %v6809_v10 = vpop.f32.mrf.mxu1  ;;  %v9252_v47 = vld [vmem:[#allocation7_spill] sm:$0xff] }
 0x77d   :  { %v1257_v49 = vpack.c.bf16 %v1255_v61, %v1254_v44  ;;  %v1253_v48 = vmax.f32 %v1237_v15, 0.0  ;;  %v931_v29 = vpop.f32.mrf.mxu1 }
 0x77f   :  { %6834 = vmatprep.subr.bf16.mxu1 %v1257_v49  ;;  %v1256_v19 = vpack.c.bf16 %v1253_v48, %v1252_v46 }
 0x780   :  { %6835 = vmatpush3.bf16.msra.mxu1 %v1257_v49 }
 0x781   :  { %6836 = vmatprep.subr.bf16.mxu1 %v1256_v19 }
 0x784   :  { %6837 = vmatpush3.bf16.msra.mxu1 %v1256_v19  ;;  %v1577_v19 = vld [vmem:[%s9132_s0 + $0x28] sm:$0xf] }
 0x787   :  { %6839 = vmatmul.mubr.msk.bf16.vlgmr.msra.gmra.mxu1 %vm225_vm1, %v7258_v55 }
 0x847   :  { %v6840_v16 = vpop.f32.mrf.mxu1 }
 0x848   :  { %v1341_v53 = vadd.f32 %v6840_v16, %v9249_v32 }
 0x849   :  { %v1332_v20 = vpop.f32.mrf.mxu1 }
 0x84a   :  { %v1349_v18 = vadd.f32 %v1341_v53, %v1147_v40  ;;  %v1333_v52 = vadd.f32 %v1332_v20, %v9250_v24 }
 0x84b   :  { %v6841_v43 = vpop.f32.mrf.mxu1 }
 0x84c   :  { %v1347_v54 = vadd.f32 %v1333_v52, %v1145_v50  ;;  %v1344_v39 = vadd.f32 %v6841_v43, %v9251_v23  ;;  %v8257_v45 = vadd.f32 %v6808_v57, %v1349_v18  ;;  %v7261_v57 = vld [vmem:[%s9134_s2 + $0x50] sm:$0xff]  }
 0x84d   :  { %v1335_v33 = vpop.f32.mrf.mxu1  ;;  %6854 = vmatprep.mubr.msk.bf16.mxu1 %vm225_vm1, %v7261_v57 }
 0x84e   :  { %v1350_v42 = vadd.f32 %v1344_v39, %v1148_v51  ;;  %v1336_v4 = vadd.f32 %v1335_v33, %v9252_v47  ;;  %v8260_v44 = vadd.f32 %v1347_v54, %v928_v12  ;;  %v1361_v40 = vmax.f32 %v8257_v45, 0.0  ;;  %v1576_v51 = vld [vmem:[%s9132_s0 + $0x8] sm:$0xf]  ;;  %v7262_v47 = vld [vmem:[%s9134_s2 + $0x58] sm:$0xff]  }
 0x84f   :  { %v6060_v55 = vcombine.low %v1576_v51, %v1577_v19 }
 0x850   :  { %v8262_v61 = vadd.f32 %v6809_v10, %v1350_v42  ;;  %v1348_v13 = vadd.f32 %v1336_v4, %v1146_v14  ;;  %v1359_v49 = vmax.f32 %v8260_v44, 0.0  ;;  %v7263_v4 = vld [vmem:[%s9134_s2] sm:$0xff]  }
 0x852   :  { %v8264_v15 = vadd.f32 %v1348_v13, %v931_v29  ;;  %v1362_v46 = vmax.f32 %v8262_v61, 0.0  ;;  %v9253_v29 = vld [vmem:[#allocation8_spill] sm:$0xff] }
 0x854   :  { %v1364_v50 = vpack.c.bf16 %v1362_v46, %v1361_v40  ;;  %v1360_v48 = vmax.f32 %v8264_v15, 0.0  ;;  %v7264_v46 = vld [vmem:[%s9134_s2 + $0x8] sm:$0xff]  }
 0x856   :  { %6842 = vmatprep.subr.bf16.mxu0 %v1364_v50  ;;  %v1363_v14 = vpack.c.bf16 %v1360_v48, %v1359_v49  ;;  %v1471_v49 = vpop.permute.xlu1 %1470  ;;  %v1476_v48 = vpop.permute.xlu0 %1475 }
 0x857   :  { %6843 = vmatpush3.bf16.msra.mxu0 %v1364_v50  ;;  %v7265_v50 = vld [vmem:[%s9134_s2 + $0x10] sm:$0xff]  }
 0x858   :  { %6844 = vmatprep.subr.bf16.mxu0 %v1363_v14 }
 0x85a   :  { %v1481_v19 = vpop.permute.xlu1 %1480  ;;  %v1486_v57 = vpop.permute.xlu0 %1485 }
 0x85b   :  { %6845 = vmatpush3.bf16.msra.mxu0 %v1363_v14 }
 0x85c   :  { %6858 = vmatprep.subr.bf16.mxu0 %v6060_v55 }
 0x85e   :  { %6847 = vmatmul.mubr.msk.bf16.vlgmr.msra.gmra.mxu0 %vm225_vm1, %v7260_v56 }
 0x85f   :  { %6859 = vmatpush3.bf16.msra.mxu0 %v6060_v55  ;;  %6860 = vmatprep.mubr.msk.bf16.mxu0 %vm81_vm0, %v8015_v28 }
 0x866   :  { %6861 = vmatmul.mubr.msk.bf16.vlgmr.msra.gmra.mxu0 %vm81_vm0, %v8022_v35 }
 0x867   :  { %6864 = vmatprep.mubr.msk.bf16.mxu0 %vm81_vm0, %v7805_v2 }
 0x86e   :  { %6865 = vmatmul.mubr.msk.bf16.gmra.mxu0 %vm81_vm0, %v7810_v5 }
 0x86f   :  { %6868 = vmatprep.mubr.msk.bf16.mxu0 %vm81_vm0, %v7959_v34 }
 0x876   :  { %6869 = vmatmul.mubr.msk.bf16.gmra.mxu0 %vm81_vm0, %v7964_v9 }
 0x91e   :  { %v6848_v12 = vpop.f32.mrf.mxu0 }
 0x91f   :  { %v1448_v16 = vadd.f32 %v6848_v12, %v9253_v29 }
 0x920   :  { %v1439_v10 = vpop.f32.mrf.mxu0 }
 0x921   :  { %v1440_v32 = vadd.f32 %v1439_v10, %v7700_v58  ;;  %v1460_v34 = vmax.f32 %v1448_v16, 0.0 }
 0x922   :  { %v6849_v2 = vpop.f32.mrf.mxu0 }
 0x923   :  { %v1451_v5 = vadd.f32 %v6849_v2, %v7697_v59  ;;  %v1458_v24 = vmax.f32 %v1440_v32, 0.0 }
 0x924   :  { %v1442_v53 = vpop.f32.mrf.mxu0 }
 0x925   :  { %v1461_v20 = vmax.f32 %v1451_v5, 0.0  ;;  %v1443_v9 = vadd.f32 %v1442_v53, %v7707_v6 }
 0x926   :  { %v8300_v18 = vpop.f32.mrf.mxu0 }
 0x927   :  { %v1463_v52 = vpack.c.bf16 %v1461_v20, %v1460_v34  ;;  %v1459_v43 = vmax.f32 %v1443_v9, 0.0  ;;  %v1671_v58 = vmax.f32 %v8300_v18, 0.0 }
 0x928   :  { %v8302_v54 = vpop.f32.mrf.mxu0 }
 0x929   :  { %v1462_v23 = vpack.c.bf16 %v1459_v43, %v1458_v24  ;;  %6850 = vmatprep.subr.bf16.mxu1 %v1463_v52  ;;  %v1669_v13 = vmax.f32 %v8302_v54, 0.0 }
 0x92a   :  { %6851 = vmatpush3.bf16.msra.mxu1 %v1463_v52  ;;  %v8304_v39 = vpop.f32.mrf.mxu0 }
 0x92b   :  { %v1672_v59 = vmax.f32 %v8304_v39, 0.0  ;;  %6852 = vmatprep.subr.bf16.mxu1 %v1462_v23 }
 0x92c   :  { %v8308_v33 = vpop.f32.mrf.mxu0 }
 0x92d   :  { %v1674_v6 = vpack.c.bf16 %v1672_v59, %v1671_v58  ;;  %v1670_v42 = vmax.f32 %v8308_v33, 0.0 }
 0x92e   :  { %6853 = vmatpush3.bf16.msra.mxu1 %v1462_v23 }
 0x92f   :  { %6872 = vmatprep.subr.bf16.mxu1 %v1674_v6  ;;  %v1673_v40 = vpack.c.bf16 %v1670_v42, %v1669_v13  ;;  %v9255_v42 = vld [vmem:[#allocation9_spill] sm:$0xff] }
 0x931   :  { %6855 = vmatmul.mubr.msk.bf16.vlgmr.msra.gmra.mxu1 %vm225_vm1, %v7262_v47 }
 0x932   :  { %6873 = vmatpush3.bf16.msra.mxu1 %v1674_v6  ;;  %6876 = vmatprep.mubr.msk.bf16.mxu1 %vm225_vm1, %v7263_v4 }
 0x933   :  { %6874 = vmatprep.subr.bf16.mxu1 %v1673_v40 }
 0x936   :  { %6875 = vmatpush3.bf16.msra.mxu1 %v1673_v40 }
 0x939   :  { %6877 = vmatmul.mubr.msk.bf16.vlgmr.msra.gmra.mxu1 %vm225_vm1, %v7264_v46  ;;  %v9256_v46 = vld [vmem:[#allocation11_spill] sm:$0xff] }
 0x93a   :  { %6884 = vmatprep.mubr.msk.bf16.mxu1 %vm225_vm1, %v7265_v50 }
 0x9f1   :  { %v6856_v51 = vpop.f32.mrf.mxu1 }
 0x9f2   :  { %v1547_v14 = vadd.f32 %v6856_v51, %v1481_v19 }
 0x9f3   :  { %v1538_v55 = vpop.f32.mrf.mxu1 }
 0x9f4   :  { %v1539_v56 = vadd.f32 %v1538_v55, %v1471_v49  ;;  %v1555_v16 = vadd.f32 %v1547_v14, %v8257_v45  ;;  %v9254_v45 = vld [vmem:[#allocation10_spill] sm:$0xff] }
 0x9f5   :  { %v6857_v12 = vpop.f32.mrf.mxu1 }
 0x9f6   :  { %v1553_v10 = vadd.f32 %v1539_v56, %v8260_v44  ;;  %v1550_v29 = vadd.f32 %v6857_v12, %v1486_v57  ;;  %v1559_v9 = vmax.f32 %v1555_v16, 0.0  ;;  %v7266_v12 = vld [vmem:[%s9134_s2 + $0x18] sm:$0xff]  }
 0x9f7   :  { %v1541_v2 = vpop.f32.mrf.mxu1 }
 0x9f8   :  { %v1542_v32 = vadd.f32 %v1541_v2, %v1476_v48  ;;  %v1556_v5 = vadd.f32 %v1550_v29, %v8262_v61  ;;  %v1557_v34 = vmax.f32 %v1553_v10, 0.0  ;;  %v1563_v61 = vmul.f32 %v1559_v9, %v8201_v17 }
 0x9f9   :  { %v6878_v53 = vpop.f32.mrf.mxu1 }
 0x9fa   :  { %v1554_v20 = vadd.f32 %v1542_v32, %v8264_v15  ;;  %v1758_v43 = vadd.f32 %v6878_v53, %v7712_v60  ;;  %v1560_v23 = vmax.f32 %v1556_v5, 0.0  ;;  %v1561_v44 = vmul.f32 %v1557_v34, %v8194_v25  ;;  %v7267_v5 = vld [vmem:[%s9134_s2 + $0x20] sm:$0xff]   ;;  %v6866_v53 = vpop.f32.mrf.mxu0 }
 0x9fb   :  { %v1749_v24 = vpop.f32.mrf.mxu1 }
 0x9fc   :  { %v1558_v52 = vmax.f32 %v1554_v20, 0.0  ;;  %v1750_v6 = vadd.f32 %v1749_v24, %v9254_v45  ;;  %v1770_v15 = vmax.f32 %v1758_v43, 0.0  ;;  %v1564_v60 = vmul.f32 %v1560_v23, %v8208_v22  ;;  %v9257_v20 = vld [vmem:[#allocation12_spill] sm:$0xff]  ;;  %v1634_v24 = vpop.f32.mrf.mxu0  ;;  %v9258_v23 = vld [vmem:[#allocation14_spill] sm:$0xff]  ;;  %v9259_v45 = vld [vmem:[#allocation13_spill] sm:$0xff] }
 0x9fd   :  { %v6879_v58 = vpop.f32.mrf.mxu1 }
 0x9fe   :  { %v1562_v59 = vmul.f32 %v1558_v52, %v8197_v0  ;;  %v1761_v47 = vadd.f32 %v6879_v58, %v9255_v42  ;;  %v1768_v48 = vmax.f32 %v1750_v6, 0.0  ;;  %v6867_v42 = vpop.f32.mrf.mxu0 }
 0x9ff   :  { %v1752_v4 = vpop.f32.mrf.mxu1 }
 0xa00   :  { %v1565_v13 = vadd.f32 %v1562_v59, %v1561_v44  ;;  %v1771_v40 = vmax.f32 %v1761_v47, 0.0  ;;  %v1753_v50 = vadd.f32 %v1752_v4, %v9256_v46 }
 0xa02   :  { %v1566_v49 = vadd.f32 %v1565_v13, %v1563_v61  ;;  %v1773_v51 = vpack.c.bf16 %v1771_v40, %v1770_v15  ;;  %v1769_v19 = vmax.f32 %v1753_v50, 0.0  ;;  %v9260_v13 = vld [vmem:[#allocation15_spill] sm:$0xff] }
 0xa04   :  { %v1567_v14 = vadd.f32 %v1566_v49, %v1564_v60  ;;  %v1772_v55 = vpack.c.bf16 %v1769_v19, %v1768_v48  ;;  %6880 = vmatprep.subr.bf16.mxu1 %v1773_v51  ;;  %v1637_v60 = vpop.f32.mrf.mxu0 }
 0xa05   :  { %6881 = vmatpush3.bf16.msra.mxu1 %v1773_v51 }
 0xa06   :  { %v1568_v56 = vrot.slane %v1567_v14, 4  ;;  %6882 = vmatprep.subr.bf16.mxu1 %v1772_v55 }
 0xa08   :  { %v1569_v57 = vadd.f32 %v1568_v56, %v1567_v14 }
 0xa09   :  { %6883 = vmatpush3.bf16.msra.mxu1 %v1772_v55 }
 0xa0a   :  { %v1570_v10 = vrot.slane %v1569_v57, 2 }
 0xa0c   :  { %v1571_v29 = vadd.f32 %v1570_v10, %v1569_v57  ;;  %6885 = vmatmul.mubr.msk.bf16.vlgmr.msra.gmra.mxu1 %vm225_vm1, %v7266_v12  ;;  %v9261_v57 = vld [vmem:[#allocation16_spill] sm:$0xff] }
 0xa0d   :  { %6892 = vmatprep.mubr.msk.bf16.mxu1 %vm225_vm1, %v7267_v5 }
 0xa0e   :  { %v1572_v16 = vrot.slane %v1571_v29, 1 }
 0xa10   :  { %v1573_v2 = vadd.f32 %v1572_v16, %v1571_v29  ;;  %v9262_v29 = vld [vmem:[#allocation18_spill] sm:$0xff] }
 0xa12   :  { %v1574_v32 = vadd.f32 %v1573_v2, %v8216_v41  ;;  %v9263_v2 = vld [vmem:[#allocation17_spill] sm:$0xff] }
 0xa14   :  { %1575 = vst [vmem:[%s9137_s6 + $0x1] sm:$0x1] %v1574_v32 }
 0xacc   :  { %v6886_v34 = vpop.f32.mrf.mxu1 }
 0xacd   :  { %v1857_v9 = vadd.f32 %v6886_v34, %v9257_v20  ;;  %v9264_v20 = vld [vmem:[#allocation19_spill] sm:$0xff] }
 0xace   :  { %v1848_v52 = vpop.f32.mrf.mxu1 }
 0xacf   :  { %v1865_v43 = vadd.f32 %v8300_v18, %v1857_v9  ;;  %v1849_v58 = vadd.f32 %v1848_v52, %v9258_v23 }
 0xad0   :  { %v6887_v44 = vpop.f32.mrf.mxu1 }
 0xad1   :  { %v1863_v59 = vadd.f32 %v1849_v58, %v8302_v54  ;;  %v1860_v6 = vadd.f32 %v6887_v44, %v9259_v45  ;;  %v1869_v61 = vadd.f32 %v6866_v53, %v1865_v43  ;;  %v7270_v58 = vld [vmem:[%s9134_s2 + $0x38] sm:$0xff]   ;;  %v7271_v44 = vld [vmem:[%s9134_s2 + $0x40] sm:$0xff]  }
 0xad2   :  { %v1851_v47 = vpop.f32.mrf.mxu1 }
 0xad3   :  { %v1866_v4 = vadd.f32 %v8304_v39, %v1860_v6  ;;  %v1852_v15 = vadd.f32 %v1851_v47, %v9260_v13  ;;  %v1867_v40 = vadd.f32 %v1863_v59, %v1634_v24  ;;  %v1877_v49 = vmax.f32 %v1869_v61, 0.0  ;;  %v7268_v39 = vld [vmem:[%s9134_s2 + $0x28] sm:$0xff]   ;;  %v6870_v59 = vpop.f32.mrf.mxu0 }
 0xad5   :  { %v1870_v46 = vadd.f32 %v6867_v42, %v1866_v4  ;;  %v1864_v50 = vadd.f32 %v1852_v15, %v8308_v33  ;;  %v1875_v19 = vmax.f32 %v1867_v40, 0.0  ;;  %v7269_v33 = vld [vmem:[%s9134_s2 + $0x30] sm:$0xff]   ;;  %v1650_v45 = vpop.f32.mrf.mxu0 }
 0xad6   :  { %6900 = vmatprep.mubr.msk.bf16.mxu0 %vm225_vm1, %v7269_v33  ;;  %v9265_v4 = vld [vmem:[#allocation20_spill] sm:$0xff] }
 0xad7   :  { %v1868_v18 = vadd.f32 %v1864_v50, %v1637_v60  ;;  %v1878_v48 = vmax.f32 %v1870_v46, 0.0  ;;  %v6871_v6 = vpop.f32.mrf.mxu0  ;;  %v9266_v60 = vld [vmem:[#allocation22_spill] sm:$0xff] }
 0xad9   :  { %v1880_v51 = vpack.c.bf16 %v1878_v48, %v1877_v49  ;;  %v1876_v54 = vmax.f32 %v1868_v18, 0.0  ;;  %v1653_v42 = vpop.f32.mrf.mxu0 }
 0xadb   :  { %6888 = vmatprep.subr.bf16.mxu1 %v1880_v51  ;;  %v1879_v14 = vpack.c.bf16 %v1876_v54, %v1875_v19  ;;  %v9267_v19 = vld [vmem:[#allocation21_spill] sm:$0xff] }
 0xadc   :  { %6889 = vmatpush3.bf16.msra.mxu1 %v1880_v51 }
 0xadd   :  { %6890 = vmatprep.subr.bf16.mxu1 %v1879_v14 }
 0xae0   :  { %6891 = vmatpush3.bf16.msra.mxu1 %v1879_v14 }
 0xae3   :  { %6893 = vmatmul.mubr.msk.bf16.vlgmr.msra.gmra.mxu1 %vm225_vm1, %v7268_v39 }
 0xae4   :  { %6908 = vmatprep.mubr.msk.bf16.mxu1 %vm225_vm1, %v7271_v44 }
 0xba3   :  { %v6894_v55 = vpop.f32.mrf.mxu1 }
 0xba4   :  { %v1964_v12 = vadd.f32 %v6894_v55, %v9261_v57  ;;  %v9268_v55 = vld [vmem:[#allocation23_spill] sm:$0xff] }
 0xba5   :  { %v1955_v56 = vpop.f32.mrf.mxu1 }
 0xba6   :  { %v1956_v16 = vadd.f32 %v1955_v56, %v9262_v29  ;;  %v1976_v53 = vmax.f32 %v1964_v12, 0.0 }
 0xba7   :  { %v6895_v10 = vpop.f32.mrf.mxu1 }
 0xba8   :  { %v1967_v32 = vadd.f32 %v6895_v10, %v9263_v2  ;;  %v1974_v24 = vmax.f32 %v1956_v16, 0.0 }
 0xba9   :  { %v1958_v5 = vpop.f32.mrf.mxu1 }
 0xbaa   :  { %v1977_v34 = vmax.f32 %v1967_v32, 0.0  ;;  %v1959_v9 = vadd.f32 %v1958_v5, %v9264_v20  ;;  %v2299_v5 = vld [vmem:[%s9132_s0 + $0x2c] sm:$0xf]  ;;  %v8413_v20 = vld [vmem:[%s9133_s1 + $0x10] sm:$0xff]  }
 0xbac   :  { %v1979_v52 = vpack.c.bf16 %v1977_v34, %v1976_v53  ;;  %v1975_v43 = vmax.f32 %v1959_v9, 0.0  ;;  %v7272_v34 = vld [vmem:[%s9134_s2 + $0x48] sm:$0xff]   ;;  %v8420_v9 = vld [vmem:[%s9133_s1 + $0x18] sm:$0xff]  }
 0xbae   :  { %v1978_v23 = vpack.c.bf16 %v1975_v43, %v1974_v24  ;;  %6896 = vmatprep.subr.bf16.mxu0 %v1979_v52  ;;  %v7273_v24 = vld [vmem:[%s9134_s2 + $0x50] sm:$0xff]  }
 0xbaf   :  { %6897 = vmatpush3.bf16.msra.mxu0 %v1979_v52 }
 0xbb0   :  { %6898 = vmatprep.subr.bf16.mxu0 %v1978_v23 }
 0xbb3   :  { %6899 = vmatpush3.bf16.msra.mxu0 %v1978_v23  ;;  %v9269_v23 = vld [vmem:[#allocation24_spill] sm:$0xff] }
 0xbb6   :  { %6901 = vmatmul.mubr.msk.bf16.vlgmr.msra.gmra.mxu0 %vm225_vm1, %v7270_v58 }
 0xbb7   :  { %6916 = vmatprep.mubr.msk.bf16.mxu0 %vm225_vm1, %v7273_v24 }
 0xc76   :  { %v6902_v47 = vpop.f32.mrf.mxu0 }
 0xc77   :  { %v2063_v13 = vadd.f32 %v6902_v47, %v9265_v4 }
 0xc78   :  { %v2054_v15 = vpop.f32.mrf.mxu0 }
 0xc79   :  { %v2071_v50 = vadd.f32 %v2063_v13, %v1869_v61  ;;  %v2055_v49 = vadd.f32 %v2054_v15, %v9266_v60  ;;  %v9272_v15 = vld [vmem:[#allocation27_spill] sm:$0xff] }
 0xc7a   :  { %v6903_v48 = vpop.f32.mrf.mxu0 }
 0xc7b   :  { %v2069_v51 = vadd.f32 %v2055_v49, %v1867_v40  ;;  %v2066_v54 = vadd.f32 %v6903_v48, %v9267_v19  ;;  %v8383_v39 = vadd.f32 %v6870_v59, %v2071_v50  ;;  %v9270_v59 = vld [vmem:[#allocation26_spill] sm:$0xff] }
 0xc7c   :  { %v2057_v14 = vpop.f32.mrf.mxu0 }
 0xc7d   :  { %v2072_v33 = vadd.f32 %v2066_v54, %v1870_v46  ;;  %v2058_v56 = vadd.f32 %v2057_v14, %v9268_v55  ;;  %v8386_v57 = vadd.f32 %v2069_v51, %v1650_v45  ;;  %v2083_v61 = vmax.f32 %v8383_v39, 0.0  ;;  %v2298_v46 = vld [vmem:[%s9132_s0 + $0xc] sm:$0xf] }
 0xc7e   :  { %v6131_v53 = vcombine.low %v2298_v46, %v2299_v5  ;;  %v7276_v46 = vld [vmem:[%s9134_s2 + $0x8] sm:$0xff]   ;;  %v7277_v5 = vld [vmem:[%s9134_s2 + $0x10] sm:$0xff]  }
 0xc7f   :  { %v8388_v12 = vadd.f32 %v6871_v6, %v2072_v33  ;;  %v2070_v10 = vadd.f32 %v2058_v56, %v1868_v18  ;;  %v2081_v2 = vmax.f32 %v8386_v57, 0.0  ;;  %v9271_v6 = vld [vmem:[#allocation25_spill] sm:$0xff] }
 0xc81   :  { %v8390_v29 = vadd.f32 %v2070_v10, %v1653_v42  ;;  %v2084_v16 = vmax.f32 %v8388_v12, 0.0 }
 0xc83   :  { %v2086_v40 = vpack.c.bf16 %v2084_v16, %v2083_v61  ;;  %v2082_v32 = vmax.f32 %v8390_v29, 0.0  ;;  %v7274_v16 = vld [vmem:[%s9134_s2 + $0x58] sm:$0xff]  }
 0xc85   :  { %6904 = vmatprep.subr.bf16.mxu1 %v2086_v40  ;;  %v2085_v18 = vpack.c.bf16 %v2082_v32, %v2081_v2 }
 0xc86   :  { %6905 = vmatpush3.bf16.msra.mxu1 %v2086_v40  ;;  %v7275_v40 = vld [vmem:[%s9134_s2] sm:$0xff]  }
 0xc87   :  { %6906 = vmatprep.subr.bf16.mxu1 %v2085_v18 }
 0xc8a   :  { %6907 = vmatpush3.bf16.msra.mxu1 %v2085_v18  ;;  %v2193_v18 = vpop.permute.xlu1 %2192 }
 0xc8b   :  { %6920 = vmatprep.subr.bf16.mxu1 %v6131_v53 }
 0xc8d   :  { %6909 = vmatmul.mubr.msk.bf16.vlgmr.msra.gmra.mxu1 %vm225_vm1, %v7272_v34 }
 0xc8e   :  { %6921 = vmatpush3.bf16.msra.mxu1 %v6131_v53  ;;  %6922 = vmatprep.mubr.msk.bf16.mxu1 %vm81_vm0, %v8015_v28  ;;  %v8427_v28 = vld [vmem:[%s9133_s1 + $0x20] sm:$0xff]   ;;  %v8474_v53 = vpop.permute.xlu1 %2914 }
 0xc92   :  { %v8476_v34 = vpop.permute.xlu1 %3636 }
 0xc95   :  { %6923 = vmatmul.mubr.msk.bf16.vlgmr.msra.gmra.mxu1 %vm81_vm0, %v8022_v35  ;;  %v8434_v35 = vld [vmem:[%s9133_s1 + $0x28] sm:$0xff]  }
 0xc96   :  { %6926 = vmatprep.mubr.msk.bf16.mxu1 %vm81_vm0, %v8413_v20  ;;  %v8478_v24 = vpop.permute.xlu1 %4358 }
 0xc9d   :  { %6927 = vmatmul.mubr.msk.bf16.gmra.mxu1 %vm81_vm0, %v8420_v9 }
 0xc9e   :  { %6930 = vmatprep.mubr.msk.bf16.mxu1 %vm81_vm0, %v8427_v28 }
 0xca5   :  { %6931 = vmatmul.mubr.msk.bf16.gmra.mxu1 %vm81_vm0, %v8434_v35 }
 0xd4d   :  { %v6910_v52 = vpop.f32.mrf.mxu1 }
 0xd4e   :  { %v2170_v58 = vadd.f32 %v6910_v52, %v9269_v23  ;;  %v8480_v52 = vpop.permute.xlu1 %5080 }
 0xd4f   :  { %v2161_v43 = vpop.f32.mrf.mxu1 }
 0xd50   :  { %v2162_v45 = vadd.f32 %v2161_v43, %v9270_v59  ;;  %v2182_v4 = vmax.f32 %v2170_v58, 0.0 }
 0xd51   :  { %v6911_v44 = vpop.f32.mrf.mxu1 }
 0xd52   :  { %v2173_v42 = vadd.f32 %v6911_v44, %v9271_v6  ;;  %v2180_v49 = vmax.f32 %v2162_v45, 0.0  ;;  %v8482_v43 = vpop.permute.xlu1 %5802 }
 0xd53   :  { %v2164_v47 = vpop.f32.mrf.mxu1 }
 0xd54   :  { %v2183_v13 = vmax.f32 %v2173_v42, 0.0  ;;  %v2165_v50 = vadd.f32 %v2164_v47, %v9272_v15 }
 0xd55   :  { %v8446_v60 = vpop.f32.mrf.mxu1 }
 0xd56   :  { %v2185_v48 = vpack.c.bf16 %v2183_v13, %v2182_v4  ;;  %v2181_v51 = vmax.f32 %v2165_v50, 0.0  ;;  %v2393_v33 = vmax.f32 %v8446_v60, 0.0  ;;  %v2203_v23 = vpop.permute.xlu1 %2202  ;;  %v2198_v50 = vpop.permute.xlu0 %2197 }
 0xd57   :  { %v8448_v19 = vpop.f32.mrf.mxu1 }
 0xd58   :  { %v2184_v54 = vpack.c.bf16 %v2181_v51, %v2180_v49  ;;  %6912 = vmatprep.subr.bf16.mxu0 %v2185_v48  ;;  %v2391_v2 = vmax.f32 %v8448_v19, 0.0 }
 0xd59   :  { %6913 = vmatpush3.bf16.msra.mxu0 %v2185_v48  ;;  %v8450_v14 = vpop.f32.mrf.mxu1 }
 0xd5a   :  { %v2394_v55 = vmax.f32 %v8450_v14, 0.0  ;;  %6914 = vmatprep.subr.bf16.mxu0 %v2184_v54  ;;  %v8484_v58 = vpop.permute.xlu1 %3646 }
 0xd5b   :  { %v8454_v56 = vpop.f32.mrf.mxu1 }
 0xd5c   :  { %v2396_v10 = vpack.c.bf16 %v2394_v55, %v2393_v33  ;;  %v2392_v61 = vmax.f32 %v8454_v56, 0.0 }
 0xd5d   :  { %6915 = vmatpush3.bf16.msra.mxu0 %v2184_v54 }
 0xd5e   :  { %6934 = vmatprep.subr.bf16.mxu0 %v2396_v10  ;;  %v2395_v32 = vpack.c.bf16 %v2392_v61, %v2391_v2  ;;  %v8486_v44 = vpop.permute.xlu1 %5090 }
 0xd60   :  { %6917 = vmatmul.mubr.msk.bf16.vlgmr.msra.gmra.mxu0 %vm225_vm1, %v7274_v16 }
 0xd61   :  { %6935 = vmatpush3.bf16.msra.mxu0 %v2396_v10  ;;  %6938 = vmatprep.mubr.msk.bf16.mxu0 %vm225_vm1, %v7275_v40 }
 0xd62   :  { %6936 = vmatprep.subr.bf16.mxu0 %v2395_v32  ;;  %v2208_v47 = vpop.permute.xlu1 %2207 }
 0xd65   :  { %6937 = vmatpush3.bf16.msra.mxu0 %v2395_v32 }
 0xd68   :  { %6939 = vmatmul.mubr.msk.bf16.vlgmr.msra.gmra.mxu0 %vm225_vm1, %v7276_v46 }
 0xd69   :  { %6946 = vmatprep.mubr.msk.bf16.mxu0 %vm225_vm1, %v7277_v5 }
 0xe20   :  { %v6918_v59 = vpop.f32.mrf.mxu0 }
 0xe21   :  { %v2269_v45 = vadd.f32 %v6918_v59, %v2203_v23 }
 0xe22   :  { %v2260_v6 = vpop.f32.mrf.mxu0 }
 0xe23   :  { %v2261_v42 = vadd.f32 %v2260_v6, %v2193_v18  ;;  %v2277_v49 = vadd.f32 %v2269_v45, %v8383_v39 }
 0xe24   :  { %v6919_v4 = vpop.f32.mrf.mxu0 }
 0xe25   :  { %v2275_v13 = vadd.f32 %v2261_v42, %v8386_v57  ;;  %v2272_v15 = vadd.f32 %v6919_v4, %v2208_v47  ;;  %v2281_v61 = vmax.f32 %v2277_v49, 0.0  ;;  %v7278_v49 = vld [vmem:[%s9134_s2 + $0x18] sm:$0xff]  }
 0xe26   :  { %v2263_v48 = vpop.f32.mrf.mxu0 }
 0xe27   :  { %v2264_v51 = vadd.f32 %v2263_v48, %v2198_v50  ;;  %v2278_v54 = vadd.f32 %v2272_v15, %v8388_v12  ;;  %v2279_v55 = vmax.f32 %v2275_v13, 0.0  ;;  %v2285_v12 = vmul.f32 %v2281_v61, %v8201_v17 }
 0xe28   :  { %v6940_v33 = vpop.f32.mrf.mxu0 }
 0xe29   :  { %v2276_v10 = vadd.f32 %v2264_v51, %v8390_v29  ;;  %v2480_v2 = vadd.f32 %v6940_v33, %v7782_v63  ;;  %v2282_v32 = vmax.f32 %v2278_v54, 0.0  ;;  %v2283_v57 = vmul.f32 %v2279_v55, %v8194_v25  ;;  %v7279_v55 = vld [vmem:[%s9134_s2 + $0x20] sm:$0xff]  }
 0xe2a   :  { %v2471_v16 = vpop.f32.mrf.mxu0 }
 0xe2b   :  { %v2280_v40 = vmax.f32 %v2276_v10, 0.0  ;;  %v2472_v39 = vadd.f32 %v2471_v16, %v7788_v7  ;;  %v2492_v29 = vmax.f32 %v2480_v2, 0.0  ;;  %v2286_v63 = vmul.f32 %v2282_v32, %v8208_v22  ;;  %v6928_v10 = vpop.f32.mrf.mxu1 }
 0xe2c   :  { %v6941_v46 = vpop.f32.mrf.mxu0 }
 0xe2d   :  { %v2284_v5 = vmul.f32 %v2280_v40, %v8197_v0  ;;  %v2483_v18 = vadd.f32 %v6941_v46, %v7785_v62  ;;  %v2490_v47 = vmax.f32 %v2472_v39, 0.0  ;;  %v2356_v40 = vpop.f32.mrf.mxu1 }
 0xe2e   :  { %v2474_v23 = vpop.f32.mrf.mxu0 }
 0xe2f   :  { %v2287_v59 = vadd.f32 %v2284_v5, %v2283_v57  ;;  %v2493_v45 = vmax.f32 %v2483_v18, 0.0  ;;  %v2475_v6 = vadd.f32 %v2474_v23, %v7792_v3  ;;  %v6929_v18 = vpop.f32.mrf.mxu1 }
 0xe31   :  { %v2288_v42 = vadd.f32 %v2287_v59, %v2285_v12  ;;  %v2495_v4 = vpack.c.bf16 %v2493_v45, %v2492_v29  ;;  %v2491_v13 = vmax.f32 %v2475_v6, 0.0 }
 0xe33   :  { %v2289_v15 = vadd.f32 %v2288_v42, %v2286_v63  ;;  %v2494_v50 = vpack.c.bf16 %v2491_v13, %v2490_v47  ;;  %6942 = vmatprep.subr.bf16.mxu0 %v2495_v4  ;;  %v2359_v63 = vpop.f32.mrf.mxu1 }
 0xe34   :  { %6943 = vmatpush3.bf16.msra.mxu0 %v2495_v4 }
 0xe35   :  { %v2290_v7 = vrot.slane %v2289_v15, 4  ;;  %6944 = vmatprep.subr.bf16.mxu0 %v2494_v50 }
 0xe37   :  { %v2291_v62 = vadd.f32 %v2290_v7, %v2289_v15  ;;  %v9273_v15 = vld [vmem:[#allocation28_spill] sm:$0xff] }
 0xe38   :  { %6945 = vmatpush3.bf16.msra.mxu0 %v2494_v50 }
 0xe39   :  { %v2292_v48 = vrot.slane %v2291_v62, 2 }
 0xe3b   :  { %v2293_v3 = vadd.f32 %v2292_v48, %v2291_v62  ;;  %6947 = vmatmul.mubr.msk.bf16.vlgmr.msra.gmra.mxu0 %vm225_vm1, %v7278_v49  ;;  %v9274_v62 = vld [vmem:[#allocation30_spill] sm:$0xff]  ;;  %v9275_v48 = vld [vmem:[#allocation29_spill] sm:$0xff] }
 0xe3c   :  { %6954 = vmatprep.mubr.msk.bf16.mxu0 %vm225_vm1, %v7279_v55  ;;  %v9276_v55 = vld [vmem:[#allocation31_spill] sm:$0xff] }
 0xe3d   :  { %v2294_v51 = vrot.slane %v2293_v3, 1 }
 0xe3f   :  { %v2295_v54 = vadd.f32 %v2294_v51, %v2293_v3 }
 0xe41   :  { %v2296_v33 = vadd.f32 %v2295_v54, %v8216_v41 }
 0xe43   :  { %2297 = vst [vmem:[%s9137_s6 + $0x2] sm:$0x1] %v2296_v33 }
 0xefb   :  { %v6948_v61 = vpop.f32.mrf.mxu0 }
 0xefc   :  { %v2579_v16 = vadd.f32 %v6948_v61, %v7796_v26 }
 0xefd   :  { %v2570_v2 = vpop.f32.mrf.mxu0 }
 0xefe   :  { %v2587_v32 = vadd.f32 %v8446_v60, %v2579_v16  ;;  %v2571_v46 = vadd.f32 %v2570_v2, %v7812_v8 }
 0xeff   :  { %v6949_v57 = vpop.f32.mrf.mxu0 }
 0xf00   :  { %v2585_v5 = vadd.f32 %v2571_v46, %v8448_v19  ;;  %v2582_v39 = vadd.f32 %v6949_v57, %v7799_v1  ;;  %v2591_v23 = vadd.f32 %v6928_v10, %v2587_v32  ;;  %v7282_v32 = vld [vmem:[%s9134_s2 + $0x38] sm:$0xff]   ;;  %v7283_v46 = vld [vmem:[%s9134_s2 + $0x40] sm:$0xff]   ;;  %v6932_v57 = vpop.f32.mrf.mxu1 }
 0xf01   :  { %v2573_v12 = vpop.f32.mrf.mxu0 }
 0xf02   :  { %v2588_v59 = vadd.f32 %v8450_v14, %v2582_v39  ;;  %v2574_v29 = vadd.f32 %v2573_v12, %v7824_v11  ;;  %v2589_v45 = vadd.f32 %v2585_v5, %v2356_v40  ;;  %v2599_v42 = vmax.f32 %v2591_v23, 0.0  ;;  %v7280_v14 = vld [vmem:[%s9134_s2 + $0x28] sm:$0xff]   ;;  %v7281_v11 = vld [vmem:[%s9134_s2 + $0x30] sm:$0xff]   ;;  %v2372_v5 = vpop.f32.mrf.mxu1 }
 0xf03   :  { %6962 = vmatprep.mubr.msk.bf16.mxu1 %vm225_vm1, %v7281_v11 }
 0xf04   :  { %v2592_v26 = vadd.f32 %v6929_v18, %v2588_v59  ;;  %v2586_v6 = vadd.f32 %v2574_v29, %v8454_v56  ;;  %v2597_v4 = vmax.f32 %v2589_v45, 0.0  ;;  %v6933_v39 = vpop.f32.mrf.mxu1  ;;  %v9277_v59 = vld [vmem:[#allocation32_spill] sm:$0xff] }
 0xf06   :  { %v2590_v60 = vadd.f32 %v2586_v6, %v2359_v63  ;;  %v2600_v8 = vmax.f32 %v2592_v26, 0.0  ;;  %v2375_v18 = vpop.f32.mrf.mxu1 }
 0xf08   :  { %v2602_v47 = vpack.c.bf16 %v2600_v8, %v2599_v42  ;;  %v2598_v19 = vmax.f32 %v2590_v60, 0.0  ;;  %v9278_v42 = vld [vmem:[#allocation34_spill] sm:$0xff] }
 0xf0a   :  { %6950 = vmatprep.subr.bf16.mxu0 %v2602_v47  ;;  %v2601_v1 = vpack.c.bf16 %v2598_v19, %v2597_v4  ;;  %v9279_v19 = vld [vmem:[#allocation33_spill] sm:$0xff] }
 0xf0b   :  { %6951 = vmatpush3.bf16.msra.mxu0 %v2602_v47 }
 0xf0c   :  { %6952 = vmatprep.subr.bf16.mxu0 %v2601_v1 }
 0xf0f   :  { %6953 = vmatpush3.bf16.msra.mxu0 %v2601_v1 }
 0xf12   :  { %6955 = vmatmul.mubr.msk.bf16.vlgmr.msra.gmra.mxu0 %vm225_vm1, %v7280_v14 }
 0xf13   :  { %6970 = vmatprep.mubr.msk.bf16.mxu0 %vm225_vm1, %v7283_v46 }
 0xfd2   :  { %v6956_v56 = vpop.f32.mrf.mxu0 }
 0xfd3   :  { %v2686_v50 = vadd.f32 %v6956_v56, %v9273_v15 }
 0xfd4   :  { %v2677_v13 = vpop.f32.mrf.mxu0 }
 0xfd5   :  { %v2678_v49 = vadd.f32 %v2677_v13, %v9274_v62  ;;  %v2698_v54 = vmax.f32 %v2686_v50, 0.0  ;;  %v9280_v13 = vld [vmem:[#allocation35_spill] sm:$0xff] }
 0xfd6   :  { %v6957_v7 = vpop.f32.mrf.mxu0 }
 0xfd7   :  { %v2689_v3 = vadd.f32 %v6957_v7, %v9275_v48  ;;  %v2696_v61 = vmax.f32 %v2678_v49, 0.0 }
 0xfd8   :  { %v2680_v51 = vpop.f32.mrf.mxu0 }
 0xfd9   :  { %v2699_v33 = vmax.f32 %v2689_v3, 0.0  ;;  %v2681_v10 = vadd.f32 %v2680_v51, %v9276_v55  ;;  %v7284_v55 = vld [vmem:[%s9134_s2 + $0x48] sm:$0xff]  }
 0xfdb   :  { %v2701_v16 = vpack.c.bf16 %v2699_v33, %v2698_v54  ;;  %v2697_v40 = vmax.f32 %v2681_v10, 0.0  ;;  %v3021_v54 = vld [vmem:[%s9132_s0 + $0x30] sm:$0xf]  ;;  %v8569_v10 = vld [vmem:[%s9133_s1] sm:$0xff]  }
 0xfdd   :  { %v2700_v2 = vpack.c.bf16 %v2697_v40, %v2696_v61  ;;  %6958 = vmatprep.subr.bf16.mxu1 %v2701_v16  ;;  %v8576_v61 = vld [vmem:[%s9133_s1 + $0x8] sm:$0xff]  }
 0xfde   :  { %6959 = vmatpush3.bf16.msra.mxu1 %v2701_v16  ;;  %v7285_v16 = vld [vmem:[%s9134_s2 + $0x50] sm:$0xff]  }
 0xfdf   :  { %6960 = vmatprep.subr.bf16.mxu1 %v2700_v2 }
 0xfe2   :  { %6961 = vmatpush3.bf16.msra.mxu1 %v2700_v2 }
 0xfe5   :  { %6963 = vmatmul.mubr.msk.bf16.vlgmr.msra.gmra.mxu1 %vm225_vm1, %v7282_v32  ;;  %v9281_v32 = vld [vmem:[#allocation36_spill] sm:$0xff] }
 0xfe6   :  { %6978 = vmatprep.mubr.msk.bf16.mxu1 %vm225_vm1, %v7285_v16 }
0x10a5   :  { %v6964_v12 = vpop.f32.mrf.mxu1 }
0x10a6   :  { %v2785_v29 = vadd.f32 %v6964_v12, %v9277_v59 }
0x10a7   :  { %v2776_v6 = vpop.f32.mrf.mxu1 }
0x10a8   :  { %v2793_v63 = vadd.f32 %v2785_v29, %v2591_v23  ;;  %v2777_v8 = vadd.f32 %v2776_v6, %v9278_v42 }
0x10a9   :  { %v6965_v47 = vpop.f32.mrf.mxu1 }
0x10aa   :  { %v2791_v4 = vadd.f32 %v2777_v8, %v2589_v45  ;;  %v2788_v1 = vadd.f32 %v6965_v47, %v9279_v19  ;;  %v8543_v11 = vadd.f32 %v6932_v57, %v2793_v63  ;;  %v9284_v63 = vld [vmem:[#allocation39_spill] sm:$0xff] }
0x10ab   :  { %v2779_v14 = vpop.f32.mrf.mxu1 }
0x10ac   :  { %v2794_v56 = vadd.f32 %v2788_v1, %v2592_v26  ;;  %v2780_v15 = vadd.f32 %v2779_v14, %v9280_v13  ;;  %v8546_v50 = vadd.f32 %v2791_v4, %v2372_v5  ;;  %v2805_v23 = vmax.f32 %v8543_v11, 0.0  ;;  %v3020_v26 = vld [vmem:[%s9132_s0 + $0x10] sm:$0xf]  ;;  %v9282_v5 = vld [vmem:[#allocation38_spill] sm:$0xff] }
0x10ad   :  { %v6202_v33 = vcombine.low %v3020_v26, %v3021_v54  ;;  %v7288_v54 = vld [vmem:[%s9134_s2 + $0x8] sm:$0xff]  }
0x10ae   :  { %v8548_v7 = vadd.f32 %v6933_v39, %v2794_v56  ;;  %v2792_v62 = vadd.f32 %v2780_v15, %v2590_v60  ;;  %v2803_v3 = vmax.f32 %v8546_v50, 0.0 }
0x10b0   :  { %v8550_v49 = vadd.f32 %v2792_v62, %v2375_v18  ;;  %v2806_v48 = vmax.f32 %v8548_v7, 0.0  ;;  %v9283_v18 = vld [vmem:[#allocation37_spill] sm:$0xff] }
0x10b2   :  { %v2808_v45 = vpack.c.bf16 %v2806_v48, %v2805_v23  ;;  %v2804_v51 = vmax.f32 %v8550_v49, 0.0 }
0x10b4   :  { %6966 = vmatprep.subr.bf16.mxu0 %v2808_v45  ;;  %v2807_v60 = vpack.c.bf16 %v2804_v51, %v2803_v3  ;;  %v7287_v3 = vld [vmem:[%s9134_s2] sm:$0xff]  }
0x10b5   :  { %6967 = vmatpush3.bf16.msra.mxu0 %v2808_v45  ;;  %v7286_v45 = vld [vmem:[%s9134_s2 + $0x58] sm:$0xff]  }
0x10b6   :  { %6968 = vmatprep.subr.bf16.mxu0 %v2807_v60 }
0x10b9   :  { %6969 = vmatpush3.bf16.msra.mxu0 %v2807_v60  ;;  %v7289_v60 = vld [vmem:[%s9134_s2 + $0x10] sm:$0xff]  }
0x10ba   :  { %6982 = vmatprep.subr.bf16.mxu0 %v6202_v33 }
0x10bc   :  { %6971 = vmatmul.mubr.msk.bf16.vlgmr.msra.gmra.mxu0 %vm225_vm1, %v7284_v55 }
0x10bd   :  { %6983 = vmatpush3.bf16.msra.mxu0 %v6202_v33  ;;  %6984 = vmatprep.mubr.msk.bf16.mxu0 %vm81_vm0, %v8569_v10  ;;  %v2920_v33 = vpop.permute.xlu0 %2919 }
0x10c1   :  { %v8624_v55 = vpop.permute.xlu0 %3641 }
0x10c4   :  { %6985 = vmatmul.mubr.msk.bf16.vlgmr.msra.gmra.mxu0 %vm81_vm0, %v8576_v61 }
0x10c5   :  { %6988 = vmatprep.mubr.msk.bf16.mxu0 %vm81_vm0, %v8413_v20  ;;  %v8626_v16 = vpop.permute.xlu0 %4363 }
0x10cc   :  { %6989 = vmatmul.mubr.msk.bf16.gmra.mxu0 %vm81_vm0, %v8420_v9 }
0x10cd   :  { %6992 = vmatprep.mubr.msk.bf16.mxu0 %vm81_vm0, %v8427_v28 }
0x10d4   :  { %6993 = vmatmul.mubr.msk.bf16.gmra.mxu0 %vm81_vm0, %v8434_v35 }
0x117c   :  { %v6972_v40 = vpop.f32.mrf.mxu0 }
0x117d   :  { %v2892_v46 = vadd.f32 %v6972_v40, %v9281_v32  ;;  %v8628_v40 = vpop.permute.xlu0 %5085 }
0x117e   :  { %v2883_v2 = vpop.f32.mrf.mxu0 }
0x117f   :  { %v2884_v39 = vadd.f32 %v2883_v2, %v9282_v5  ;;  %v2904_v29 = vmax.f32 %v2892_v46, 0.0 }
0x1180   :  { %v6973_v57 = vpop.f32.mrf.mxu0 }
0x1181   :  { %v2895_v12 = vadd.f32 %v6973_v57, %v9283_v18  ;;  %v2902_v47 = vmax.f32 %v2884_v39, 0.0  ;;  %v8630_v2 = vpop.permute.xlu0 %5807 }
0x1182   :  { %v2886_v59 = vpop.f32.mrf.mxu0 }
0x1183   :  { %v2905_v6 = vmax.f32 %v2895_v12, 0.0  ;;  %v2887_v42 = vadd.f32 %v2886_v59, %v9284_v63 }
0x1184   :  { %v8596_v8 = vpop.f32.mrf.mxu0 }
0x1185   :  { %v2907_v4 = vpack.c.bf16 %v2905_v6, %v2904_v29  ;;  %v2903_v19 = vmax.f32 %v2887_v42, 0.0  ;;  %v3115_v13 = vmax.f32 %v8596_v8, 0.0  ;;  %v2925_v32 = vpop.permute.xlu0 %2924 }
0x1186   :  { %v8598_v1 = vpop.f32.mrf.mxu0 }
0x1187   :  { %v2906_v14 = vpack.c.bf16 %v2903_v19, %v2902_v47  ;;  %6974 = vmatprep.subr.bf16.mxu1 %v2907_v4  ;;  %v3113_v51 = vmax.f32 %v8598_v1, 0.0 }
0x1188   :  { %6975 = vmatpush3.bf16.msra.mxu1 %v2907_v4  ;;  %v8600_v56 = vpop.f32.mrf.mxu0 }
0x1189   :  { %v3116_v15 = vmax.f32 %v8600_v56, 0.0  ;;  %6976 = vmatprep.subr.bf16.mxu1 %v2906_v14  ;;  %v8632_v46 = vpop.permute.xlu0 %4368 }
0x118a   :  { %v8604_v62 = vpop.f32.mrf.mxu0 }
0x118b   :  { %v3118_v23 = vpack.c.bf16 %v3116_v15, %v3115_v13  ;;  %v3114_v48 = vmax.f32 %v8604_v62, 0.0 }
0x118c   :  { %6977 = vmatpush3.bf16.msra.mxu1 %v2906_v14 }
0x118d   :  { %6996 = vmatprep.subr.bf16.mxu1 %v3118_v23  ;;  %v3117_v26 = vpack.c.bf16 %v3114_v48, %v3113_v51  ;;  %v8634_v57 = vpop.permute.xlu0 %5812 }
0x118f   :  { %6979 = vmatmul.mubr.msk.bf16.vlgmr.msra.gmra.mxu1 %vm225_vm1, %v7286_v45 }
0x1190   :  { %6997 = vmatpush3.bf16.msra.mxu1 %v3118_v23  ;;  %7000 = vmatprep.mubr.msk.bf16.mxu1 %vm225_vm1, %v7287_v3  ;;  %v9285_v3 = vld [vmem:[#allocation40_spill] sm:$0xff] }
0x1191   :  { %6998 = vmatprep.subr.bf16.mxu1 %v3117_v26  ;;  %v2930_v59 = vpop.permute.xlu0 %2929 }
0x1194   :  { %6999 = vmatpush3.bf16.msra.mxu1 %v3117_v26 }
0x1197   :  { %7001 = vmatmul.mubr.msk.bf16.vlgmr.msra.gmra.mxu1 %vm225_vm1, %v7288_v54 }
0x1198   :  { %7008 = vmatprep.mubr.msk.bf16.mxu1 %vm225_vm1, %v7289_v60 }
0x124f   :  { %v6980_v5 = vpop.f32.mrf.mxu1 }
0x1250   :  { %v2991_v39 = vadd.f32 %v6980_v5, %v2925_v32 }
0x1251   :  { %v2982_v18 = vpop.f32.mrf.mxu1 }
0x1252   :  { %v2983_v12 = vadd.f32 %v2982_v18, %v8474_v53  ;;  %v2999_v42 = vadd.f32 %v2991_v39, %v8543_v11  ;;  %v9286_v11 = vld [vmem:[#allocation42_spill] sm:$0xff] }
0x1253   :  { %v6981_v29 = vpop.f32.mrf.mxu1 }
0x1254   :  { %v2997_v6 = vadd.f32 %v2983_v12, %v8546_v50  ;;  %v2994_v63 = vadd.f32 %v6981_v29, %v2930_v59  ;;  %v3003_v23 = vmax.f32 %v2999_v42, 0.0  ;;  %v9288_v12 = vld [vmem:[#allocation43_spill] sm:$0xff] }
0x1255   :  { %v2985_v47 = vpop.f32.mrf.mxu1 }
0x1256   :  { %v2986_v4 = vadd.f32 %v2985_v47, %v2920_v33  ;;  %v3000_v19 = vadd.f32 %v2994_v63, %v8548_v7  ;;  %v3001_v13 = vmax.f32 %v2997_v6, 0.0  ;;  %v9287_v33 = vld [vmem:[#allocation41_spill] sm:$0xff]  ;;  %v3007_v7 = vmul.f32 %v3003_v23, %v8201_v17 }
0x1257   :  { %v7002_v14 = vpop.f32.mrf.mxu1 }
0x1258   :  { %v2998_v15 = vadd.f32 %v2986_v4, %v8550_v49  ;;  %v3202_v53 = vadd.f32 %v7002_v14, %v9285_v3  ;;  %v3004_v51 = vmax.f32 %v3000_v19, 0.0  ;;  %v3005_v50 = vmul.f32 %v3001_v13, %v8194_v25 }
0x1259   :  { %v3193_v48 = vpop.f32.mrf.mxu1 }
0x125a   :  { %v3002_v45 = vmax.f32 %v2998_v15, 0.0  ;;  %v3194_v60 = vadd.f32 %v3193_v48, %v9286_v11  ;;  %v3214_v49 = vmax.f32 %v3202_v53, 0.0  ;;  %v3008_v29 = vmul.f32 %v3004_v51, %v8208_v22  ;;  %v7290_v15 = vld [vmem:[%s9134_s2 + $0x18] sm:$0xff]   ;;  %v7291_v51 = vld [vmem:[%s9134_s2 + $0x20] sm:$0xff]  }
0x125b   :  { %v7003_v26 = vpop.f32.mrf.mxu1 }
0x125c   :  { %v3006_v54 = vmul.f32 %v3002_v45, %v8197_v0  ;;  %v3205_v32 = vadd.f32 %v7003_v26, %v9287_v33  ;;  %v3212_v63 = vmax.f32 %v3194_v60, 0.0  ;;  %v6990_v26 = vpop.f32.mrf.mxu0 }
0x125d   :  { %v3196_v5 = vpop.f32.mrf.mxu1 }
0x125e   :  { %v3009_v39 = vadd.f32 %v3006_v54, %v3005_v50  ;;  %v3215_v18 = vmax.f32 %v3205_v32, 0.0  ;;  %v3197_v59 = vadd.f32 %v3196_v5, %v9288_v12  ;;  %v9289_v54 = vld [vmem:[#allocation44_spill] sm:$0xff]  ;;  %v3078_v60 = vpop.f32.mrf.mxu0 }
0x1260   :  { %v3010_v6 = vadd.f32 %v3009_v39, %v3007_v7  ;;  %v3217_v42 = vpack.c.bf16 %v3215_v18, %v3214_v49  ;;  %v3213_v47 = vmax.f32 %v3197_v59, 0.0  ;;  %v9290_v7 = vld [vmem:[#allocation46_spill] sm:$0xff]  ;;  %v9291_v18 = vld [vmem:[#allocation45_spill] sm:$0xff]  ;;  %v6991_v59 = vpop.f32.mrf.mxu0 }
0x1262   :  { %v3011_v4 = vadd.f32 %v3010_v6, %v3008_v29  ;;  %v3216_v19 = vpack.c.bf16 %v3213_v47, %v3212_v63  ;;  %7004 = vmatprep.subr.bf16.mxu1 %v3217_v42 }
0x1263   :  { %7005 = vmatpush3.bf16.msra.mxu1 %v3217_v42  ;;  %v9292_v42 = vld [vmem:[#allocation47_spill] sm:$0xff] }
0x1264   :  { %v3012_v14 = vrot.slane %v3011_v4, 4  ;;  %7006 = vmatprep.subr.bf16.mxu1 %v3216_v19 }
0x1266   :  { %v3013_v13 = vadd.f32 %v3012_v14, %v3011_v4 }
0x1267   :  { %7007 = vmatpush3.bf16.msra.mxu1 %v3216_v19 }
0x1268   :  { %v3014_v23 = vrot.slane %v3013_v13, 2 }
0x126a   :  { %v3015_v48 = vadd.f32 %v3014_v23, %v3013_v13  ;;  %7009 = vmatmul.mubr.msk.bf16.vlgmr.msra.gmra.mxu1 %vm225_vm1, %v7290_v15  ;;  %v3081_v13 = vpop.f32.mrf.mxu0 }
0x126b   :  { %7016 = vmatprep.mubr.msk.bf16.mxu1 %vm225_vm1, %v7291_v51 }
0x126c   :  { %v3016_v45 = vrot.slane %v3015_v48, 1 }
0x126e   :  { %v3017_v3 = vadd.f32 %v3016_v45, %v3015_v48 }
0x1270   :  { %v3018_v53 = vadd.f32 %v3017_v3, %v8216_v41 }
0x1272   :  { %3019 = vst [vmem:[%s9137_s6 + $0x3] sm:$0x1] %v3018_v53 }
0x132a   :  { %v7010_v50 = vpop.f32.mrf.mxu1 }
0x132b   :  { %v3301_v11 = vadd.f32 %v7010_v50, %v9289_v54 }
0x132c   :  { %v3292_v33 = vpop.f32.mrf.mxu1 }
0x132d   :  { %v3309_v32 = vadd.f32 %v8596_v8, %v3301_v11  ;;  %v3293_v5 = vadd.f32 %v3292_v33, %v9290_v7  ;;  %v9294_v11 = vld [vmem:[#allocation50_spill] sm:$0xff]  ;;  %v9295_v33 = vld [vmem:[#allocation49_spill] sm:$0xff] }
0x132e   :  { %v7011_v39 = vpop.f32.mrf.mxu1 }
0x132f   :  { %v3307_v49 = vadd.f32 %v3293_v5, %v8598_v1  ;;  %v3304_v12 = vadd.f32 %v7011_v39, %v9291_v18  ;;  %v3313_v6 = vadd.f32 %v6990_v26, %v3309_v32  ;;  %v9293_v26 = vld [vmem:[#allocation48_spill] sm:$0xff] }
0x1330   :  { %v3295_v29 = vpop.f32.mrf.mxu1 }
0x1331   :  { %v3310_v63 = vadd.f32 %v8600_v56, %v3304_v12  ;;  %v3296_v47 = vadd.f32 %v3295_v29, %v9292_v42  ;;  %v3311_v4 = vadd.f32 %v3307_v49, %v3078_v60  ;;  %v3321_v15 = vmax.f32 %v3313_v6, 0.0  ;;  %v7292_v56 = vld [vmem:[%s9134_s2 + $0x28] sm:$0xff]   ;;  %v7294_v42 = vld [vmem:[%s9134_s2 + $0x38] sm:$0xff]  }
0x1332   :  { %v9296_v49 = vld [vmem:[#allocation51_spill] sm:$0xff] }
0x1333   :  { %v3314_v19 = vadd.f32 %v6991_v59, %v3310_v63  ;;  %v3308_v14 = vadd.f32 %v3296_v47, %v8604_v62  ;;  %v3319_v45 = vmax.f32 %v3311_v4, 0.0  ;;  %v7293_v62 = vld [vmem:[%s9134_s2 + $0x30] sm:$0xff]   ;;  %v7295_v47 = vld [vmem:[%s9134_s2 + $0x40] sm:$0xff]  }
0x1334   :  { %7024 = vmatprep.mubr.msk.bf16.mxu0 %vm225_vm1, %v7293_v62  ;;  %v9298_v62 = vld [vmem:[#allocation54_spill] sm:$0xff] }
0x1335   :  { %v3312_v8 = vadd.f32 %v3308_v14, %v3081_v13  ;;  %v3322_v23 = vmax.f32 %v3314_v19, 0.0  ;;  %v6994_v14 = vpop.f32.mrf.mxu0 }
0x1337   :  { %v3324_v48 = vpack.c.bf16 %v3322_v23, %v3321_v15  ;;  %v3320_v1 = vmax.f32 %v3312_v8, 0.0  ;;  %v3094_v13 = vpop.f32.mrf.mxu0 }
0x1339   :  { %7012 = vmatprep.subr.bf16.mxu1 %v3324_v48  ;;  %v3323_v3 = vpack.c.bf16 %v3320_v1, %v3319_v45  ;;  %v6995_v15 = vpop.f32.mrf.mxu0  ;;  %v9297_v45 = vld [vmem:[#allocation52_spill] sm:$0xff] }
0x133a   :  { %7013 = vmatpush3.bf16.msra.mxu1 %v3324_v48 }
0x133b   :  { %7014 = vmatprep.subr.bf16.mxu1 %v3323_v3  ;;  %v3097_v23 = vpop.f32.mrf.mxu0 }
0x133e   :  { %7015 = vmatpush3.bf16.msra.mxu1 %v3323_v3 }
0x1341   :  { %7017 = vmatmul.mubr.msk.bf16.vlgmr.msra.gmra.mxu1 %vm225_vm1, %v7292_v56 }
0x1342   :  { %7032 = vmatprep.mubr.msk.bf16.mxu1 %vm225_vm1, %v7295_v47  ;;  %v7296_v47 = vld [vmem:[%s9134_s2 + $0x48] sm:$0xff]  }
0x1401   :  { %v7018_v53 = vpop.f32.mrf.mxu1 }
0x1402   :  { %v3408_v50 = vadd.f32 %v7018_v53, %v9293_v26 }
0x1403   :  { %v3399_v51 = vpop.f32.mrf.mxu1 }
0x1404   :  { %v3400_v60 = vadd.f32 %v3399_v51, %v9294_v11  ;;  %v3420_v5 = vmax.f32 %v3408_v50, 0.0  ;;  %v9299_v50 = vld [vmem:[#allocation53_spill] sm:$0xff] }
0x1405   :  { %v7019_v54 = vpop.f32.mrf.mxu1 }
0x1406   :  { %v3411_v32 = vadd.f32 %v7019_v54, %v9295_v33  ;;  %v3418_v12 = vmax.f32 %v3400_v60, 0.0 }
0x1407   :  { %v3402_v7 = vpop.f32.mrf.mxu1 }
0x1408   :  { %v3421_v39 = vmax.f32 %v3411_v32, 0.0  ;;  %v3403_v18 = vadd.f32 %v3402_v7, %v9296_v49  ;;  %v9300_v32 = vld [vmem:[#allocation55_spill] sm:$0xff] }
0x140a   :  { %v3423_v59 = vpack.c.bf16 %v3421_v39, %v3420_v5  ;;  %v3419_v29 = vmax.f32 %v3403_v18, 0.0 }
0x140c   :  { %v3422_v63 = vpack.c.bf16 %v3419_v29, %v3418_v12  ;;  %7020 = vmatprep.subr.bf16.mxu0 %v3423_v59 }
0x140d   :  { %7021 = vmatpush3.bf16.msra.mxu0 %v3423_v59 }
0x140e   :  { %7022 = vmatprep.subr.bf16.mxu0 %v3422_v63 }
0x1411   :  { %7023 = vmatpush3.bf16.msra.mxu0 %v3422_v63  ;;  %v3743_v63 = vld [vmem:[%s9132_s0 + $0x34] sm:$0xf] }
0x1414   :  { %7025 = vmatmul.mubr.msk.bf16.vlgmr.msra.gmra.mxu0 %vm225_vm1, %v7294_v42 }
0x14d4   :  { %v7026_v48 = vpop.f32.mrf.mxu0 }
0x14d5   :  { %v3507_v1 = vadd.f32 %v7026_v48, %v9297_v45  ;;  %v9302_v45 = vld [vmem:[#allocation58_spill] sm:$0xff] }
0x14d6   :  { %v3498_v3 = vpop.f32.mrf.mxu0 }
0x14d7   :  { %v3515_v56 = vadd.f32 %v3507_v1, %v3313_v6  ;;  %v3499_v53 = vadd.f32 %v3498_v3, %v9298_v62 }
0x14d8   :  { %v7027_v51 = vpop.f32.mrf.mxu0 }
0x14d9   :  { %v3513_v26 = vadd.f32 %v3499_v53, %v3311_v4  ;;  %v3510_v54 = vadd.f32 %v7027_v51, %v9299_v50  ;;  %v8692_v60 = vadd.f32 %v6994_v14, %v3515_v56  ;;  %v7297_v14 = vld [vmem:[%s9134_s2 + $0x50] sm:$0xff]  }
0x14da   :  { %v3501_v11 = vpop.f32.mrf.mxu0  ;;  %7040 = vmatprep.mubr.msk.bf16.mxu0 %vm225_vm1, %v7297_v14 }
0x14db   :  { %v3516_v33 = vadd.f32 %v3510_v54, %v3314_v19  ;;  %v3502_v7 = vadd.f32 %v3501_v11, %v9300_v32  ;;  %v8695_v5 = vadd.f32 %v3513_v26, %v3094_v13  ;;  %v3527_v6 = vmax.f32 %v8692_v60, 0.0  ;;  %v3742_v19 = vld [vmem:[%s9132_s0 + $0x14] sm:$0xf] }
0x14dc   :  { %v6273_v42 = vcombine.low %v3742_v19, %v3743_v63  ;;  %v7300_v19 = vld [vmem:[%s9134_s2 + $0x8] sm:$0xff]   ;;  %v7301_v63 = vld [vmem:[%s9134_s2 + $0x10] sm:$0xff]  }
0x14dd   :  { %v8697_v39 = vadd.f32 %v6995_v15, %v3516_v33  ;;  %v3514_v49 = vadd.f32 %v3502_v7, %v3312_v8  ;;  %v3525_v59 = vmax.f32 %v8695_v5, 0.0 }
0x14df   :  { %v8699_v18 = vadd.f32 %v3514_v49, %v3097_v23  ;;  %v3528_v12 = vmax.f32 %v8697_v39, 0.0  ;;  %v9301_v23 = vld [vmem:[#allocation56_spill] sm:$0xff] }
0x14e1   :  { %v3530_v4 = vpack.c.bf16 %v3528_v12, %v3527_v6  ;;  %v3526_v29 = vmax.f32 %v8699_v18, 0.0  ;;  %v7298_v12 = vld [vmem:[%s9134_s2 + $0x58] sm:$0xff]  }
0x14e3   :  { %7028 = vmatprep.subr.bf16.mxu1 %v3530_v4  ;;  %v3529_v8 = vpack.c.bf16 %v3526_v29, %v3525_v59 }
0x14e4   :  { %7029 = vmatpush3.bf16.msra.mxu1 %v3530_v4  ;;  %v7299_v4 = vld [vmem:[%s9134_s2] sm:$0xff]  }
0x14e5   :  { %7030 = vmatprep.subr.bf16.mxu1 %v3529_v8 }
0x14e8   :  { %7031 = vmatpush3.bf16.msra.mxu1 %v3529_v8 }
0x14e9   :  { %7044 = vmatprep.subr.bf16.mxu1 %v6273_v42 }
0x14eb   :  { %7033 = vmatmul.mubr.msk.bf16.vlgmr.msra.gmra.mxu1 %vm225_vm1, %v7296_v47 }
0x14ec   :  { %7045 = vmatpush3.bf16.msra.mxu1 %v6273_v42  ;;  %7046 = vmatprep.mubr.msk.bf16.mxu1 %vm81_vm0, %v8569_v10 }
0x14f3   :  { %7047 = vmatmul.mubr.msk.bf16.vlgmr.msra.gmra.mxu1 %vm81_vm0, %v8576_v61 }
0x14f4   :  { %7050 = vmatprep.mubr.msk.bf16.mxu1 %vm81_vm0, %v8413_v20 }
0x14fb   :  { %7051 = vmatmul.mubr.msk.bf16.gmra.mxu1 %vm81_vm0, %v8420_v9  ;;  %v9303_v9 = vld [vmem:[#allocation57_spill] sm:$0xff] }
0x14fc   :  { %7054 = vmatprep.mubr.msk.bf16.mxu1 %vm81_vm0, %v8427_v28 }
0x1503   :  { %7055 = vmatmul.mubr.msk.bf16.gmra.mxu1 %vm81_vm0, %v8434_v35 }
0x15ab   :  { %v7034_v13 = vpop.f32.mrf.mxu1 }
0x15ac   :  { %v3614_v48 = vadd.f32 %v7034_v13, %v9301_v23  ;;  %v3652_v13 = vpop.permute.xlu1 %3651 }
0x15ad   :  { %v3605_v15 = vpop.f32.mrf.mxu1 }
0x15ae   :  { %v3606_v1 = vadd.f32 %v3605_v15, %v9302_v45  ;;  %v3626_v28 = vmax.f32 %v3614_v48, 0.0 }
0x15af   :  { %v7035_v20 = vpop.f32.mrf.mxu1 }
0x15b0   :  { %v3617_v3 = vadd.f32 %v7035_v20, %v9303_v9  ;;  %v3624_v51 = vmax.f32 %v3606_v1, 0.0 }
0x15b1   :  { %v3608_v56 = vpop.f32.mrf.mxu1 }
0x15b2   :  { %v3627_v62 = vmax.f32 %v3617_v3, 0.0  ;;  %v3609_v35 = vadd.f32 %v3608_v56, %v8062_v31 }
0x15b3   :  { %v8735_v53 = vpop.f32.mrf.mxu1 }
0x15b4   :  { %v3629_v26 = vpack.c.bf16 %v3627_v62, %v3626_v28  ;;  %v3625_v50 = vmax.f32 %v3609_v35, 0.0  ;;  %v3837_v32 = vmax.f32 %v8735_v53, 0.0 }
0x15b5   :  { %v8737_v54 = vpop.f32.mrf.mxu1 }
0x15b6   :  { %v3628_v11 = vpack.c.bf16 %v3625_v50, %v3624_v51  ;;  %7036 = vmatprep.subr.bf16.mxu0 %v3629_v26  ;;  %v3835_v59 = vmax.f32 %v8737_v54, 0.0 }
0x15b7   :  { %7037 = vmatpush3.bf16.msra.mxu0 %v3629_v26  ;;  %v8739_v33 = vpop.f32.mrf.mxu1 }
0x15b8   :  { %v3838_v7 = vmax.f32 %v8739_v33, 0.0  ;;  %7038 = vmatprep.subr.bf16.mxu0 %v3628_v11 }
0x15b9   :  { %v8743_v49 = vpop.f32.mrf.mxu1 }
0x15ba   :  { %v3840_v31 = vpack.c.bf16 %v3838_v7, %v3837_v32  ;;  %v3836_v6 = vmax.f32 %v8743_v49, 0.0 }
0x15bb   :  { %7039 = vmatpush3.bf16.msra.mxu0 %v3628_v11 }
0x15bc   :  { %7058 = vmatprep.subr.bf16.mxu0 %v3840_v31  ;;  %v3839_v29 = vpack.c.bf16 %v3836_v6, %v3835_v59 }
0x15be   :  { %7041 = vmatmul.mubr.msk.bf16.vlgmr.msra.gmra.mxu0 %vm225_vm1, %v7298_v12 }
0x15bf   :  { %7059 = vmatpush3.bf16.msra.mxu0 %v3840_v31  ;;  %7062 = vmatprep.mubr.msk.bf16.mxu0 %vm225_vm1, %v7299_v4 }
0x15c0   :  { %7060 = vmatprep.subr.bf16.mxu0 %v3839_v29 }
0x15c3   :  { %7061 = vmatpush3.bf16.msra.mxu0 %v3839_v29 }
0x15c6   :  { %7063 = vmatmul.mubr.msk.bf16.vlgmr.msra.gmra.mxu0 %vm225_vm1, %v7300_v19 }
0x15c7   :  { %7070 = vmatprep.mubr.msk.bf16.mxu0 %vm225_vm1, %v7301_v63  ;;  %v7302_v63 = vld [vmem:[%s9134_s2 + $0x18] sm:$0xff]  }
0x167e   :  { %v7042_v8 = vpop.f32.mrf.mxu0 }
0x167f   :  { %v3713_v42 = vadd.f32 %v7042_v8, %v8484_v58 }
0x1680   :  { %v3704_v47 = vpop.f32.mrf.mxu0 }
0x1681   :  { %v3705_v14 = vadd.f32 %v3704_v47, %v8476_v34  ;;  %v3721_v20 = vadd.f32 %v3713_v42, %v8692_v60 }
0x1682   :  { %v7043_v15 = vpop.f32.mrf.mxu0 }
0x1683   :  { %v3719_v23 = vadd.f32 %v3705_v14, %v8695_v5  ;;  %v3716_v48 = vadd.f32 %v7043_v15, %v3652_v13  ;;  %v3725_v58 = vmax.f32 %v3721_v20, 0.0  ;;  %v7303_v13 = vld [vmem:[%s9134_s2 + $0x20] sm:$0xff]   ;;  %v7052_v15 = vpop.f32.mrf.mxu1 }
0x1684   :  { %v3707_v45 = vpop.f32.mrf.mxu0 }
0x1685   :  { %v3708_v1 = vadd.f32 %v3707_v45, %v8624_v55  ;;  %v3722_v9 = vadd.f32 %v3716_v48, %v8697_v39  ;;  %v3723_v56 = vmax.f32 %v3719_v23, 0.0  ;;  %v3729_v39 = vmul.f32 %v3725_v58, %v8201_v17  ;;  %v3800_v20 = vpop.f32.mrf.mxu1 }
0x1686   :  { %v7064_v3 = vpop.f32.mrf.mxu0 }
0x1687   :  { %v3720_v28 = vadd.f32 %v3708_v1, %v8699_v18  ;;  %v3924_v34 = vadd.f32 %v7064_v3, %v8067_v21  ;;  %v3726_v51 = vmax.f32 %v3722_v9, 0.0  ;;  %v3727_v5 = vmul.f32 %v3723_v56, %v8194_v25 }
0x1688   :  { %v3915_v62 = vpop.f32.mrf.mxu0 }
0x1689   :  { %v3724_v35 = vmax.f32 %v3720_v28, 0.0  ;;  %v3916_v50 = vadd.f32 %v3915_v62, %v8072_v36  ;;  %v3936_v18 = vmax.f32 %v3924_v34, 0.0  ;;  %v3730_v21 = vmul.f32 %v3726_v51, %v8208_v22  ;;  %v9304_v28 = vld [vmem:[#allocation59_spill] sm:$0xff]  ;;  %v7053_v62 = vpop.f32.mrf.mxu1 }
0x168a   :  { %v7065_v26 = vpop.f32.mrf.mxu0 }
0x168b   :  { %v3728_v60 = vmul.f32 %v3724_v35, %v8197_v0  ;;  %v3927_v55 = vadd.f32 %v7065_v26, %v8070_v27  ;;  %v3934_v12 = vmax.f32 %v3916_v50, 0.0  ;;  %v9305_v26 = vld [vmem:[#allocation60_spill] sm:$0xff] }
0x168c   :  { %v3918_v11 = vpop.f32.mrf.mxu0 }
0x168d   :  { %v3731_v32 = vadd.f32 %v3728_v60, %v3727_v5  ;;  %v3937_v7 = vmax.f32 %v3927_v55, 0.0  ;;  %v3919_v31 = vadd.f32 %v3918_v11, %v8074_v37  ;;  %v3803_v55 = vpop.f32.mrf.mxu1 }
0x168f   :  { %v3732_v6 = vadd.f32 %v3731_v32, %v3729_v39  ;;  %v3939_v4 = vpack.c.bf16 %v3937_v7, %v3936_v18  ;;  %v3935_v59 = vmax.f32 %v3919_v31, 0.0 }
0x1691   :  { %v3733_v29 = vadd.f32 %v3732_v6, %v3730_v21  ;;  %v3938_v19 = vpack.c.bf16 %v3935_v59, %v3934_v12  ;;  %7066 = vmatprep.subr.bf16.mxu0 %v3939_v4  ;;  %v9306_v21 = vld [vmem:[#allocation61_spill] sm:$0xff] }
0x1692   :  { %7067 = vmatpush3.bf16.msra.mxu0 %v3939_v4  ;;  %v9307_v4 = vld [vmem:[#allocation63_spill] sm:$0xff] }
0x1693   :  { %v3734_v36 = vrot.slane %v3733_v29, 4  ;;  %7068 = vmatprep.subr.bf16.mxu0 %v3938_v19 }
0x1695   :  { %v3735_v27 = vadd.f32 %v3734_v36, %v3733_v29  ;;  %v9308_v29 = vld [vmem:[#allocation62_spill] sm:$0xff] }
0x1696   :  { %7069 = vmatpush3.bf16.msra.mxu0 %v3938_v19 }
0x1697   :  { %v3736_v8 = vrot.slane %v3735_v27, 2 }
0x1699   :  { %v3737_v37 = vadd.f32 %v3736_v8, %v3735_v27  ;;  %7071 = vmatmul.mubr.msk.bf16.vlgmr.msra.gmra.mxu0 %vm225_vm1, %v7302_v63  ;;  %v9309_v8 = vld [vmem:[#allocation64_spill] sm:$0xff] }
0x169a   :  { %7078 = vmatprep.mubr.msk.bf16.mxu0 %vm225_vm1, %v7303_v13 }
0x169b   :  { %v3738_v42 = vrot.slane %v3737_v37, 1 }
0x169d   :  { %v3739_v47 = vadd.f32 %v3738_v42, %v3737_v37 }
0x169f   :  { %v3740_v14 = vadd.f32 %v3739_v47, %v8216_v41 }
0x16a1   :  { %3741 = vst [vmem:[%s9137_s6 + $0x4] sm:$0x1] %v3740_v14 }
0x1759   :  { %v7072_v23 = vpop.f32.mrf.mxu0 }
0x175a   :  { %v4023_v48 = vadd.f32 %v7072_v23, %v8076_v38  ;;  %v7307_v23 = vld [vmem:[%s9134_s2 + $0x40] sm:$0xff]  }
0x175b   :  { %v4014_v45 = vpop.f32.mrf.mxu0 }
0x175c   :  { %v4031_v1 = vadd.f32 %v8735_v53, %v4023_v48  ;;  %v4015_v9 = vadd.f32 %v4014_v45, %v8080_v30  ;;  %v7056_v48 = vpop.f32.mrf.mxu1 }
0x175d   :  { %v7073_v3 = vpop.f32.mrf.mxu0 }
0x175e   :  { %v4029_v56 = vadd.f32 %v4015_v9, %v8737_v54  ;;  %v4026_v58 = vadd.f32 %v7073_v3, %v9304_v28  ;;  %v4035_v34 = vadd.f32 %v7052_v15, %v4031_v1  ;;  %v7306_v15 = vld [vmem:[%s9134_s2 + $0x38] sm:$0xff]  }
0x175f   :  { %v4017_v35 = vpop.f32.mrf.mxu0  ;;  %v9310_v3 = vld [vmem:[#allocation65_spill] sm:$0xff] }
0x1760   :  { %v4032_v51 = vadd.f32 %v8739_v33, %v4026_v58  ;;  %v4018_v5 = vadd.f32 %v4017_v35, %v9305_v26  ;;  %v4033_v60 = vadd.f32 %v4029_v56, %v3800_v20  ;;  %v4043_v39 = vmax.f32 %v4035_v34, 0.0  ;;  %v7304_v33 = vld [vmem:[%s9134_s2 + $0x28] sm:$0xff]   ;;  %v3816_v20 = vpop.f32.mrf.mxu1 }
0x1762   :  { %v4036_v38 = vadd.f32 %v7053_v62, %v4032_v51  ;;  %v4030_v50 = vadd.f32 %v4018_v5, %v8743_v49  ;;  %v4041_v32 = vmax.f32 %v4033_v60, 0.0  ;;  %v7305_v49 = vld [vmem:[%s9134_s2 + $0x30] sm:$0xff]   ;;  %v7057_v45 = vpop.f32.mrf.mxu1  ;;  %v9311_v62 = vld [vmem:[#allocation67_spill] sm:$0xff]  ;;  %v9312_v5 = vld [vmem:[#allocation66_spill] sm:$0xff] }
0x1763   :  { %7086 = vmatprep.mubr.msk.bf16.mxu1 %vm225_vm1, %v7305_v49 }
0x1764   :  { %v4034_v53 = vadd.f32 %v4030_v50, %v3803_v55  ;;  %v4044_v30 = vmax.f32 %v4036_v38, 0.0  ;;  %v3819_v1 = vpop.f32.mrf.mxu1 }
0x1766   :  { %v4046_v11 = vpack.c.bf16 %v4044_v30, %v4043_v39  ;;  %v4042_v54 = vmax.f32 %v4034_v53, 0.0 }
0x1768   :  { %7074 = vmatprep.subr.bf16.mxu0 %v4046_v11  ;;  %v4045_v18 = vpack.c.bf16 %v4042_v54, %v4041_v32 }
0x1769   :  { %7075 = vmatpush3.bf16.msra.mxu0 %v4046_v11  ;;  %v9313_v11 = vld [vmem:[#allocation68_spill] sm:$0xff] }
0x176a   :  { %7076 = vmatprep.subr.bf16.mxu0 %v4045_v18 }
0x176d   :  { %7077 = vmatpush3.bf16.msra.mxu0 %v4045_v18 }
0x1770   :  { %7079 = vmatmul.mubr.msk.bf16.vlgmr.msra.gmra.mxu0 %vm225_vm1, %v7304_v33 }
0x1771   :  { %7094 = vmatprep.mubr.msk.bf16.mxu0 %vm225_vm1, %v7307_v23 }
0x1830   :  { %v7080_v7 = vpop.f32.mrf.mxu0 }
0x1831   :  { %v4130_v6 = vadd.f32 %v7080_v7, %v9306_v21 }
0x1832   :  { %v4121_v31 = vpop.f32.mrf.mxu0 }
0x1833   :  { %v4122_v59 = vadd.f32 %v4121_v31, %v9307_v4  ;;  %v4142_v27 = vmax.f32 %v4130_v6, 0.0  ;;  %v4465_v6 = vld [vmem:[%s9132_s0 + $0x38] sm:$0xf]  ;;  %v7308_v4 = vld [vmem:[%s9134_s2 + $0x48] sm:$0xff]  }
0x1834   :  { %v7081_v12 = vpop.f32.mrf.mxu0 }
0x1835   :  { %v4133_v19 = vadd.f32 %v7081_v12, %v9308_v29  ;;  %v4140_v42 = vmax.f32 %v4122_v59, 0.0  ;;  %v8851_v59 = vld [vmem:[%s9133_s1 + $0x10] sm:$0xff]   ;;  %v8858_v29 = vld [vmem:[%s9133_s1 + $0x18] sm:$0xff]  }
0x1836   :  { %v4124_v36 = vpop.f32.mrf.mxu0 }
0x1837   :  { %v4143_v63 = vmax.f32 %v4133_v19, 0.0  ;;  %v4125_v37 = vadd.f32 %v4124_v36, %v9309_v8  ;;  %v7309_v19 = vld [vmem:[%s9134_s2 + $0x50] sm:$0xff]  }
0x1839   :  { %v4145_v47 = vpack.c.bf16 %v4143_v63, %v4142_v27  ;;  %v4141_v14 = vmax.f32 %v4125_v37, 0.0  ;;  %v9314_v63 = vld [vmem:[#allocation69_spill] sm:$0xff] }
0x183b   :  { %v4144_v13 = vpack.c.bf16 %v4141_v14, %v4140_v42  ;;  %7082 = vmatprep.subr.bf16.mxu1 %v4145_v47  ;;  %v9315_v42 = vld [vmem:[#allocation71_spill] sm:$0xff]  ;;  %v9316_v14 = vld [vmem:[#allocation70_spill] sm:$0xff] }
0x183c   :  { %7083 = vmatpush3.bf16.msra.mxu1 %v4145_v47 }
0x183d   :  { %7084 = vmatprep.subr.bf16.mxu1 %v4144_v13 }
0x1840   :  { %7085 = vmatpush3.bf16.msra.mxu1 %v4144_v13 }
0x1843   :  { %7087 = vmatmul.mubr.msk.bf16.vlgmr.msra.gmra.mxu1 %vm225_vm1, %v7306_v15 }
0x1844   :  { %7102 = vmatprep.mubr.msk.bf16.mxu1 %vm225_vm1, %v7309_v19 }
0x1903   :  { %v7088_v9 = vpop.f32.mrf.mxu1 }
0x1904   :  { %v4229_v56 = vadd.f32 %v7088_v9, %v9310_v3 }
0x1905   :  { %v4220_v28 = vpop.f32.mrf.mxu1 }
0x1906   :  { %v4237_v58 = vadd.f32 %v4229_v56, %v4035_v34  ;;  %v4221_v35 = vadd.f32 %v4220_v28, %v9311_v62 }
0x1907   :  { %v7089_v51 = vpop.f32.mrf.mxu1 }
0x1908   :  { %v4235_v26 = vadd.f32 %v4221_v35, %v4033_v60  ;;  %v4232_v50 = vadd.f32 %v7089_v51, %v9312_v5  ;;  %v8821_v39 = vadd.f32 %v7056_v48, %v4237_v58 }
0x1909   :  { %v4223_v55 = vpop.f32.mrf.mxu1 }
0x190a   :  { %v4238_v30 = vadd.f32 %v4232_v50, %v4036_v38  ;;  %v4224_v32 = vadd.f32 %v4223_v55, %v9313_v11  ;;  %v8824_v54 = vadd.f32 %v4235_v26, %v3816_v20  ;;  %v4249_v34 = vmax.f32 %v8821_v39, 0.0  ;;  %v4464_v38 = vld [vmem:[%s9132_s0 + $0x18] sm:$0xf]  ;;  %v9317_v20 = vld [vmem:[#allocation72_spill] sm:$0xff] }
0x190b   :  { %v6344_v12 = vcombine.low %v4464_v38, %v4465_v6  ;;  %v7310_v55 = vld [vmem:[%s9134_s2 + $0x58] sm:$0xff]   ;;  %v4374_v38 = vpop.permute.xlu0 %4373 }
0x190c   :  { %v8826_v18 = vadd.f32 %v7057_v45, %v4238_v30  ;;  %v4236_v33 = vadd.f32 %v4224_v32, %v4034_v53  ;;  %v4247_v31 = vmax.f32 %v8824_v54, 0.0  ;;  %v7311_v30 = vld [vmem:[%s9134_s2] sm:$0xff]  }
0x190e   :  { %v8828_v49 = vadd.f32 %v4236_v33, %v3819_v1  ;;  %v4250_v7 = vmax.f32 %v8826_v18, 0.0  ;;  %v7312_v33 = vld [vmem:[%s9134_s2 + $0x8] sm:$0xff]  }
0x1910   :  { %v4252_v60 = vpack.c.bf16 %v4250_v7, %v4249_v34  ;;  %v4248_v21 = vmax.f32 %v8828_v49, 0.0  ;;  %v7313_v34 = vld [vmem:[%s9134_s2 + $0x10] sm:$0xff]  }
0x1912   :  { %7090 = vmatprep.subr.bf16.mxu0 %v4252_v60  ;;  %v4251_v53 = vpack.c.bf16 %v4248_v21, %v4247_v31 }
0x1913   :  { %7091 = vmatpush3.bf16.msra.mxu0 %v4252_v60 }
0x1914   :  { %7092 = vmatprep.subr.bf16.mxu0 %v4251_v53 }
0x1917   :  { %7093 = vmatpush3.bf16.msra.mxu0 %v4251_v53 }
0x1918   :  { %7106 = vmatprep.subr.bf16.mxu0 %v6344_v12 }
0x191a   :  { %7095 = vmatmul.mubr.msk.bf16.vlgmr.msra.gmra.mxu0 %vm225_vm1, %v7308_v4 }
0x191b   :  { %7107 = vmatpush3.bf16.msra.mxu0 %v6344_v12  ;;  %7108 = vmatprep.mubr.msk.bf16.mxu0 %vm81_vm0, %v8569_v10  ;;  %v8865_v10 = vld [vmem:[%s9133_s1 + $0x20] sm:$0xff]  }
0x1922   :  { %7109 = vmatmul.mubr.msk.bf16.vlgmr.msra.gmra.mxu0 %vm81_vm0, %v8576_v61  ;;  %v8872_v61 = vld [vmem:[%s9133_s1 + $0x28] sm:$0xff]  }
0x1923   :  { %7112 = vmatprep.mubr.msk.bf16.mxu0 %vm81_vm0, %v8851_v59 }
0x192a   :  { %7113 = vmatmul.mubr.msk.bf16.gmra.mxu0 %vm81_vm0, %v8858_v29 }
0x192b   :  { %7116 = vmatprep.mubr.msk.bf16.mxu0 %vm81_vm0, %v8865_v10 }
0x1932   :  { %7117 = vmatmul.mubr.msk.bf16.gmra.mxu0 %vm81_vm0, %v8872_v61 }
0x19da   :  { %v7096_v36 = vpop.f32.mrf.mxu0 }
0x19db   :  { %v4336_v8 = vadd.f32 %v7096_v36, %v9314_v63 }
0x19dc   :  { %v4327_v27 = vpop.f32.mrf.mxu0 }
0x19dd   :  { %v4328_v47 = vadd.f32 %v4327_v27, %v9315_v42  ;;  %v4348_v23 = vmax.f32 %v4336_v8, 0.0 }
0x19de   :  { %v7097_v37 = vpop.f32.mrf.mxu0 }
0x19df   :  { %v4339_v13 = vadd.f32 %v7097_v37, %v9316_v14  ;;  %v4346_v9 = vmax.f32 %v4328_v47, 0.0 }
0x19e0   :  { %v4330_v15 = vpop.f32.mrf.mxu0 }
0x19e1   :  { %v4349_v48 = vmax.f32 %v4339_v13, 0.0  ;;  %v4331_v45 = vadd.f32 %v4330_v15, %v9317_v20 }
0x19e2   :  { %v8884_v1 = vpop.f32.mrf.mxu0 }
0x19e3   :  { %v4351_v3 = vpack.c.bf16 %v4349_v48, %v4348_v23  ;;  %v4347_v56 = vmax.f32 %v4331_v45, 0.0  ;;  %v4559_v35 = vmax.f32 %v8884_v1, 0.0  ;;  %v9319_v23 = vld [vmem:[#allocation75_spill] sm:$0xff] }
0x19e4   :  { %v8886_v28 = vpop.f32.mrf.mxu0 }
0x19e5   :  { %v4350_v58 = vpack.c.bf16 %v4347_v56, %v4346_v9  ;;  %7098 = vmatprep.subr.bf16.mxu1 %v4351_v3  ;;  %v4557_v11 = vmax.f32 %v8886_v28, 0.0  ;;  %v9321_v56 = vld [vmem:[#allocation76_spill] sm:$0xff] }
0x19e6   :  { %7099 = vmatpush3.bf16.msra.mxu1 %v4351_v3  ;;  %v8888_v62 = vpop.f32.mrf.mxu0 }
0x19e7   :  { %v4560_v51 = vmax.f32 %v8888_v62, 0.0  ;;  %7100 = vmatprep.subr.bf16.mxu1 %v4350_v58 }
0x19e8   :  { %v8892_v26 = vpop.f32.mrf.mxu0 }
0x19e9   :  { %v4562_v5 = vpack.c.bf16 %v4560_v51, %v4559_v35  ;;  %v4558_v50 = vmax.f32 %v8892_v26, 0.0 }
0x19ea   :  { %7101 = vmatpush3.bf16.msra.mxu1 %v4350_v58 }
0x19eb   :  { %7120 = vmatprep.subr.bf16.mxu1 %v4562_v5  ;;  %v4561_v32 = vpack.c.bf16 %v4558_v50, %v4557_v11 }
0x19ed   :  { %7103 = vmatmul.mubr.msk.bf16.vlgmr.msra.gmra.mxu1 %vm225_vm1, %v7310_v55 }
0x19ee   :  { %7121 = vmatpush3.bf16.msra.mxu1 %v4562_v5  ;;  %7124 = vmatprep.mubr.msk.bf16.mxu1 %vm225_vm1, %v7311_v30 }
0x19ef   :  { %7122 = vmatprep.subr.bf16.mxu1 %v4561_v32 }
0x19f2   :  { %7123 = vmatpush3.bf16.msra.mxu1 %v4561_v32 }
0x19f5   :  { %7125 = vmatmul.mubr.msk.bf16.vlgmr.msra.gmra.mxu1 %vm225_vm1, %v7312_v33 }
0x19f6   :  { %7132 = vmatprep.mubr.msk.bf16.mxu1 %vm225_vm1, %v7313_v34  ;;  %v7314_v34 = vld [vmem:[%s9134_s2 + $0x18] sm:$0xff]  }
0x1aad   :  { %v7104_v7 = vpop.f32.mrf.mxu1 }
0x1aae   :  { %v4435_v60 = vadd.f32 %v7104_v7, %v8632_v46 }
0x1aaf   :  { %v4426_v31 = vpop.f32.mrf.mxu1 }
0x1ab0   :  { %v4427_v21 = vadd.f32 %v4426_v31, %v8478_v24  ;;  %v4443_v4 = vadd.f32 %v4435_v60, %v8821_v39  ;;  %v9318_v24 = vld [vmem:[#allocation73_spill] sm:$0xff] }
0x1ab1   :  { %v7105_v6 = vpop.f32.mrf.mxu1 }
0x1ab2   :  { %v4441_v53 = vadd.f32 %v4427_v21, %v8824_v54  ;;  %v4438_v12 = vadd.f32 %v7105_v6, %v4374_v38  ;;  %v4447_v46 = vmax.f32 %v4443_v4, 0.0  ;;  %v7315_v6 = vld [vmem:[%s9134_s2 + $0x20] sm:$0xff]   ;;  %v9322_v4 = vld [vmem:[#allocation77_spill] sm:$0xff] }
0x1ab3   :  { %v4429_v19 = vpop.f32.mrf.mxu1 }
0x1ab4   :  { %v4430_v36 = vadd.f32 %v4429_v19, %v8626_v16  ;;  %v4444_v27 = vadd.f32 %v4438_v12, %v8826_v18  ;;  %v4445_v8 = vmax.f32 %v4441_v53, 0.0  ;;  %v9320_v16 = vld [vmem:[#allocation74_spill] sm:$0xff]  ;;  %v4451_v18 = vmul.f32 %v4447_v46, %v8201_v17  ;;  %v7114_v53 = vpop.f32.mrf.mxu0 }
0x1ab5   :  { %v7126_v63 = vpop.f32.mrf.mxu1 }
0x1ab6   :  { %v4442_v37 = vadd.f32 %v4430_v36, %v8828_v49  ;;  %v4646_v14 = vadd.f32 %v7126_v63, %v9318_v24  ;;  %v4448_v13 = vmax.f32 %v4444_v27, 0.0  ;;  %v4449_v54 = vmul.f32 %v4445_v8, %v8194_v25  ;;  %v4522_v36 = vpop.f32.mrf.mxu0  ;;  %v9323_v8 = vld [vmem:[#allocation79_spill] sm:$0xff] }
0x1ab7   :  { %v4637_v42 = vpop.f32.mrf.mxu1 }
0x1ab8   :  { %v4446_v47 = vmax.f32 %v4442_v37, 0.0  ;;  %v4638_v48 = vadd.f32 %v4637_v42, %v9319_v23  ;;  %v4658_v49 = vmax.f32 %v4646_v14, 0.0  ;;  %v4452_v35 = vmul.f32 %v4448_v13, %v8208_v22  ;;  %v7115_v14 = vpop.f32.mrf.mxu0 }
0x1ab9   :  { %v7127_v15 = vpop.f32.mrf.mxu1 }
0x1aba   :  { %v4450_v39 = vmul.f32 %v4446_v47, %v8197_v0  ;;  %v4649_v20 = vadd.f32 %v7127_v15, %v9320_v16  ;;  %v4656_v5 = vmax.f32 %v4638_v48, 0.0  ;;  %v9324_v47 = vld [vmem:[#allocation78_spill] sm:$0xff] }
0x1abb   :  { %v4640_v45 = vpop.f32.mrf.mxu1 }
0x1abc   :  { %v4453_v9 = vadd.f32 %v4450_v39, %v4449_v54  ;;  %v4659_v3 = vmax.f32 %v4649_v20, 0.0  ;;  %v4641_v58 = vadd.f32 %v4640_v45, %v9321_v56  ;;  %v9325_v39 = vld [vmem:[#allocation80_spill] sm:$0xff] }
0x1abe   :  { %v4454_v51 = vadd.f32 %v4453_v9, %v4451_v18  ;;  %v4661_v50 = vpack.c.bf16 %v4659_v3, %v4658_v49  ;;  %v4657_v55 = vmax.f32 %v4641_v58, 0.0  ;;  %v4525_v18 = vpop.f32.mrf.mxu0 }
0x1ac0   :  { %v4455_v30 = vadd.f32 %v4454_v51, %v4452_v35  ;;  %v4660_v11 = vpack.c.bf16 %v4657_v55, %v4656_v5  ;;  %7128 = vmatprep.subr.bf16.mxu1 %v4661_v50  ;;  %v9326_v51 = vld [vmem:[#allocation81_spill] sm:$0xff]  ;;  %v9327_v55 = vld [vmem:[#allocation83_spill] sm:$0xff] }
0x1ac1   :  { %7129 = vmatpush3.bf16.msra.mxu1 %v4661_v50 }
0x1ac2   :  { %v4456_v32 = vrot.slane %v4455_v30, 4  ;;  %7130 = vmatprep.subr.bf16.mxu1 %v4660_v11 }
0x1ac4   :  { %v4457_v33 = vadd.f32 %v4456_v32, %v4455_v30 }
0x1ac5   :  { %7131 = vmatpush3.bf16.msra.mxu1 %v4660_v11  ;;  %v9328_v11 = vld [vmem:[#allocation82_spill] sm:$0xff] }
0x1ac6   :  { %v4458_v7 = vrot.slane %v4457_v33, 2 }
0x1ac8   :  { %v4459_v60 = vadd.f32 %v4458_v7, %v4457_v33  ;;  %7133 = vmatmul.mubr.msk.bf16.vlgmr.msra.gmra.mxu1 %vm225_vm1, %v7314_v34 }
0x1ac9   :  { %7140 = vmatprep.mubr.msk.bf16.mxu1 %vm225_vm1, %v7315_v6 }
0x1aca   :  { %v4460_v31 = vrot.slane %v4459_v60, 1 }
0x1acc   :  { %v4461_v21 = vadd.f32 %v4460_v31, %v4459_v60  ;;  %v9329_v60 = vld [vmem:[#allocation84_spill] sm:$0xff] }
0x1ace   :  { %v4462_v38 = vadd.f32 %v4461_v21, %v8216_v41 }
0x1ad0   :  { %4463 = vst [vmem:[%s9137_s6 + $0x5] sm:$0x1] %v4462_v38 }
0x1b88   :  { %v7134_v12 = vpop.f32.mrf.mxu1 }
0x1b89   :  { %v4745_v19 = vadd.f32 %v7134_v12, %v9322_v4  ;;  %v7318_v12 = vld [vmem:[%s9134_s2 + $0x38] sm:$0xff]   ;;  %v7319_v4 = vld [vmem:[%s9134_s2 + $0x40] sm:$0xff]  }
0x1b8a   :  { %v4736_v27 = vpop.f32.mrf.mxu1 }
0x1b8b   :  { %v4753_v63 = vadd.f32 %v8884_v1, %v4745_v19  ;;  %v4737_v37 = vadd.f32 %v4736_v27, %v9323_v8  ;;  %v7118_v19 = vpop.f32.mrf.mxu0 }
0x1b8c   :  { %v7135_v46 = vpop.f32.mrf.mxu1 }
0x1b8d   :  { %v4751_v42 = vadd.f32 %v4737_v37, %v8886_v28  ;;  %v4748_v24 = vadd.f32 %v7135_v46, %v9324_v47  ;;  %v4757_v15 = vadd.f32 %v7114_v53, %v4753_v63  ;;  %v9330_v37 = vld [vmem:[#allocation85_spill] sm:$0xff] }
0x1b8e   :  { %v4739_v13 = vpop.f32.mrf.mxu1 }
0x1b8f   :  { %v4754_v54 = vadd.f32 %v8888_v62, %v4748_v24  ;;  %v4740_v23 = vadd.f32 %v4739_v13, %v9325_v39  ;;  %v4755_v48 = vadd.f32 %v4751_v42, %v4522_v36  ;;  %v4765_v45 = vmax.f32 %v4757_v15, 0.0  ;;  %v7316_v62 = vld [vmem:[%s9134_s2 + $0x28] sm:$0xff]   ;;  %v4538_v36 = vpop.f32.mrf.mxu0  ;;  %v9332_v39 = vld [vmem:[#allocation86_spill] sm:$0xff] }
0x1b90   :  { %v9331_v24 = vld [vmem:[#allocation87_spill] sm:$0xff] }
0x1b91   :  { %v4758_v16 = vadd.f32 %v7115_v14, %v4754_v54  ;;  %v4752_v20 = vadd.f32 %v4740_v23, %v8892_v26  ;;  %v4763_v3 = vmax.f32 %v4755_v48, 0.0  ;;  %v7317_v26 = vld [vmem:[%s9134_s2 + $0x30] sm:$0xff]   ;;  %v7119_v27 = vpop.f32.mrf.mxu0 }
0x1b92   :  { %7148 = vmatprep.mubr.msk.bf16.mxu0 %vm225_vm1, %v7317_v26 }
0x1b93   :  { %v4756_v1 = vadd.f32 %v4752_v20, %v4525_v18  ;;  %v4766_v9 = vmax.f32 %v4758_v16, 0.0  ;;  %v4541_v63 = vpop.f32.mrf.mxu0 }
0x1b95   :  { %v4768_v49 = vpack.c.bf16 %v4766_v9, %v4765_v45  ;;  %v4764_v28 = vmax.f32 %v4756_v1, 0.0  ;;  %v9333_v9 = vld [vmem:[#allocation88_spill] sm:$0xff] }
0x1b97   :  { %7136 = vmatprep.subr.bf16.mxu1 %v4768_v49  ;;  %v4767_v56 = vpack.c.bf16 %v4764_v28, %v4763_v3 }
0x1b98   :  { %7137 = vmatpush3.bf16.msra.mxu1 %v4768_v49 }
0x1b99   :  { %7138 = vmatprep.subr.bf16.mxu1 %v4767_v56 }
0x1b9c   :  { %7139 = vmatpush3.bf16.msra.mxu1 %v4767_v56 }
0x1b9f   :  { %7141 = vmatmul.mubr.msk.bf16.vlgmr.msra.gmra.mxu1 %vm225_vm1, %v7316_v62 }
0x1ba0   :  { %7156 = vmatprep.mubr.msk.bf16.mxu1 %vm225_vm1, %v7319_v4 }
0x1c5f   :  { %v7142_v58 = vpop.f32.mrf.mxu1 }
0x1c60   :  { %v4852_v5 = vadd.f32 %v7142_v58, %v9326_v51  ;;  %v5187_v51 = vld [vmem:[%s9132_s0 + $0x3c] sm:$0xf] }
0x1c61   :  { %v4843_v35 = vpop.f32.mrf.mxu1 }
0x1c62   :  { %v4844_v30 = vadd.f32 %v4843_v35, %v9327_v55  ;;  %v4864_v34 = vmax.f32 %v4852_v5, 0.0  ;;  %v7347_v55 = vld [vmem:[%s9133_s1] sm:$0xff]  }
0x1c63   :  { %v7143_v50 = vpop.f32.mrf.mxu1 }
0x1c64   :  { %v4855_v32 = vadd.f32 %v7143_v50, %v9328_v11  ;;  %v4862_v21 = vmax.f32 %v4844_v30, 0.0  ;;  %v7320_v50 = vld [vmem:[%s9134_s2 + $0x48] sm:$0xff]   ;;  %v7321_v11 = vld [vmem:[%s9134_s2 + $0x50] sm:$0xff]  }
0x1c65   :  { %v4846_v33 = vpop.f32.mrf.mxu1  ;;  %v7348_v30 = vld [vmem:[%s9133_s1 + $0x8] sm:$0xff]  }
0x1c66   :  { %v4865_v7 = vmax.f32 %v4855_v32, 0.0  ;;  %v4847_v31 = vadd.f32 %v4846_v33, %v9329_v60  ;;  %v9335_v60 = vld [vmem:[#allocation91_spill] sm:$0xff] }
0x1c68   :  { %v4867_v38 = vpack.c.bf16 %v4865_v7, %v4864_v34  ;;  %v4863_v6 = vmax.f32 %v4847_v31, 0.0  ;;  %v9334_v34 = vld [vmem:[#allocation89_spill] sm:$0xff] }
0x1c6a   :  { %v4866_v53 = vpack.c.bf16 %v4863_v6, %v4862_v21  ;;  %7144 = vmatprep.subr.bf16.mxu0 %v4867_v38 }
0x1c6b   :  { %7145 = vmatpush3.bf16.msra.mxu0 %v4867_v38 }
0x1c6c   :  { %7146 = vmatprep.subr.bf16.mxu0 %v4866_v53 }
0x1c6f   :  { %7147 = vmatpush3.bf16.msra.mxu0 %v4866_v53  ;;  %v9337_v53 = vld [vmem:[#allocation92_spill] sm:$0xff] }
0x1c72   :  { %7149 = vmatmul.mubr.msk.bf16.vlgmr.msra.gmra.mxu0 %vm225_vm1, %v7318_v12 }
0x1c73   :  { %7164 = vmatprep.mubr.msk.bf16.mxu0 %vm225_vm1, %v7321_v11 }
0x1d32   :  { %v7150_v8 = vpop.f32.mrf.mxu0 }
0x1d33   :  { %v4951_v46 = vadd.f32 %v7150_v8, %v9330_v37 }
0x1d34   :  { %v4942_v42 = vpop.f32.mrf.mxu0 }
0x1d35   :  { %v4959_v47 = vadd.f32 %v4951_v46, %v4757_v15  ;;  %v4943_v14 = vadd.f32 %v4942_v42, %v9331_v24 }
0x1d36   :  { %v7151_v13 = vpop.f32.mrf.mxu0 }
0x1d37   :  { %v4957_v54 = vadd.f32 %v4943_v14, %v4755_v48  ;;  %v4954_v23 = vadd.f32 %v7151_v13, %v9332_v39  ;;  %v8970_v18 = vadd.f32 %v7118_v19, %v4959_v47  ;;  %v7322_v14 = vld [vmem:[%s9134_s2 + $0x58] sm:$0xff]   ;;  %v7323_v13 = vld [vmem:[%s9134_s2] sm:$0xff]  }
0x1d38   :  { %v4945_v20 = vpop.f32.mrf.mxu0 }
0x1d39   :  { %v4960_v45 = vadd.f32 %v4954_v23, %v4758_v16  ;;  %v4946_v49 = vadd.f32 %v4945_v20, %v9333_v9  ;;  %v8973_v3 = vadd.f32 %v4957_v54, %v4538_v36  ;;  %v4971_v15 = vmax.f32 %v8970_v18, 0.0  ;;  %v5186_v16 = vld [vmem:[%s9132_s0 + $0x1c] sm:$0xf]  ;;  %v7324_v23 = vld [vmem:[%s9134_s2 + $0x8] sm:$0xff]   ;;  %v7325_v20 = vld [vmem:[%s9134_s2 + $0x10] sm:$0xff]  }
0x1d3a   :  { %v6415_v5 = vcombine.low %v5186_v16, %v5187_v51 }
0x1d3b   :  { %v8975_v28 = vadd.f32 %v7119_v27, %v4960_v45  ;;  %v4958_v56 = vadd.f32 %v4946_v49, %v4756_v1  ;;  %v4969_v58 = vmax.f32 %v8973_v3, 0.0 }
0x1d3d   :  { %v8977_v62 = vadd.f32 %v4958_v56, %v4541_v63  ;;  %v4972_v26 = vmax.f32 %v8975_v28, 0.0 }
0x1d3f   :  { %v4974_v48 = vpack.c.bf16 %v4972_v26, %v4971_v15  ;;  %v4970_v35 = vmax.f32 %v8977_v62, 0.0  ;;  %v5096_v15 = vpop.permute.xlu1 %5095 }
0x1d41   :  { %7152 = vmatprep.subr.bf16.mxu1 %v4974_v48  ;;  %v4973_v1 = vpack.c.bf16 %v4970_v35, %v4969_v58 }
0x1d42   :  { %7153 = vmatpush3.bf16.msra.mxu1 %v4974_v48 }
0x1d43   :  { %7154 = vmatprep.subr.bf16.mxu1 %v4973_v1 }
0x1d46   :  { %7155 = vmatpush3.bf16.msra.mxu1 %v4973_v1 }
0x1d47   :  { %7168 = vmatprep.subr.bf16.mxu1 %v6415_v5 }
0x1d49   :  { %7157 = vmatmul.mubr.msk.bf16.vlgmr.msra.gmra.mxu1 %vm225_vm1, %v7320_v50 }
0x1d4a   :  { %7169 = vmatpush3.bf16.msra.mxu1 %v6415_v5  ;;  %7170 = vmatprep.mubr.msk.bf16.mxu1 %vm81_vm0, %v7347_v55 }
0x1d51   :  { %7171 = vmatmul.mubr.msk.bf16.vlgmr.msra.gmra.mxu1 %vm81_vm0, %v7348_v30 }
0x1d52   :  { %7174 = vmatprep.mubr.msk.bf16.mxu1 %vm81_vm0, %v8851_v59 }
0x1d59   :  { %7175 = vmatmul.mubr.msk.bf16.gmra.mxu1 %vm81_vm0, %v8858_v29  ;;  %v9336_v29 = vld [vmem:[#allocation90_spill] sm:$0xff] }
0x1d5a   :  { %7178 = vmatprep.mubr.msk.bf16.mxu1 %vm81_vm0, %v8865_v10 }
0x1d61   :  { %7179 = vmatmul.mubr.msk.bf16.gmra.mxu1 %vm81_vm0, %v8872_v61 }
0x1e09   :  { %v7158_v32 = vpop.f32.mrf.mxu1 }
0x1e0a   :  { %v5058_v7 = vadd.f32 %v7158_v32, %v9334_v34 }
0x1e0b   :  { %v5049_v33 = vpop.f32.mrf.mxu1 }
0x1e0c   :  { %v5050_v31 = vadd.f32 %v5049_v33, %v9335_v60  ;;  %v5070_v10 = vmax.f32 %v5058_v7, 0.0  ;;  %v9339_v7 = vld [vmem:[#allocation95_spill] sm:$0xff] }
0x1e0d   :  { %v7159_v59 = vpop.f32.mrf.mxu1 }
0x1e0e   :  { %v5061_v21 = vadd.f32 %v7159_v59, %v9336_v29  ;;  %v5068_v4 = vmax.f32 %v5050_v31, 0.0 }
0x1e0f   :  { %v5052_v38 = vpop.f32.mrf.mxu1 }
0x1e10   :  { %v5071_v6 = vmax.f32 %v5061_v21, 0.0  ;;  %v5053_v61 = vadd.f32 %v5052_v38, %v9337_v53  ;;  %v9341_v38 = vld [vmem:[#allocation96_spill] sm:$0xff] }
0x1e11   :  { %v9017_v12 = vpop.f32.mrf.mxu1 }
0x1e12   :  { %v5073_v19 = vpack.c.bf16 %v5071_v6, %v5070_v10  ;;  %v5069_v36 = vmax.f32 %v5053_v61, 0.0  ;;  %v5281_v37 = vmax.f32 %v9017_v12, 0.0 }
0x1e13   :  { %v9019_v27 = vpop.f32.mrf.mxu1 }
0x1e14   :  { %v5072_v63 = vpack.c.bf16 %v5069_v36, %v5068_v4  ;;  %7160 = vmatprep.subr.bf16.mxu0 %v5073_v19  ;;  %v5279_v54 = vmax.f32 %v9019_v27, 0.0 }
0x1e15   :  { %7161 = vmatpush3.bf16.msra.mxu0 %v5073_v19  ;;  %v9021_v8 = vpop.f32.mrf.mxu1 }
0x1e16   :  { %v5282_v46 = vmax.f32 %v9021_v8, 0.0  ;;  %7162 = vmatprep.subr.bf16.mxu0 %v5072_v63 }
0x1e17   :  { %v9025_v42 = vpop.f32.mrf.mxu1 }
0x1e18   :  { %v5284_v47 = vpack.c.bf16 %v5282_v46, %v5281_v37  ;;  %v5280_v24 = vmax.f32 %v9025_v42, 0.0 }
0x1e19   :  { %7163 = vmatpush3.bf16.msra.mxu0 %v5072_v63 }
0x1e1a   :  { %7182 = vmatprep.subr.bf16.mxu0 %v5284_v47  ;;  %v5283_v39 = vpack.c.bf16 %v5280_v24, %v5279_v54 }
0x1e1c   :  { %7165 = vmatmul.mubr.msk.bf16.vlgmr.msra.gmra.mxu0 %vm225_vm1, %v7322_v14 }
0x1e1d   :  { %7183 = vmatpush3.bf16.msra.mxu0 %v5284_v47  ;;  %7186 = vmatprep.mubr.msk.bf16.mxu0 %vm225_vm1, %v7323_v13  ;;  %v7326_v47 = vld [vmem:[%s9134_s2 + $0x18] sm:$0xff]  }
0x1e1e   :  { %7184 = vmatprep.subr.bf16.mxu0 %v5283_v39 }
0x1e21   :  { %7185 = vmatpush3.bf16.msra.mxu0 %v5283_v39 }
0x1e24   :  { %7187 = vmatmul.mubr.msk.bf16.vlgmr.msra.gmra.mxu0 %vm225_vm1, %v7324_v23  ;;  %v7327_v23 = vld [vmem:[%s9134_s2 + $0x20] sm:$0xff]  }
0x1e25   :  { %7194 = vmatprep.mubr.msk.bf16.mxu0 %vm225_vm1, %v7325_v20  ;;  %v7176_v20 = vpop.f32.mrf.mxu1 }
0x1edc   :  { %v7166_v45 = vpop.f32.mrf.mxu0 }
0x1edd   :  { %v5157_v9 = vadd.f32 %v7166_v45, %v8486_v44 }
0x1ede   :  { %v5148_v49 = vpop.f32.mrf.mxu0 }
0x1edf   :  { %v5149_v56 = vadd.f32 %v5148_v49, %v8480_v52  ;;  %v5165_v35 = vadd.f32 %v5157_v9, %v8970_v18  ;;  %v9338_v52 = vld [vmem:[#allocation93_spill] sm:$0xff] }
0x1ee0   :  { %v7167_v26 = vpop.f32.mrf.mxu0  ;;  %v9342_v9 = vld [vmem:[#allocation97_spill] sm:$0xff] }
0x1ee1   :  { %v5163_v48 = vadd.f32 %v5149_v56, %v8973_v3  ;;  %v5160_v58 = vadd.f32 %v7167_v26, %v5096_v15  ;;  %v5169_v44 = vmax.f32 %v5165_v35, 0.0  ;;  %v5244_v56 = vpop.f32.mrf.mxu1 }
0x1ee2   :  { %v5151_v16 = vpop.f32.mrf.mxu0 }
0x1ee3   :  { %v5152_v51 = vadd.f32 %v5151_v16, %v8628_v40  ;;  %v5166_v1 = vadd.f32 %v5160_v58, %v8975_v28  ;;  %v5167_v50 = vmax.f32 %v5163_v48, 0.0  ;;  %v9340_v40 = vld [vmem:[#allocation94_spill] sm:$0xff]  ;;  %v5173_v28 = vmul.f32 %v5169_v44, %v8201_v17  ;;  %v9343_v48 = vld [vmem:[#allocation99_spill] sm:$0xff] }
0x1ee4   :  { %v7188_v5 = vpop.f32.mrf.mxu0 }
0x1ee5   :  { %v5164_v55 = vadd.f32 %v5152_v51, %v8977_v62  ;;  %v5368_v32 = vadd.f32 %v7188_v5, %v9338_v52  ;;  %v5170_v33 = vmax.f32 %v5166_v1, 0.0  ;;  %v5171_v3 = vmul.f32 %v5167_v50, %v8194_v25  ;;  %v9344_v51 = vld [vmem:[#allocation98_spill] sm:$0xff]  ;;  %v7177_v5 = vpop.f32.mrf.mxu1 }
0x1ee6   :  { %v5359_v30 = vpop.f32.mrf.mxu0 }
0x1ee7   :  { %v5168_v11 = vmax.f32 %v5164_v55, 0.0  ;;  %v5360_v59 = vadd.f32 %v5359_v30, %v9339_v7  ;;  %v5380_v62 = vmax.f32 %v5368_v32, 0.0  ;;  %v5174_v6 = vmul.f32 %v5170_v33, %v8208_v22  ;;  %v9345_v30 = vld [vmem:[#allocation100_spill] sm:$0xff] }
0x1ee8   :  { %v7189_v34 = vpop.f32.mrf.mxu0 }
0x1ee9   :  { %v5172_v18 = vmul.f32 %v5168_v11, %v8197_v0  ;;  %v5371_v60 = vadd.f32 %v7189_v34, %v9340_v40  ;;  %v5378_v61 = vmax.f32 %v5360_v59, 0.0  ;;  %v5247_v34 = vpop.f32.mrf.mxu1 }
0x1eea   :  { %v5362_v31 = vpop.f32.mrf.mxu0 }
0x1eeb   :  { %v5175_v29 = vadd.f32 %v5172_v18, %v5171_v3  ;;  %v5381_v21 = vmax.f32 %v5371_v60, 0.0  ;;  %v5363_v10 = vadd.f32 %v5362_v31, %v9341_v38  ;;  %v9346_v31 = vld [vmem:[#allocation101_spill] sm:$0xff] }
0x1eed   :  { %v5176_v53 = vadd.f32 %v5175_v29, %v5173_v28  ;;  %v5383_v4 = vpack.c.bf16 %v5381_v21, %v5380_v62  ;;  %v5379_v19 = vmax.f32 %v5363_v10, 0.0  ;;  %v9347_v21 = vld [vmem:[#allocation103_spill] sm:$0xff]  ;;  %v9348_v10 = vld [vmem:[#allocation102_spill] sm:$0xff] }
0x1eef   :  { %v5177_v36 = vadd.f32 %v5176_v53, %v5174_v6  ;;  %v5382_v63 = vpack.c.bf16 %v5379_v19, %v5378_v61  ;;  %7190 = vmatprep.subr.bf16.mxu0 %v5383_v4  ;;  %v9349_v19 = vld [vmem:[#allocation104_spill] sm:$0xff] }
0x1ef0   :  { %7191 = vmatpush3.bf16.msra.mxu0 %v5383_v4 }
0x1ef1   :  { %v5178_v37 = vrot.slane %v5177_v36, 4  ;;  %7192 = vmatprep.subr.bf16.mxu0 %v5382_v63 }
0x1ef3   :  { %v5179_v46 = vadd.f32 %v5178_v37, %v5177_v36 }
0x1ef4   :  { %7193 = vmatpush3.bf16.msra.mxu0 %v5382_v63 }
0x1ef5   :  { %v5180_v24 = vrot.slane %v5179_v46, 2 }
0x1ef7   :  { %v5181_v14 = vadd.f32 %v5180_v24, %v5179_v46  ;;  %7195 = vmatmul.mubr.msk.bf16.vlgmr.msra.gmra.mxu0 %vm225_vm1, %v7326_v47  ;;  %v7330_v24 = vld [vmem:[%s9134_s2 + $0x38] sm:$0xff]  }
0x1ef8   :  { %7202 = vmatprep.mubr.msk.bf16.mxu0 %vm225_vm1, %v7327_v23 }
0x1ef9   :  { %v5182_v13 = vrot.slane %v5181_v14, 1 }
0x1efb   :  { %v5183_v54 = vadd.f32 %v5182_v13, %v5181_v14  ;;  %v7331_v14 = vld [vmem:[%s9134_s2 + $0x40] sm:$0xff]   ;;  %v7180_v13 = vpop.f32.mrf.mxu1 }
0x1efd   :  { %v5184_v39 = vadd.f32 %v5183_v54, %v8216_v41  ;;  %v5260_v54 = vpop.f32.mrf.mxu1 }
0x1eff   :  { %5185 = vst [vmem:[%s9137_s6 + $0x6] sm:$0x1] %v5184_v39  ;;  %v7181_v39 = vpop.f32.mrf.mxu1 }
0x1f01   :  { %v5263_v23 = vpop.f32.mrf.mxu1 }
0x1fb7   :  { %v7196_v45 = vpop.f32.mrf.mxu0 }
0x1fb8   :  { %v5467_v49 = vadd.f32 %v7196_v45, %v9342_v9  ;;  %v9350_v45 = vld [vmem:[#allocation105_spill] sm:$0xff] }
0x1fb9   :  { %v5458_v15 = vpop.f32.mrf.mxu0 }
0x1fba   :  { %v5475_v26 = vadd.f32 %v9017_v12, %v5467_v49  ;;  %v5459_v58 = vadd.f32 %v5458_v15, %v9343_v48  ;;  %v9351_v15 = vld [vmem:[#allocation107_spill] sm:$0xff] }
0x1fbb   :  { %v7197_v35 = vpop.f32.mrf.mxu0 }
0x1fbc   :  { %v5473_v16 = vadd.f32 %v5459_v58, %v9019_v27  ;;  %v5470_v1 = vadd.f32 %v7197_v35, %v9344_v51  ;;  %v5479_v55 = vadd.f32 %v7176_v20, %v5475_v26  ;;  %v9352_v35 = vld [vmem:[#allocation106_spill] sm:$0xff] }
0x1fbd   :  { %v5461_v50 = vpop.f32.mrf.mxu0 }
0x1fbe   :  { %v5476_v44 = vadd.f32 %v9021_v8, %v5470_v1  ;;  %v5462_v11 = vadd.f32 %v5461_v50, %v9345_v30  ;;  %v5477_v52 = vadd.f32 %v5473_v16, %v5244_v56  ;;  %v5487_v3 = vmax.f32 %v5479_v55, 0.0  ;;  %v7328_v8 = vld [vmem:[%s9134_s2 + $0x28] sm:$0xff]  }
0x1fbf   :  { %v9353_v50 = vld [vmem:[#allocation108_spill] sm:$0xff] }
0x1fc0   :  { %v5480_v32 = vadd.f32 %v7177_v5, %v5476_v44  ;;  %v5474_v33 = vadd.f32 %v5462_v11, %v9025_v42  ;;  %v5485_v59 = vmax.f32 %v5477_v52, 0.0  ;;  %v7329_v42 = vld [vmem:[%s9134_s2 + $0x30] sm:$0xff]  }
0x1fc1   :  { %7210 = vmatprep.mubr.msk.bf16.mxu1 %vm225_vm1, %v7329_v42 }
0x1fc2   :  { %v5478_v12 = vadd.f32 %v5474_v33, %v5247_v34  ;;  %v5488_v18 = vmax.f32 %v5480_v32, 0.0 }
0x1fc4   :  { %v5490_v7 = vpack.c.bf16 %v5488_v18, %v5487_v3  ;;  %v5486_v27 = vmax.f32 %v5478_v12, 0.0 }
0x1fc6   :  { %7198 = vmatprep.subr.bf16.mxu0 %v5490_v7  ;;  %v5489_v40 = vpack.c.bf16 %v5486_v27, %v5485_v59 }
0x1fc7   :  { %7199 = vmatpush3.bf16.msra.mxu0 %v5490_v7 }
0x1fc8   :  { %7200 = vmatprep.subr.bf16.mxu0 %v5489_v40 }
0x1fcb   :  { %7201 = vmatpush3.bf16.msra.mxu0 %v5489_v40 }
0x1fce   :  { %7203 = vmatmul.mubr.msk.bf16.vlgmr.msra.gmra.mxu0 %vm225_vm1, %v7328_v8  ;;  %v9354_v8 = vld [vmem:[#allocation109_spill] sm:$0xff] }
0x1fcf   :  { %7218 = vmatprep.mubr.msk.bf16.mxu0 %vm225_vm1, %v7331_v14  ;;  %v5818_v14 = vpop.permute.xlu0 %5817 }
0x208e   :  { %v7204_v60 = vpop.f32.mrf.mxu0 }
0x208f   :  { %v5574_v29 = vadd.f32 %v7204_v60, %v9346_v31 }
0x2090   :  { %v5565_v28 = vpop.f32.mrf.mxu0 }
0x2091   :  { %v5566_v38 = vadd.f32 %v5565_v28, %v9347_v21  ;;  %v5586_v61 = vmax.f32 %v5574_v29, 0.0  ;;  %v9355_v28 = vld [vmem:[#allocation111_spill] sm:$0xff]  ;;  %v9356_v29 = vld [vmem:[#allocation110_spill] sm:$0xff] }
0x2092   :  { %v7205_v62 = vpop.f32.mrf.mxu0 }
0x2093   :  { %v5577_v6 = vadd.f32 %v7205_v62, %v9348_v10  ;;  %v5584_v63 = vmax.f32 %v5566_v38, 0.0 }
0x2094   :  { %v5568_v53 = vpop.f32.mrf.mxu0 }
0x2095   :  { %v5587_v4 = vmax.f32 %v5577_v6, 0.0  ;;  %v5569_v36 = vadd.f32 %v5568_v53, %v9349_v19  ;;  %v9357_v6 = vld [vmem:[#allocation112_spill] sm:$0xff] }
0x2097   :  { %v5589_v37 = vpack.c.bf16 %v5587_v4, %v5586_v61  ;;  %v5585_v46 = vmax.f32 %v5569_v36, 0.0 }
0x2099   :  { %v5588_v47 = vpack.c.bf16 %v5585_v46, %v5584_v63  ;;  %7206 = vmatprep.subr.bf16.mxu1 %v5589_v37  ;;  %v7334_v63 = vld [vmem:[%s9134_s2 + $0x58] sm:$0xff]  }
0x209a   :  { %7207 = vmatpush3.bf16.msra.mxu1 %v5589_v37 }
0x209b   :  { %7208 = vmatprep.subr.bf16.mxu1 %v5588_v47 }
0x209e   :  { %7209 = vmatpush3.bf16.msra.mxu1 %v5588_v47 }
0x20a1   :  { %7211 = vmatmul.mubr.msk.bf16.vlgmr.msra.gmra.mxu1 %vm225_vm1, %v7330_v24 }
0x2161   :  { %v7212_v20 = vpop.f32.mrf.mxu1 }
0x2162   :  { %v5673_v9 = vadd.f32 %v7212_v20, %v9350_v45 }
0x2163   :  { %v5664_v49 = vpop.f32.mrf.mxu1 }
0x2164   :  { %v5681_v56 = vadd.f32 %v5673_v9, %v5479_v55  ;;  %v5665_v26 = vadd.f32 %v5664_v49, %v9351_v15 }
0x2165   :  { %v7213_v48 = vpop.f32.mrf.mxu1 }
0x2166   :  { %v5679_v58 = vadd.f32 %v5665_v26, %v5477_v52  ;;  %v5676_v16 = vadd.f32 %v7213_v48, %v9352_v35  ;;  %v5685_v1 = vadd.f32 %v7180_v13, %v5681_v56  ;;  %v7332_v52 = vld [vmem:[%s9134_s2 + $0x48] sm:$0xff]  }
0x2167   :  { %v5667_v51 = vpop.f32.mrf.mxu1 }
0x2168   :  { %v5682_v5 = vadd.f32 %v5676_v16, %v5480_v32  ;;  %v5668_v44 = vadd.f32 %v5667_v51, %v9353_v50  ;;  %v5683_v30 = vadd.f32 %v5679_v58, %v5260_v54  ;;  %v5693_v3 = vmax.f32 %v5685_v1, 0.0  ;;  %v7333_v32 = vld [vmem:[%s9134_s2 + $0x50] sm:$0xff]  }
0x2169   :  { %7226 = vmatprep.mubr.msk.bf16.mxu1 %vm225_vm1, %v7333_v32 }
0x216a   :  { %v5686_v11 = vadd.f32 %v7181_v39, %v5682_v5  ;;  %v5680_v33 = vadd.f32 %v5668_v44, %v5478_v12  ;;  %v5691_v59 = vmax.f32 %v5683_v30, 0.0 }
0x216c   :  { %v5684_v34 = vadd.f32 %v5680_v33, %v5263_v23  ;;  %v5694_v18 = vmax.f32 %v5686_v11, 0.0 }
0x216e   :  { %v5696_v7 = vpack.c.bf16 %v5694_v18, %v5693_v3  ;;  %v5692_v55 = vmax.f32 %v5684_v34, 0.0 }
0x2170   :  { %7214 = vmatprep.subr.bf16.mxu0 %v5696_v7  ;;  %v5695_v27 = vpack.c.bf16 %v5692_v55, %v5691_v59 }
0x2171   :  { %7215 = vmatpush3.bf16.msra.mxu0 %v5696_v7 }
0x2172   :  { %7216 = vmatprep.subr.bf16.mxu0 %v5695_v27 }
0x2175   :  { %7217 = vmatpush3.bf16.msra.mxu0 %v5695_v27 }
0x2178   :  { %7219 = vmatmul.mubr.msk.bf16.vlgmr.msra.gmra.mxu0 %vm225_vm1, %v7332_v52 }
0x2238   :  { %v7220_v12 = vpop.f32.mrf.mxu0 }
0x2239   :  { %v5780_v42 = vadd.f32 %v7220_v12, %v9354_v8 }
0x223a   :  { %v5771_v40 = vpop.f32.mrf.mxu0 }
0x223b   :  { %v5772_v31 = vadd.f32 %v5771_v40, %v9355_v28  ;;  %v5792_v38 = vmax.f32 %v5780_v42, 0.0 }
0x223c   :  { %v7221_v60 = vpop.f32.mrf.mxu0 }
0x223d   :  { %v5783_v62 = vadd.f32 %v7221_v60, %v9356_v29  ;;  %v5790_v61 = vmax.f32 %v5772_v31, 0.0 }
0x223e   :  { %v5774_v21 = vpop.f32.mrf.mxu0 }
0x223f   :  { %v5793_v10 = vmax.f32 %v5783_v62, 0.0  ;;  %v5775_v53 = vadd.f32 %v5774_v21, %v9357_v6 }
0x2241   :  { %v5795_v4 = vpack.c.bf16 %v5793_v10, %v5792_v38  ;;  %v5791_v19 = vmax.f32 %v5775_v53, 0.0 }
0x2243   :  { %v5794_v36 = vpack.c.bf16 %v5791_v19, %v5790_v61  ;;  %7222 = vmatprep.subr.bf16.mxu1 %v5795_v4 }
0x2244   :  { %7223 = vmatpush3.bf16.msra.mxu1 %v5795_v4 }
0x2245   :  { %7224 = vmatprep.subr.bf16.mxu1 %v5794_v36 }
0x2248   :  { %7225 = vmatpush3.bf16.msra.mxu1 %v5794_v36 }
0x224b   :  { %7227 = vmatmul.mubr.msk.bf16.vlgmr.msra.gmra.mxu1 %vm225_vm1, %v7334_v63 }
0x230b   :  { %v7228_v37 = vpop.f32.mrf.mxu1 }
0x230c   :  { %v5879_v47 = vadd.f32 %v7228_v37, %v8634_v57 }
0x230d   :  { %v5870_v46 = vpop.f32.mrf.mxu1 }
0x230e   :  { %v5871_v24 = vadd.f32 %v5870_v46, %v8482_v43  ;;  %v5887_v20 = vadd.f32 %v5879_v47, %v5685_v1 }
0x230f   :  { %v7229_v13 = vpop.f32.mrf.mxu1 }
0x2310   :  { %v5885_v54 = vadd.f32 %v5871_v24, %v5683_v30  ;;  %v5882_v39 = vadd.f32 %v7229_v13, %v5818_v14  ;;  %v5891_v15 = vmax.f32 %v5887_v20, 0.0 }
0x2311   :  { %v5873_v23 = vpop.f32.mrf.mxu1 }
0x2312   :  { %v5874_v45 = vadd.f32 %v5873_v23, %v8630_v2  ;;  %v5889_v9 = vmax.f32 %v5885_v54, 0.0  ;;  %v5888_v49 = vadd.f32 %v5882_v39, %v5686_v11  ;;  %v5895_v43 = vmul.f32 %v5891_v15, %v8201_v17 }
0x2314   :  { %v5886_v56 = vadd.f32 %v5874_v45, %v5684_v34  ;;  %v5893_v48 = vmul.f32 %v5889_v9, %v8194_v25  ;;  %v5892_v58 = vmax.f32 %v5888_v49, 0.0 }
0x2316   :  { %v5890_v26 = vmax.f32 %v5886_v56, 0.0  ;;  %v5896_v16 = vmul.f32 %v5892_v58, %v8208_v22 }
0x2318   :  { %v5894_v57 = vmul.f32 %v5890_v26, %v8197_v0 }
0x231a   :  { %v5897_v35 = vadd.f32 %v5894_v57, %v5893_v48 }
0x231c   :  { %v5898_v51 = vadd.f32 %v5897_v35, %v5895_v43 }
0x231e   :  { %v5899_v5 = vadd.f32 %v5898_v51, %v5896_v16 }
0x2320   :  { %v5900_v1 = vrot.slane %v5899_v5, 4 }
0x2322   :  { %v5901_v50 = vadd.f32 %v5900_v1, %v5899_v5 }
0x2324   :  { %v5902_v2 = vrot.slane %v5901_v50, 2 }
0x2326   :  { %v5903_v44 = vadd.f32 %v5902_v2, %v5901_v50 }
0x2328   :  { %v5904_v30 = vrot.slane %v5903_v44, 1 }
0x232a   :  { %v5905_v11 = vadd.f32 %v5904_v30, %v5903_v44 }
0x232c   :  { %v5906_v33 = vadd.f32 %v5905_v11, %v8216_v41 }
0x232e   :  { %5907 = vst [vmem:[%s9137_s6 + $0x7] sm:$0x1] %v5906_v33 }

</bundles_post_ra>
